<compile_context>
chip_gen: v7x
topology: tpu7x:2x2x1
jax: 0.10.0
libtpu: 0.0.40
codegen_flags: <defaults>
</compile_context>

<pallas_src>
import jax
import jax.numpy as jnp
from jax import lax
from jax.experimental import pallas as pl
from jax.experimental.pallas import tpu as pltpu

EPS = 1e-5


# --------------------------------------------------------------------------
# Stage 1: CNN branch + residual + fused GRU input projections
# --------------------------------------------------------------------------
def _ffn_kernel(x_ref, w1_ref, b1_ref, g1_ref, bt1_ref,
                w2_ref, b2_ref, g2_ref, bt2_ref,
                wih_ref, bih_ref,
                gx_ref, pad_ref):
    B, L, C = x_ref.shape
    KC = w1_ref.shape[0]          # K * C
    K = KC // C
    P = (K - 1) // 2
    G = wih_ref.shape[1]          # 6 * H (fwd || bwd gates)

    # Zero the P-wide pad borders ONCE; both convs only overwrite the interior.
    if P > 0:
        zeros_border = jnp.zeros((B, P, C), jnp.float32)
        pad_ref[:, :P, :] = zeros_border
        pad_ref[:, P + L:, :] = zeros_border

    def conv_im2col(inp, w_ref, b):
        # 'same' Conv1d as one im2col matmul: col[:, l, k*C:(k+1)*C] = pad[l+k].
        pad_ref[:, P:P + L, :] = inp
        col = jnp.concatenate([pad_ref[:, k:k + L, :] for k in range(K)],
                              axis=-1)                         # (B, L, K*C)
        y = jnp.dot(col.reshape(B * L, KC), w_ref[...],
                    preferred_element_type=jnp.float32)
        return y + b                                           # (B*L, C)

    def batchnorm(h2d, gamma, beta):
        # training-mode BatchNorm1d in one fused pass: var = E[x^2] - E[x]^2
        m = jnp.mean(h2d, axis=0, keepdims=True)
        ms = jnp.mean(h2d * h2d, axis=0, keepdims=True)
        scale = gamma * lax.rsqrt(ms - m * m + EPS)
        shift = beta - m * scale
        return h2d * scale + shift

    x = x_ref[...]                                             # (B, L, C)

    h = conv_im2col(x, w1_ref, b1_ref[...])
    h = jnp.maximum(batchnorm(h, g1_ref[...], bt1_ref[...]), 0.0)   # ReLU

    h = conv_im2col(h.reshape(B, L, C), w2_ref, b2_ref[...])
    h = batchnorm(h, g2_ref[...], bt2_ref[...])

    out = jnp.maximum(h + x.reshape(B * L, C), 0.0)            # residual + ReLU
    # dropout_cnn: p = 0.0 -> identity

    # Fused fwd||bwd GRU input projection: one (B*L, C) @ (C, 6H) matmul.
    gx = jnp.dot(out, wih_ref[...], preferred_element_type=jnp.float32)
    gx_ref[...] = (gx + bih_ref[...]).reshape(B, L, G)


# --------------------------------------------------------------------------
# Stage 2: merged bidirectional GRU scan + BatchNorm + Tanh
# --------------------------------------------------------------------------
def _gru_bn_kernel(gxf_ref, gxb_ref,
                   whhf_ref, bhhf_ref, whhb_ref, bhhb_ref,
                   g3_ref, bt3_ref, h0_ref,
                   o_ref, hf_ref, hb_ref):
    L, B, G3 = gxf_ref.shape      # time-major gate layout (L, B, 3H)
    H = G3 // 3

    whh_f = whhf_ref[...]
    bhh_f = bhhf_ref[...]
    whh_b = whhb_ref[...]
    bhh_b = bhhb_ref[...]

    def gru_cell(gx, gh, h):
        # PyTorch gate order (r, z, n); biases already folded into gx / gh,
        # so n = tanh(gx_n + r * (W_hn h + b_hn)) matches torch exactly.
        rz = jax.nn.sigmoid(gx + gh)          # lanes [0:2H] hold (r, z)
        r = rz[:, :H]
        z = rz[:, H:2 * H]
        n = jnp.tanh(gx[:, 2 * H:] + r * gh[:, 2 * H:])
        return (1.0 - z) * n + z * h

    def step(i, carry):
        # Forward and backward recurrences advanced together: two independent
        # dependency chains per iteration, so the tiny per-step matmul / EUP
        # latencies overlap instead of serializing 2L deep.
        h_f, h_b = carry
        tb = L - 1 - i
        gx_f = gxf_ref[i]                     # leading-axis index: cheap
        gx_b = gxb_ref[tb]
        gh_f = jnp.dot(h_f, whh_f, preferred_element_type=jnp.float32) + bhh_f
        gh_b = jnp.dot(h_b, whh_b, preferred_element_type=jnp.float32) + bhh_b
        h_f = gru_cell(gx_f, gh_f, h_f)
        h_b = gru_cell(gx_b, gh_b, h_b)
        hf_ref[i] = h_f                       # time-major leading-axis stores
        hb_ref[tb] = h_b
        return h_f, h_b

    # Short fixed trip count -> unroll for LLO scheduler visibility.
    lax.fori_loop(0, L, step, (h0_ref[0], h0_ref[1]), unroll=True)

    # BatchNorm1d over the concatenated hidden (stats over batch & time), Tanh,
    # and a SINGLE lane-dense store of the full (L, B, 2H) output slab.
    hid = jnp.concatenate([hf_ref[...], hb_ref[...]], axis=-1)   # (L, B, 2H)
    m = jnp.mean(hid, axis=(0, 1), keepdims=True)
    ms = jnp.mean(hid * hid, axis=(0, 1), keepdims=True)
    scale = g3_ref[...] * lax.rsqrt(ms - m * m + EPS)
    shift = bt3_ref[...] - m * scale
    o_ref[...] = jnp.tanh(hid * scale + shift)
    # dropout_rnn: p = 0.0 -> identity


# --------------------------------------------------------------------------
# Wrapper
# --------------------------------------------------------------------------
def _basic_block_forward(x, params, h0):
    B, L, C = x.shape
    H = C // 2
    K = params["w1"].shape[0] // C
    vmem = pl.BlockSpec(memory_space=pltpu.MemorySpace.VMEM)
    cparams = pltpu.CompilerParams(vmem_limit_bytes=32 * 1024 * 1024)

    # Stage 1: CNN branch + residual + fused GRU input projections.
    gx = pl.pallas_call(
        _ffn_kernel,
        out_shape=jax.ShapeDtypeStruct((B, L, 6 * H), jnp.float32),
        in_specs=[vmem] * 11,
        out_specs=vmem,
        scratch_shapes=[pltpu.VMEM((B, L + K - 1, C), jnp.float32)],
        compiler_params=cparams,
    )(x, params["w1"], params["b1"], params["g1"], params["bt1"],
      params["w2"], params["b2"], params["g2"], params["bt2"],
      params["wih"], params["bih"])

    # Re-layout gates time-major for the recurrent stage (tiny XLA transpose
    # on HBM; keeps all in-kernel per-step accesses on the leading axis).
    gx_t = jnp.transpose(gx, (1, 0, 2))                  # (L, B, 6H)
    gx_f = gx_t[:, :, :3 * H]
    gx_b = gx_t[:, :, 3 * H:]

    # Stage 2: merged bidirectional GRU scan + BatchNorm + Tanh.
    out_t = pl.pallas_call(
        _gru_bn_kernel,
        out_shape=jax.ShapeDtypeStruct((L, B, C), jnp.float32),
        in_specs=[vmem] * 9,
        out_specs=vmem,
        scratch_shapes=[pltpu.VMEM((L, B, H), jnp.float32),   # fwd hidden
                        pltpu.VMEM((L, B, H), jnp.float32)],  # bwd hidden
        compiler_params=cparams,
    )(gx_f, gx_b, params["whh_f"], params["bhh_f"],
      params["whh_b"], params["bhh_b"],
      params["g3"], params["bt3"], h0)

    return jnp.transpose(out_t, (1, 0, 2))               # (B, L, C)


basic_block_forward = jax.jit(_basic_block_forward)


# --------------------------------------------------------------------------
# Parameter construction (torch-default init, repacked to kernel layouts)
# --------------------------------------------------------------------------
def init_params(key, C, H, K):
    keys = jax.random.split(key, 12)

    def u(k, shape, fan):
        bound = 1.0 / (fan ** 0.5)
        return jax.random.uniform(k, shape, jnp.float32, -bound, bound)

    # Conv1d weights in torch layout (out, in, k); biases (out,).
    w1_t = u(keys[0], (C, C, K), C * K)
    b1 = u(keys[1], (C,), C * K)
    w2_t = u(keys[2], (C, C, K), C * K)
    b2 = u(keys[3], (C,), C * K)

    # GRU weights in torch layout: weight_ih (3H, C), weight_hh (3H, H).
    wih_f = u(keys[4], (3 * H, C), H)
    whh_f = u(keys[5], (3 * H, H), H)
    bih_f = u(keys[6], (3 * H,), H)
    bhh_f = u(keys[7], (3 * H,), H)
    wih_b = u(keys[8], (3 * H, C), H)
    whh_b = u(keys[9], (3 * H, H), H)
    bih_b = u(keys[10], (3 * H,), H)
    bhh_b = u(keys[11], (3 * H,), H)

    # BatchNorm affine params (torch default: gamma=1, beta=0).
    ones_c = jnp.ones((1, C), jnp.float32)
    zeros_c = jnp.zeros((1, C), jnp.float32)

    def conv_repack(w_t):
        # (Cout, Cin, K) -> im2col layout (K*Cin, Cout).
        return jnp.transpose(w_t, (2, 1, 0)).reshape(K * C, C)

    return dict(
        w1=conv_repack(w1_t), b1=b1.reshape(1, C), g1=ones_c, bt1=zeros_c,
        w2=conv_repack(w2_t), b2=b2.reshape(1, C), g2=ones_c, bt2=zeros_c,
        # fused fwd||bwd input projection: (C, 6H) weight and (1, 6H) bias
        wih=jnp.concatenate([wih_f.T, wih_b.T], axis=1),
        bih=jnp.concatenate([bih_f, bih_b]).reshape(1, 6 * H),
        whh_f=whh_f.T, bhh_f=bhh_f.reshape(1, 3 * H),
        whh_b=whh_b.T, bhh_b=bhh_b.reshape(1, 3 * H),
        g3=ones_c, bt3=zeros_c,
    )


if __name__ == "__main__":
    B, L, C, K = 2, 16, 32, 3      # infeatures == outfeatures == C (residual)
    H = C // 2                     # GRU hidden size per direction

    key = jax.random.PRNGKey(0)
    kx, kh, kp = jax.random.split(key, 3)
    x = jax.random.normal(kx, (B, L, C), jnp.float32)          # (batch, length, infeatures)
    h0 = 0.1 * jax.random.normal(kh, (2, B, H), jnp.float32)   # (num_directions, batch, hidden)
    params = init_params(kp, C, H, K)

    out = basic_block_forward(x, params, h0)
    out = jax.block_until_ready(out)

    assert out.shape == (B, L, C), out.shape
    assert bool(jnp.all(jnp.isfinite(out)))
    print("KERNEL_OK")
</pallas_src>

<mosaic_0001>
module attributes {stable_mosaic.version = 11 : i64} {
  func.func @_ffn_kernel(%arg0: memref<2x16x32xf32, #tpu.memory_space<vmem>>, %arg1: memref<96x32xf32, #tpu.memory_space<vmem>>, %arg2: memref<1x32xf32, #tpu.memory_space<vmem>>, %arg3: memref<1x32xf32, #tpu.memory_space<vmem>>, %arg4: memref<1x32xf32, #tpu.memory_space<vmem>>, %arg5: memref<96x32xf32, #tpu.memory_space<vmem>>, %arg6: memref<1x32xf32, #tpu.memory_space<vmem>>, %arg7: memref<1x32xf32, #tpu.memory_space<vmem>>, %arg8: memref<1x32xf32, #tpu.memory_space<vmem>>, %arg9: memref<32x96xf32, #tpu.memory_space<vmem>>, %arg10: memref<1x96xf32, #tpu.memory_space<vmem>>, %arg11: memref<2x16x96xf32, #tpu.memory_space<vmem>>, %arg12: memref<2x18x32xf32, #tpu.memory_space<vmem>>) attributes {dimension_semantics = [], scalar_prefetch = 0 : i64, scratch_operands = 1 : i64, tpu.core_type = #tpu.core_type<tc>} {
    %cst = arith.constant 0.000000e+00 : f32
    %0 = vector.broadcast %cst : f32 to vector<2x1x32xf32>
    %c0 = arith.constant 0 : index
    %c0_0 = arith.constant 0 : index
    %c0_1 = arith.constant 0 : index
    %1 = vector.load %arg12[%c0, %c0_0, %c0_1] : memref<2x18x32xf32, #tpu.memory_space<vmem>>, vector<2x1x32xf32>
    tpu.vector_store %arg12[%c0, %c0_0, %c0_1], %0 {strides = array<i32>} : memref<2x18x32xf32, #tpu.memory_space<vmem>>, vector<2x1x32xf32>,
    %c0_2 = arith.constant 0 : index
    %c17 = arith.constant 17 : index
    %c0_3 = arith.constant 0 : index
    %2 = vector.load %arg12[%c0_2, %c17, %c0_3] : memref<2x18x32xf32, #tpu.memory_space<vmem>>, vector<2x1x32xf32>
    tpu.vector_store %arg12[%c0_2, %c17, %c0_3], %0 {strides = array<i32>} : memref<2x18x32xf32, #tpu.memory_space<vmem>>, vector<2x1x32xf32>,
    %c0_4 = arith.constant 0 : index
    %c0_5 = arith.constant 0 : index
    %c0_6 = arith.constant 0 : index
    %3 = vector.load %arg0[%c0_4, %c0_5, %c0_6] : memref<2x16x32xf32, #tpu.memory_space<vmem>>, vector<2x16x32xf32>
    %c0_7 = arith.constant 0 : index
    %c0_8 = arith.constant 0 : index
    %4 = vector.load %arg2[%c0_7, %c0_8] : memref<1x32xf32, #tpu.memory_space<vmem>>, vector<1x32xf32>
    %c0_9 = arith.constant 0 : index
    %c1 = arith.constant 1 : index
    %c0_10 = arith.constant 0 : index
    %5 = vector.load %arg12[%c0_9, %c1, %c0_10] : memref<2x18x32xf32, #tpu.memory_space<vmem>>, vector<2x16x32xf32>
    tpu.vector_store %arg12[%c0_9, %c1, %c0_10], %3 {strides = array<i32>} : memref<2x18x32xf32, #tpu.memory_space<vmem>>, vector<2x16x32xf32>,
    %c0_11 = arith.constant 0 : index
    %c0_12 = arith.constant 0 : index
    %c0_13 = arith.constant 0 : index
    %6 = vector.load %arg12[%c0_11, %c0_12, %c0_13] : memref<2x18x32xf32, #tpu.memory_space<vmem>>, vector<2x16x32xf32>
    %c0_14 = arith.constant 0 : index
    %c1_15 = arith.constant 1 : index
    %c0_16 = arith.constant 0 : index
    %7 = vector.load %arg12[%c0_14, %c1_15, %c0_16] : memref<2x18x32xf32, #tpu.memory_space<vmem>>, vector<2x16x32xf32>
    %c0_17 = arith.constant 0 : index
    %c2 = arith.constant 2 : index
    %c0_18 = arith.constant 0 : index
    %8 = vector.load %arg12[%c0_17, %c2, %c0_18] : memref<2x18x32xf32, #tpu.memory_space<vmem>>, vector<2x16x32xf32>
    %9 = tpu.concatenate %6, %7, %8 in 2 : vector<2x16x32xf32>, vector<2x16x32xf32>, vector<2x16x32xf32> -> vector<2x16x96xf32>
    %10 = vector.shape_cast %9 : vector<2x16x96xf32> to vector<32x96xf32>
    %c0_19 = arith.constant 0 : index
    %c0_20 = arith.constant 0 : index
    %11 = vector.load %arg1[%c0_19, %c0_20] : memref<96x32xf32, #tpu.memory_space<vmem>>, vector<96x32xf32>
    %cst_21 = arith.constant dense<0.000000e+00> : vector<32x32xf32>
    %12 = tpu.matmul %10, %11, %cst_21 {dimension_numbers = #tpu.dot_dimension_numbers<[1], [0], [0], [1], [0, 0, 1, 1], [], []>} : vector<32x96xf32>, vector<96x32xf32>, vector<32x32xf32> -> vector<32x32xf32>
    %13 = vector.broadcast %4 : vector<1x32xf32> to vector<32x32xf32>
    %14 = arith.addf %12, %13 : vector<32x32xf32>
    %c0_22 = arith.constant 0 : index
    %c0_23 = arith.constant 0 : index
    %15 = vector.load %arg3[%c0_22, %c0_23] : memref<1x32xf32, #tpu.memory_space<vmem>>, vector<1x32xf32>
    %c0_24 = arith.constant 0 : index
    %c0_25 = arith.constant 0 : index
    %16 = vector.load %arg4[%c0_24, %c0_25] : memref<1x32xf32, #tpu.memory_space<vmem>>, vector<1x32xf32>
    %cst_26 = arith.constant dense<0.000000e+00> : vector<32xf32>
    %17 = vector.multi_reduction <add>, %14, %cst_26 [0] : vector<32x32xf32> to vector<32xf32>
    %18 = vector.shape_cast %17 : vector<32xf32> to vector<1x32xf32>
    %cst_27 = arith.constant 3.200000e+01 : f32
    %19 = vector.broadcast %cst_27 : f32 to vector<1x32xf32>
    %20 = arith.divf %18, %19 : vector<1x32xf32>
    %21 = arith.mulf %14, %14 : vector<32x32xf32>
    %cst_28 = arith.constant dense<0.000000e+00> : vector<32xf32>
    %22 = vector.multi_reduction <add>, %21, %cst_28 [0] : vector<32x32xf32> to vector<32xf32>
    %23 = vector.shape_cast %22 : vector<32xf32> to vector<1x32xf32>
    %cst_29 = arith.constant 3.200000e+01 : f32
    %24 = vector.broadcast %cst_29 : f32 to vector<1x32xf32>
    %25 = arith.divf %23, %24 : vector<1x32xf32>
    %26 = arith.mulf %20, %20 : vector<1x32xf32>
    %27 = arith.subf %25, %26 : vector<1x32xf32>
    %cst_30 = arith.constant 9.99999974E-6 : f32
    %28 = vector.broadcast %cst_30 : f32 to vector<1x32xf32>
    %29 = arith.addf %27, %28 : vector<1x32xf32>
    %30 = math.rsqrt %29 : vector<1x32xf32>
    %31 = arith.mulf %15, %30 : vector<1x32xf32>
    %32 = arith.mulf %20, %31 : vector<1x32xf32>
    %33 = arith.subf %16, %32 : vector<1x32xf32>
    %34 = vector.broadcast %31 : vector<1x32xf32> to vector<32x32xf32>
    %35 = arith.mulf %14, %34 : vector<32x32xf32>
    %36 = vector.broadcast %33 : vector<1x32xf32> to vector<32x32xf32>
    %37 = arith.addf %35, %36 : vector<32x32xf32>
    %cst_31 = arith.constant 0.000000e+00 : f32
    %38 = vector.broadcast %cst_31 : f32 to vector<32x32xf32>
    %39 = arith.maximumf %37, %38 : vector<32x32xf32>
    %40 = vector.shape_cast %39 : vector<32x32xf32> to vector<2x16x32xf32>
    %c0_32 = arith.constant 0 : index
    %c0_33 = arith.constant 0 : index
    %41 = vector.load %arg6[%c0_32, %c0_33] : memref<1x32xf32, #tpu.memory_space<vmem>>, vector<1x32xf32>
    %c0_34 = arith.constant 0 : index
    %c1_35 = arith.constant 1 : index
    %c0_36 = arith.constant 0 : index
    %42 = vector.load %arg12[%c0_34, %c1_35, %c0_36] : memref<2x18x32xf32, #tpu.memory_space<vmem>>, vector<2x16x32xf32>
    tpu.vector_store %arg12[%c0_34, %c1_35, %c0_36], %40 {strides = array<i32>} : memref<2x18x32xf32, #tpu.memory_space<vmem>>, vector<2x16x32xf32>,
    %c0_37 = arith.constant 0 : index
    %c0_38 = arith.constant 0 : index
    %c0_39 = arith.constant 0 : index
    %43 = vector.load %arg12[%c0_37, %c0_38, %c0_39] : memref<2x18x32xf32, #tpu.memory_space<vmem>>, vector<2x16x32xf32>
    %c0_40 = arith.constant 0 : index
    %c1_41 = arith.constant 1 : index
    %c0_42 = arith.constant 0 : index
    %44 = vector.load %arg12[%c0_40, %c1_41, %c0_42] : memref<2x18x32xf32, #tpu.memory_space<vmem>>, vector<2x16x32xf32>
    %c0_43 = arith.constant 0 : index
    %c2_44 = arith.constant 2 : index
    %c0_45 = arith.constant 0 : index
    %45 = vector.load %arg12[%c0_43, %c2_44, %c0_45] : memref<2x18x32xf32, #tpu.memory_space<vmem>>, vector<2x16x32xf32>
    %46 = tpu.concatenate %43, %44, %45 in 2 : vector<2x16x32xf32>, vector<2x16x32xf32>, vector<2x16x32xf32> -> vector<2x16x96xf32>
    %47 = vector.shape_cast %46 : vector<2x16x96xf32> to vector<32x96xf32>
    %c0_46 = arith.constant 0 : index
    %c0_47 = arith.constant 0 : index
    %48 = vector.load %arg5[%c0_46, %c0_47] : memref<96x32xf32, #tpu.memory_space<vmem>>, vector<96x32xf32>
    %cst_48 = arith.constant dense<0.000000e+00> : vector<32x32xf32>
    %49 = tpu.matmul %47, %48, %cst_48 {dimension_numbers = #tpu.dot_dimension_numbers<[1], [0], [0], [1], [0, 0, 1, 1], [], []>} : vector<32x96xf32>, vector<96x32xf32>, vector<32x32xf32> -> vector<32x32xf32>
    %50 = vector.broadcast %41 : vector<1x32xf32> to vector<32x32xf32>
    %51 = arith.addf %49, %50 : vector<32x32xf32>
    %c0_49 = arith.constant 0 : index
    %c0_50 = arith.constant 0 : index
    %52 = vector.load %arg7[%c0_49, %c0_50] : memref<1x32xf32, #tpu.memory_space<vmem>>, vector<1x32xf32>
    %c0_51 = arith.constant 0 : index
    %c0_52 = arith.constant 0 : index
    %53 = vector.load %arg8[%c0_51, %c0_52] : memref<1x32xf32, #tpu.memory_space<vmem>>, vector<1x32xf32>
    %cst_53 = arith.constant dense<0.000000e+00> : vector<32xf32>
    %54 = vector.multi_reduction <add>, %51, %cst_53 [0] : vector<32x32xf32> to vector<32xf32>
    %55 = vector.shape_cast %54 : vector<32xf32> to vector<1x32xf32>
    %cst_54 = arith.constant 3.200000e+01 : f32
    %56 = vector.broadcast %cst_54 : f32 to vector<1x32xf32>
    %57 = arith.divf %55, %56 : vector<1x32xf32>
    %58 = arith.mulf %51, %51 : vector<32x32xf32>
    %cst_55 = arith.constant dense<0.000000e+00> : vector<32xf32>
    %59 = vector.multi_reduction <add>, %58, %cst_55 [0] : vector<32x32xf32> to vector<32xf32>
    %60 = vector.shape_cast %59 : vector<32xf32> to vector<1x32xf32>
    %cst_56 = arith.constant 3.200000e+01 : f32
    %61 = vector.broadcast %cst_56 : f32 to vector<1x32xf32>
    %62 = arith.divf %60, %61 : vector<1x32xf32>
    %63 = arith.mulf %57, %57 : vector<1x32xf32>
    %64 = arith.subf %62, %63 : vector<1x32xf32>
    %cst_57 = arith.constant 9.99999974E-6 : f32
    %65 = vector.broadcast %cst_57 : f32 to vector<1x32xf32>
    %66 = arith.addf %64, %65 : vector<1x32xf32>
    %67 = math.rsqrt %66 : vector<1x32xf32>
    %68 = arith.mulf %52, %67 : vector<1x32xf32>
    %69 = arith.mulf %57, %68 : vector<1x32xf32>
    %70 = arith.subf %53, %69 : vector<1x32xf32>
    %71 = vector.broadcast %68 : vector<1x32xf32> to vector<32x32xf32>
    %72 = arith.mulf %51, %71 : vector<32x32xf32>
    %73 = vector.broadcast %70 : vector<1x32xf32> to vector<32x32xf32>
    %74 = arith.addf %72, %73 : vector<32x32xf32>
    %75 = vector.shape_cast %3 : vector<2x16x32xf32> to vector<32x32xf32>
    %76 = arith.addf %74, %75 : vector<32x32xf32>
    %cst_58 = arith.constant 0.000000e+00 : f32
    %77 = vector.broadcast %cst_58 : f32 to vector<32x32xf32>
    %78 = arith.maximumf %76, %77 : vector<32x32xf32>
    %c0_59 = arith.constant 0 : index
    %c0_60 = arith.constant 0 : index
    %79 = vector.load %arg9[%c0_59, %c0_60] : memref<32x96xf32, #tpu.memory_space<vmem>>, vector<32x96xf32>
    %cst_61 = arith.constant dense<0.000000e+00> : vector<32x96xf32>
    %80 = tpu.matmul %78, %79, %cst_61 {dimension_numbers = #tpu.dot_dimension_numbers<[1], [0], [0], [1], [0, 0, 1, 1], [], []>} : vector<32x32xf32>, vector<32x96xf32>, vector<32x96xf32> -> vector<32x96xf32>
    %c0_62 = arith.constant 0 : index
    %c0_63 = arith.constant 0 : index
    %81 = vector.load %arg10[%c0_62, %c0_63] : memref<1x96xf32, #tpu.memory_space<vmem>>, vector<1x96xf32>
    %82 = vector.broadcast %81 : vector<1x96xf32> to vector<32x96xf32>
    %83 = arith.addf %80, %82 : vector<32x96xf32>
    %84 = vector.shape_cast %83 : vector<32x96xf32> to vector<2x16x96xf32>
    %c0_64 = arith.constant 0 : index
    %c0_65 = arith.constant 0 : index
    %c0_66 = arith.constant 0 : index
    %85 = vector.load %arg11[%c0_64, %c0_65, %c0_66] : memref<2x16x96xf32, #tpu.memory_space<vmem>>, vector<2x16x96xf32>
    tpu.vector_store %arg11[%c0_64, %c0_65, %c0_66], %84 {strides = array<i32>} : memref<2x16x96xf32, #tpu.memory_space<vmem>>, vector<2x16x96xf32>,
    return
  }
}

module attributes {stable_mosaic.version = 11 : i64} {
  func.func @_gru_bn_kernel(%arg0: memref<16x2x48xf32, #tpu.memory_space<vmem>>, %arg1: memref<16x2x48xf32, #tpu.memory_space<vmem>>, %arg2: memref<16x48xf32, #tpu.memory_space<vmem>>, %arg3: memref<1x48xf32, #tpu.memory_space<vmem>>, %arg4: memref<16x48xf32, #tpu.memory_space<vmem>>, %arg5: memref<1x48xf32, #tpu.memory_space<vmem>>, %arg6: memref<1x32xf32, #tpu.memory_space<vmem>>, %arg7: memref<1x32xf32, #tpu.memory_space<vmem>>, %arg8: memref<2x2x16xf32, #tpu.memory_space<vmem>>, %arg9: memref<16x2x32xf32, #tpu.memory_space<vmem>>, %arg10: memref<16x2x16xf32, #tpu.memory_space<vmem>>, %arg11: memref<16x2x16xf32, #tpu.memory_space<vmem>>) attributes {dimension_semantics = [], scalar_prefetch = 0 : i64, scratch_operands = 2 : i64, tpu.core_type = #tpu.core_type<tc>} {
    %c0 = arith.constant 0 : index
    %c0_0 = arith.constant 0 : index
    %0 = vector.load %arg2[%c0, %c0_0] : memref<16x48xf32, #tpu.memory_space<vmem>>, vector<16x48xf32>
    %c0_1 = arith.constant 0 : index
    %c0_2 = arith.constant 0 : index
    %1 = vector.load %arg3[%c0_1, %c0_2] : memref<1x48xf32, #tpu.memory_space<vmem>>, vector<1x48xf32>
    %c0_3 = arith.constant 0 : index
    %c0_4 = arith.constant 0 : index
    %2 = vector.load %arg4[%c0_3, %c0_4] : memref<16x48xf32, #tpu.memory_space<vmem>>, vector<16x48xf32>
    %c0_5 = arith.constant 0 : index
    %c0_6 = arith.constant 0 : index
    %3 = vector.load %arg5[%c0_5, %c0_6] : memref<1x48xf32, #tpu.memory_space<vmem>>, vector<1x48xf32>
    %c0_7 = arith.constant 0 : index
    %c0_8 = arith.constant 0 : index
    %c0_9 = arith.constant 0 : index
    %4 = vector.load %arg8[%c0_7, %c0_8, %c0_9] : memref<2x2x16xf32, #tpu.memory_space<vmem>>, vector<1x2x16xf32>
    %5 = vector.shape_cast %4 : vector<1x2x16xf32> to vector<2x16xf32>
    %c1 = arith.constant 1 : index
    %c0_10 = arith.constant 0 : index
    %c0_11 = arith.constant 0 : index
    %6 = vector.load %arg8[%c1, %c0_10, %c0_11] : memref<2x2x16xf32, #tpu.memory_space<vmem>>, vector<1x2x16xf32>
    %7 = vector.shape_cast %6 : vector<1x2x16xf32> to vector<2x16xf32>
    %c0_i32 = arith.constant 0 : i32
    %c15_i32 = arith.constant 15 : i32
    %8 = arith.subi %c15_i32, %c0_i32 : i32
    %9 = arith.index_cast %c0_i32 : i32 to index
    %c0_12 = arith.constant 0 : index
    %c0_13 = arith.constant 0 : index
    %10 = vector.load %arg0[%9, %c0_12, %c0_13] : memref<16x2x48xf32, #tpu.memory_space<vmem>>, vector<1x2x48xf32>
    %11 = vector.shape_cast %10 : vector<1x2x48xf32> to vector<2x48xf32>
    %12 = arith.index_cast %8 : i32 to index
    %c0_14 = arith.constant 0 : index
    %c0_15 = arith.constant 0 : index
    %13 = vector.load %arg1[%12, %c0_14, %c0_15] : memref<16x2x48xf32, #tpu.memory_space<vmem>>, vector<1x2x48xf32>
    %14 = vector.shape_cast %13 : vector<1x2x48xf32> to vector<2x48xf32>
    %cst = arith.constant dense<0.000000e+00> : vector<2x48xf32>
    %15 = tpu.matmul %5, %0, %cst {dimension_numbers = #tpu.dot_dimension_numbers<[1], [0], [0], [1], [0, 0, 1, 1], [], []>} : vector<2x16xf32>, vector<16x48xf32>, vector<2x48xf32> -> vector<2x48xf32>
    %16 = vector.broadcast %1 : vector<1x48xf32> to vector<2x48xf32>
    %17 = arith.addf %15, %16 : vector<2x48xf32>
    %cst_16 = arith.constant dense<0.000000e+00> : vector<2x48xf32>
    %18 = tpu.matmul %7, %2, %cst_16 {dimension_numbers = #tpu.dot_dimension_numbers<[1], [0], [0], [1], [0, 0, 1, 1], [], []>} : vector<2x16xf32>, vector<16x48xf32>, vector<2x48xf32> -> vector<2x48xf32>
    %19 = vector.broadcast %3 : vector<1x48xf32> to vector<2x48xf32>
    %20 = arith.addf %18, %19 : vector<2x48xf32>
    %21 = arith.addf %11, %17 : vector<2x48xf32>
    %22 = arith.negf %21 : vector<2x48xf32>
    %23 = math.exp %22 : vector<2x48xf32>
    %cst_17 = arith.constant 1.000000e+00 : f32
    %24 = vector.broadcast %cst_17 : f32 to vector<2x48xf32>
    %25 = arith.addf %24, %23 : vector<2x48xf32>
    %26 = arith.divf %24, %25 : vector<2x48xf32>
    %27 = vector.extract_strided_slice %26 {offsets = [0, 0], sizes = [2, 16], strides = [1, 1]} : vector<2x48xf32> to vector<2x16xf32>
    %28 = vector.extract_strided_slice %26 {offsets = [0, 16], sizes = [2, 16], strides = [1, 1]} : vector<2x48xf32> to vector<2x16xf32>
    %29 = vector.extract_strided_slice %11 {offsets = [0, 32], sizes = [2, 16], strides = [1, 1]} : vector<2x48xf32> to vector<2x16xf32>
    %30 = vector.extract_strided_slice %17 {offsets = [0, 32], sizes = [2, 16], strides = [1, 1]} : vector<2x48xf32> to vector<2x16xf32>
    %31 = arith.mulf %27, %30 : vector<2x16xf32>
    %32 = arith.addf %29, %31 : vector<2x16xf32>
    %33 = math.tanh %32 : vector<2x16xf32>
    %cst_18 = arith.constant 1.000000e+00 : f32
    %34 = vector.broadcast %cst_18 : f32 to vector<2x16xf32>
    %35 = arith.subf %34, %28 : vector<2x16xf32>
    %36 = arith.mulf %35, %33 : vector<2x16xf32>
    %37 = arith.mulf %28, %5 : vector<2x16xf32>
    %38 = arith.addf %36, %37 : vector<2x16xf32>
    %39 = arith.addf %14, %20 : vector<2x48xf32>
    %40 = arith.negf %39 : vector<2x48xf32>
    %41 = math.exp %40 : vector<2x48xf32>
    %cst_19 = arith.constant 1.000000e+00 : f32
    %42 = vector.broadcast %cst_19 : f32 to vector<2x48xf32>
    %43 = arith.addf %42, %41 : vector<2x48xf32>
    %44 = arith.divf %42, %43 : vector<2x48xf32>
    %45 = vector.extract_strided_slice %44 {offsets = [0, 0], sizes = [2, 16], strides = [1, 1]} : vector<2x48xf32> to vector<2x16xf32>
    %46 = vector.extract_strided_slice %44 {offsets = [0, 16], sizes = [2, 16], strides = [1, 1]} : vector<2x48xf32> to vector<2x16xf32>
    %47 = vector.extract_strided_slice %14 {offsets = [0, 32], sizes = [2, 16], strides = [1, 1]} : vector<2x48xf32> to vector<2x16xf32>
    %48 = vector.extract_strided_slice %20 {offsets = [0, 32], sizes = [2, 16], strides = [1, 1]} : vector<2x48xf32> to vector<2x16xf32>
    %49 = arith.mulf %45, %48 : vector<2x16xf32>
    %50 = arith.addf %47, %49 : vector<2x16xf32>
    %51 = math.tanh %50 : vector<2x16xf32>
    %cst_20 = arith.constant 1.000000e+00 : f32
    %52 = vector.broadcast %cst_20 : f32 to vector<2x16xf32>
    %53 = arith.subf %52, %46 : vector<2x16xf32>
    %54 = arith.mulf %53, %51 : vector<2x16xf32>
    %55 = arith.mulf %46, %7 : vector<2x16xf32>
    %56 = arith.addf %54, %55 : vector<2x16xf32>
    %57 = arith.index_cast %c0_i32 : i32 to index
    %c0_21 = arith.constant 0 : index
    %c0_22 = arith.constant 0 : index
    %58 = vector.load %arg10[%57, %c0_21, %c0_22] : memref<16x2x16xf32, #tpu.memory_space<vmem>>, vector<1x2x16xf32>
    %59 = vector.shape_cast %58 : vector<1x2x16xf32> to vector<2x16xf32>
    %60 = vector.shape_cast %38 : vector<2x16xf32> to vector<1x2x16xf32>
    tpu.vector_store %arg10[%57, %c0_21, %c0_22], %60 {strides = array<i32>} : memref<16x2x16xf32, #tpu.memory_space<vmem>>, vector<1x2x16xf32>,
    %61 = arith.index_cast %8 : i32 to index
    %c0_23 = arith.constant 0 : index
    %c0_24 = arith.constant 0 : index
    %62 = vector.load %arg11[%61, %c0_23, %c0_24] : memref<16x2x16xf32, #tpu.memory_space<vmem>>, vector<1x2x16xf32>
    %63 = vector.shape_cast %62 : vector<1x2x16xf32> to vector<2x16xf32>
    %64 = vector.shape_cast %56 : vector<2x16xf32> to vector<1x2x16xf32>
    tpu.vector_store %arg11[%61, %c0_23, %c0_24], %64 {strides = array<i32>} : memref<16x2x16xf32, #tpu.memory_space<vmem>>, vector<1x2x16xf32>,
    %c1_i32 = arith.constant 1 : i32
    %c15_i32_25 = arith.constant 15 : i32
    %65 = arith.subi %c15_i32_25, %c1_i32 : i32
    %66 = arith.index_cast %c1_i32 : i32 to index
    %c0_26 = arith.constant 0 : index
    %c0_27 = arith.constant 0 : index
    %67 = vector.load %arg0[%66, %c0_26, %c0_27] : memref<16x2x48xf32, #tpu.memory_space<vmem>>, vector<1x2x48xf32>
    %68 = vector.shape_cast %67 : vector<1x2x48xf32> to vector<2x48xf32>
    %69 = arith.index_cast %65 : i32 to index
    %c0_28 = arith.constant 0 : index
    %c0_29 = arith.constant 0 : index
    %70 = vector.load %arg1[%69, %c0_28, %c0_29] : memref<16x2x48xf32, #tpu.memory_space<vmem>>, vector<1x2x48xf32>
    %71 = vector.shape_cast %70 : vector<1x2x48xf32> to vector<2x48xf32>
    %cst_30 = arith.constant dense<0.000000e+00> : vector<2x48xf32>
    %72 = tpu.matmul %38, %0, %cst_30 {dimension_numbers = #tpu.dot_dimension_numbers<[1], [0], [0], [1], [0, 0, 1, 1], [], []>} : vector<2x16xf32>, vector<16x48xf32>, vector<2x48xf32> -> vector<2x48xf32>
    %73 = vector.broadcast %1 : vector<1x48xf32> to vector<2x48xf32>
    %74 = arith.addf %72, %73 : vector<2x48xf32>
    %cst_31 = arith.constant dense<0.000000e+00> : vector<2x48xf32>
    %75 = tpu.matmul %56, %2, %cst_31 {dimension_numbers = #tpu.dot_dimension_numbers<[1], [0], [0], [1], [0, 0, 1, 1], [], []>} : vector<2x16xf32>, vector<16x48xf32>, vector<2x48xf32> -> vector<2x48xf32>
    %76 = vector.broadcast %3 : vector<1x48xf32> to vector<2x48xf32>
    %77 = arith.addf %75, %76 : vector<2x48xf32>
    %78 = arith.addf %68, %74 : vector<2x48xf32>
    %79 = arith.negf %78 : vector<2x48xf32>
    %80 = math.exp %79 : vector<2x48xf32>
    %cst_32 = arith.constant 1.000000e+00 : f32
    %81 = vector.broadcast %cst_32 : f32 to vector<2x48xf32>
    %82 = arith.addf %81, %80 : vector<2x48xf32>
    %83 = arith.divf %81, %82 : vector<2x48xf32>
    %84 = vector.extract_strided_slice %83 {offsets = [0, 0], sizes = [2, 16], strides = [1, 1]} : vector<2x48xf32> to vector<2x16xf32>
    %85 = vector.extract_strided_slice %83 {offsets = [0, 16], sizes = [2, 16], strides = [1, 1]} : vector<2x48xf32> to vector<2x16xf32>
    %86 = vector.extract_strided_slice %68 {offsets = [0, 32], sizes = [2, 16], strides = [1, 1]} : vector<2x48xf32> to vector<2x16xf32>
    %87 = vector.extract_strided_slice %74 {offsets = [0, 32], sizes = [2, 16], strides = [1, 1]} : vector<2x48xf32> to vector<2x16xf32>
    %88 = arith.mulf %84, %87 : vector<2x16xf32>
    %89 = arith.addf %86, %88 : vector<2x16xf32>
    %90 = math.tanh %89 : vector<2x16xf32>
    %cst_33 = arith.constant 1.000000e+00 : f32
    %91 = vector.broadcast %cst_33 : f32 to vector<2x16xf32>
    %92 = arith.subf %91, %85 : vector<2x16xf32>
    %93 = arith.mulf %92, %90 : vector<2x16xf32>
    %94 = arith.mulf %85, %38 : vector<2x16xf32>
    %95 = arith.addf %93, %94 : vector<2x16xf32>
    %96 = arith.addf %71, %77 : vector<2x48xf32>
    %97 = arith.negf %96 : vector<2x48xf32>
    %98 = math.exp %97 : vector<2x48xf32>
    %cst_34 = arith.constant 1.000000e+00 : f32
    %99 = vector.broadcast %cst_34 : f32 to vector<2x48xf32>
    %100 = arith.addf %99, %98 : vector<2x48xf32>
    %101 = arith.divf %99, %100 : vector<2x48xf32>
    %102 = vector.extract_strided_slice %101 {offsets = [0, 0], sizes = [2, 16], strides = [1, 1]} : vector<2x48xf32> to vector<2x16xf32>
    %103 = vector.extract_strided_slice %101 {offsets = [0, 16], sizes = [2, 16], strides = [1, 1]} : vector<2x48xf32> to vector<2x16xf32>
    %104 = vector.extract_strided_slice %71 {offsets = [0, 32], sizes = [2, 16], strides = [1, 1]} : vector<2x48xf32> to vector<2x16xf32>
    %105 = vector.extract_strided_slice %77 {offsets = [0, 32], sizes = [2, 16], strides = [1, 1]} : vector<2x48xf32> to vector<2x16xf32>
    %106 = arith.mulf %102, %105 : vector<2x16xf32>
    %107 = arith.addf %104, %106 : vector<2x16xf32>
    %108 = math.tanh %107 : vector<2x16xf32>
    %cst_35 = arith.constant 1.000000e+00 : f32
    %109 = vector.broadcast %cst_35 : f32 to vector<2x16xf32>
    %110 = arith.subf %109, %103 : vector<2x16xf32>
    %111 = arith.mulf %110, %108 : vector<2x16xf32>
    %112 = arith.mulf %103, %56 : vector<2x16xf32>
    %113 = arith.addf %111, %112 : vector<2x16xf32>
    %114 = arith.index_cast %c1_i32 : i32 to index
    %c0_36 = arith.constant 0 : index
    %c0_37 = arith.constant 0 : index
    %115 = vector.load %arg10[%114, %c0_36, %c0_37] : memref<16x2x16xf32, #tpu.memory_space<vmem>>, vector<1x2x16xf32>
    %116 = vector.shape_cast %115 : vector<1x2x16xf32> to vector<2x16xf32>
    %117 = vector.shape_cast %95 : vector<2x16xf32> to vector<1x2x16xf32>
    tpu.vector_store %arg10[%114, %c0_36, %c0_37], %117 {strides = array<i32>} : memref<16x2x16xf32, #tpu.memory_space<vmem>>, vector<1x2x16xf32>,
    %118 = arith.index_cast %65 : i32 to index
    %c0_38 = arith.constant 0 : index
    %c0_39 = arith.constant 0 : index
    %119 = vector.load %arg11[%118, %c0_38, %c0_39] : memref<16x2x16xf32, #tpu.memory_space<vmem>>, vector<1x2x16xf32>
    %120 = vector.shape_cast %119 : vector<1x2x16xf32> to vector<2x16xf32>
    %121 = vector.shape_cast %113 : vector<2x16xf32> to vector<1x2x16xf32>
    tpu.vector_store %arg11[%118, %c0_38, %c0_39], %121 {strides = array<i32>} : memref<16x2x16xf32, #tpu.memory_space<vmem>>, vector<1x2x16xf32>,
    %c2_i32 = arith.constant 2 : i32
    %c15_i32_40 = arith.constant 15 : i32
    %122 = arith.subi %c15_i32_40, %c2_i32 : i32
    %123 = arith.index_cast %c2_i32 : i32 to index
    %c0_41 = arith.constant 0 : index
    %c0_42 = arith.constant 0 : index
    %124 = vector.load %arg0[%123, %c0_41, %c0_42] : memref<16x2x48xf32, #tpu.memory_space<vmem>>, vector<1x2x48xf32>
    %125 = vector.shape_cast %124 : vector<1x2x48xf32> to vector<2x48xf32>
    %126 = arith.index_cast %122 : i32 to index
    %c0_43 = arith.constant 0 : index
    %c0_44 = arith.constant 0 : index
    %127 = vector.load %arg1[%126, %c0_43, %c0_44] : memref<16x2x48xf32, #tpu.memory_space<vmem>>, vector<1x2x48xf32>
    %128 = vector.shape_cast %127 : vector<1x2x48xf32> to vector<2x48xf32>
    %cst_45 = arith.constant dense<0.000000e+00> : vector<2x48xf32>
    %129 = tpu.matmul %95, %0, %cst_45 {dimension_numbers = #tpu.dot_dimension_numbers<[1], [0], [0], [1], [0, 0, 1, 1], [], []>} : vector<2x16xf32>, vector<16x48xf32>, vector<2x48xf32> -> vector<2x48xf32>
    %130 = vector.broadcast %1 : vector<1x48xf32> to vector<2x48xf32>
    %131 = arith.addf %129, %130 : vector<2x48xf32>
    %cst_46 = arith.constant dense<0.000000e+00> : vector<2x48xf32>
    %132 = tpu.matmul %113, %2, %cst_46 {dimension_numbers = #tpu.dot_dimension_numbers<[1], [0], [0], [1], [0, 0, 1, 1], [], []>} : vector<2x16xf32>, vector<16x48xf32>, vector<2x48xf32> -> vector<2x48xf32>
    %133 = vector.broadcast %3 : vector<1x48xf32> to vector<2x48xf32>
    %134 = arith.addf %132, %133 : vector<2x48xf32>
    %135 = arith.addf %125, %131 : vector<2x48xf32>
    %136 = arith.negf %135 : vector<2x48xf32>
    %137 = math.exp %136 : vector<2x48xf32>
    %cst_47 = arith.constant 1.000000e+00 : f32
    %138 = vector.broadcast %cst_47 : f32 to vector<2x48xf32>
    %139 = arith.addf %138, %137 : vector<2x48xf32>
    %140 = arith.divf %138, %139 : vector<2x48xf32>
    %141 = vector.extract_strided_slice %140 {offsets = [0, 0], sizes = [2, 16], strides = [1, 1]} : vector<2x48xf32> to vector<2x16xf32>
    %142 = vector.extract_strided_slice %140 {offsets = [0, 16], sizes = [2, 16], strides = [1, 1]} : vector<2x48xf32> to vector<2x16xf32>
    %143 = vector.extract_strided_slice %125 {offsets = [0, 32], sizes = [2, 16], strides = [1, 1]} : vector<2x48xf32> to vector<2x16xf32>
    %144 = vector.extract_strided_slice %131 {offsets = [0, 32], sizes = [2, 16], strides = [1, 1]} : vector<2x48xf32> to vector<2x16xf32>
    %145 = arith.mulf %141, %144 : vector<2x16xf32>
    %146 = arith.addf %143, %145 : vector<2x16xf32>
    %147 = math.tanh %146 : vector<2x16xf32>
    %cst_48 = arith.constant 1.000000e+00 : f32
    %148 = vector.broadcast %cst_48 : f32 to vector<2x16xf32>
    %149 = arith.subf %148, %142 : vector<2x16xf32>
    %150 = arith.mulf %149, %147 : vector<2x16xf32>
    %151 = arith.mulf %142, %95 : vector<2x16xf32>
    %152 = arith.addf %150, %151 : vector<2x16xf32>
    %153 = arith.addf %128, %134 : vector<2x48xf32>
    %154 = arith.negf %153 : vector<2x48xf32>
    %155 = math.exp %154 : vector<2x48xf32>
    %cst_49 = arith.constant 1.000000e+00 : f32
    %156 = vector.broadcast %cst_49 : f32 to vector<2x48xf32>
    %157 = arith.addf %156, %155 : vector<2x48xf32>
    %158 = arith.divf %156, %157 : vector<2x48xf32>
    %159 = vector.extract_strided_slice %158 {offsets = [0, 0], sizes = [2, 16], strides = [1, 1]} : vector<2x48xf32> to vector<2x16xf32>
    %160 = vector.extract_strided_slice %158 {offsets = [0, 16], sizes = [2, 16], strides = [1, 1]} : vector<2x48xf32> to vector<2x16xf32>
    %161 = vector.extract_strided_slice %128 {offsets = [0, 32], sizes = [2, 16], strides = [1, 1]} : vector<2x48xf32> to vector<2x16xf32>
    %162 = vector.extract_strided_slice %134 {offsets = [0, 32], sizes = [2, 16], strides = [1, 1]} : vector<2x48xf32> to vector<2x16xf32>
    %163 = arith.mulf %159, %162 : vector<2x16xf32>
    %164 = arith.addf %161, %163 : vector<2x16xf32>
    %165 = math.tanh %164 : vector<2x16xf32>
    %cst_50 = arith.constant 1.000000e+00 : f32
    %166 = vector.broadcast %cst_50 : f32 to vector<2x16xf32>
    %167 = arith.subf %166, %160 : vector<2x16xf32>
    %168 = arith.mulf %167, %165 : vector<2x16xf32>
    %169 = arith.mulf %160, %113 : vector<2x16xf32>
    %170 = arith.addf %168, %169 : vector<2x16xf32>
    %171 = arith.index_cast %c2_i32 : i32 to index
    %c0_51 = arith.constant 0 : index
    %c0_52 = arith.constant 0 : index
    %172 = vector.load %arg10[%171, %c0_51, %c0_52] : memref<16x2x16xf32, #tpu.memory_space<vmem>>, vector<1x2x16xf32>
    %173 = vector.shape_cast %172 : vector<1x2x16xf32> to vector<2x16xf32>
    %174 = vector.shape_cast %152 : vector<2x16xf32> to vector<1x2x16xf32>
    tpu.vector_store %arg10[%171, %c0_51, %c0_52], %174 {strides = array<i32>} : memref<16x2x16xf32, #tpu.memory_space<vmem>>, vector<1x2x16xf32>,
    %175 = arith.index_cast %122 : i32 to index
    %c0_53 = arith.constant 0 : index
    %c0_54 = arith.constant 0 : index
    %176 = vector.load %arg11[%175, %c0_53, %c0_54] : memref<16x2x16xf32, #tpu.memory_space<vmem>>, vector<1x2x16xf32>
    %177 = vector.shape_cast %176 : vector<1x2x16xf32> to vector<2x16xf32>
    %178 = vector.shape_cast %170 : vector<2x16xf32> to vector<1x2x16xf32>
    tpu.vector_store %arg11[%175, %c0_53, %c0_54], %178 {strides = array<i32>} : memref<16x2x16xf32, #tpu.memory_space<vmem>>, vector<1x2x16xf32>,
    %c3_i32 = arith.constant 3 : i32
    %c15_i32_55 = arith.constant 15 : i32
    %179 = arith.subi %c15_i32_55, %c3_i32 : i32
    %180 = arith.index_cast %c3_i32 : i32 to index
    %c0_56 = arith.constant 0 : index
    %c0_57 = arith.constant 0 : index
    %181 = vector.load %arg0[%180, %c0_56, %c0_57] : memref<16x2x48xf32, #tpu.memory_space<vmem>>, vector<1x2x48xf32>
    %182 = vector.shape_cast %181 : vector<1x2x48xf32> to vector<2x48xf32>
    %183 = arith.index_cast %179 : i32 to index
    %c0_58 = arith.constant 0 : index
    %c0_59 = arith.constant 0 : index
    %184 = vector.load %arg1[%183, %c0_58, %c0_59] : memref<16x2x48xf32, #tpu.memory_space<vmem>>, vector<1x2x48xf32>
    %185 = vector.shape_cast %184 : vector<1x2x48xf32> to vector<2x48xf32>
    %cst_60 = arith.constant dense<0.000000e+00> : vector<2x48xf32>
    %186 = tpu.matmul %152, %0, %cst_60 {dimension_numbers = #tpu.dot_dimension_numbers<[1], [0], [0], [1], [0, 0, 1, 1], [], []>} : vector<2x16xf32>, vector<16x48xf32>, vector<2x48xf32> -> vector<2x48xf32>
    %187 = vector.broadcast %1 : vector<1x48xf32> to vector<2x48xf32>
    %188 = arith.addf %186, %187 : vector<2x48xf32>
    %cst_61 = arith.constant dense<0.000000e+00> : vector<2x48xf32>
    %189 = tpu.matmul %170, %2, %cst_61 {dimension_numbers = #tpu.dot_dimension_numbers<[1], [0], [0], [1], [0, 0, 1, 1], [], []>} : vector<2x16xf32>, vector<16x48xf32>, vector<2x48xf32> -> vector<2x48xf32>
    %190 = vector.broadcast %3 : vector<1x48xf32> to vector<2x48xf32>
    %191 = arith.addf %189, %190 : vector<2x48xf32>
    %192 = arith.addf %182, %188 : vector<2x48xf32>
    %193 = arith.negf %192 : vector<2x48xf32>
    %194 = math.exp %193 : vector<2x48xf32>
    %cst_62 = arith.constant 1.000000e+00 : f32
    %195 = vector.broadcast %cst_62 : f32 to vector<2x48xf32>
    %196 = arith.addf %195, %194 : vector<2x48xf32>
    %197 = arith.divf %195, %196 : vector<2x48xf32>
    %198 = vector.extract_strided_slice %197 {offsets = [0, 0], sizes = [2, 16], strides = [1, 1]} : vector<2x48xf32> to vector<2x16xf32>
    %199 = vector.extract_strided_slice %197 {offsets = [0, 16], sizes = [2, 16], strides = [1, 1]} : vector<2x48xf32> to vector<2x16xf32>
    %200 = vector.extract_strided_slice %182 {offsets = [0, 32], sizes = [2, 16], strides = [1, 1]} : vector<2x48xf32> to vector<2x16xf32>
    %201 = vector.extract_strided_slice %188 {offsets = [0, 32], sizes = [2, 16], strides = [1, 1]} : vector<2x48xf32> to vector<2x16xf32>
    %202 = arith.mulf %198, %201 : vector<2x16xf32>
    %203 = arith.addf %200, %202 : vector<2x16xf32>
    %204 = math.tanh %203 : vector<2x16xf32>
    %cst_63 = arith.constant 1.000000e+00 : f32
    %205 = vector.broadcast %cst_63 : f32 to vector<2x16xf32>
    %206 = arith.subf %205, %199 : vector<2x16xf32>
    %207 = arith.mulf %206, %204 : vector<2x16xf32>
    %208 = arith.mulf %199, %152 : vector<2x16xf32>
    %209 = arith.addf %207, %208 : vector<2x16xf32>
    %210 = arith.addf %185, %191 : vector<2x48xf32>
    %211 = arith.negf %210 : vector<2x48xf32>
    %212 = math.exp %211 : vector<2x48xf32>
    %cst_64 = arith.constant 1.000000e+00 : f32
    %213 = vector.broadcast %cst_64 : f32 to vector<2x48xf32>
    %214 = arith.addf %213, %212 : vector<2x48xf32>
    %215 = arith.divf %213, %214 : vector<2x48xf32>
    %216 = vector.extract_strided_slice %215 {offsets = [0, 0], sizes = [2, 16], strides = [1, 1]} : vector<2x48xf32> to vector<2x16xf32>
    %217 = vector.extract_strided_slice %215 {offsets = [0, 16], sizes = [2, 16], strides = [1, 1]} : vector<2x48xf32> to vector<2x16xf32>
    %218 = vector.extract_strided_slice %185 {offsets = [0, 32], sizes = [2, 16], strides = [1, 1]} : vector<2x48xf32> to vector<2x16xf32>
    %219 = vector.extract_strided_slice %191 {offsets = [0, 32], sizes = [2, 16], strides = [1, 1]} : vector<2x48xf32> to vector<2x16xf32>
    %220 = arith.mulf %216, %219 : vector<2x16xf32>
    %221 = arith.addf %218, %220 : vector<2x16xf32>
    %222 = math.tanh %221 : vector<2x16xf32>
    %cst_65 = arith.constant 1.000000e+00 : f32
    %223 = vector.broadcast %cst_65 : f32 to vector<2x16xf32>
    %224 = arith.subf %223, %217 : vector<2x16xf32>
    %225 = arith.mulf %224, %222 : vector<2x16xf32>
    %226 = arith.mulf %217, %170 : vector<2x16xf32>
    %227 = arith.addf %225, %226 : vector<2x16xf32>
    %228 = arith.index_cast %c3_i32 : i32 to index
    %c0_66 = arith.constant 0 : index
    %c0_67 = arith.constant 0 : index
    %229 = vector.load %arg10[%228, %c0_66, %c0_67] : memref<16x2x16xf32, #tpu.memory_space<vmem>>, vector<1x2x16xf32>
    %230 = vector.shape_cast %229 : vector<1x2x16xf32> to vector<2x16xf32>
    %231 = vector.shape_cast %209 : vector<2x16xf32> to vector<1x2x16xf32>
    tpu.vector_store %arg10[%228, %c0_66, %c0_67], %231 {strides = array<i32>} : memref<16x2x16xf32, #tpu.memory_space<vmem>>, vector<1x2x16xf32>,
    %232 = arith.index_cast %179 : i32 to index
    %c0_68 = arith.constant 0 : index
    %c0_69 = arith.constant 0 : index
    %233 = vector.load %arg11[%232, %c0_68, %c0_69] : memref<16x2x16xf32, #tpu.memory_space<vmem>>, vector<1x2x16xf32>
    %234 = vector.shape_cast %233 : vector<1x2x16xf32> to vector<2x16xf32>
    %235 = vector.shape_cast %227 : vector<2x16xf32> to vector<1x2x16xf32>
    tpu.vector_store %arg11[%232, %c0_68, %c0_69], %235 {strides = array<i32>} : memref<16x2x16xf32, #tpu.memory_space<vmem>>, vector<1x2x16xf32>,
    %c4_i32 = arith.constant 4 : i32
    %c15_i32_70 = arith.constant 15 : i32
    %236 = arith.subi %c15_i32_70, %c4_i32 : i32
    %237 = arith.index_cast %c4_i32 : i32 to index
    %c0_71 = arith.constant 0 : index
    %c0_72 = arith.constant 0 : index
    %238 = vector.load %arg0[%237, %c0_71, %c0_72] : memref<16x2x48xf32, #tpu.memory_space<vmem>>, vector<1x2x48xf32>
    %239 = vector.shape_cast %238 : vector<1x2x48xf32> to vector<2x48xf32>
    %240 = arith.index_cast %236 : i32 to index
    %c0_73 = arith.constant 0 : index
    %c0_74 = arith.constant 0 : index
    %241 = vector.load %arg1[%240, %c0_73, %c0_74] : memref<16x2x48xf32, #tpu.memory_space<vmem>>, vector<1x2x48xf32>
    %242 = vector.shape_cast %241 : vector<1x2x48xf32> to vector<2x48xf32>
    %cst_75 = arith.constant dense<0.000000e+00> : vector<2x48xf32>
    %243 = tpu.matmul %209, %0, %cst_75 {dimension_numbers = #tpu.dot_dimension_numbers<[1], [0], [0], [1], [0, 0, 1, 1], [], []>} : vector<2x16xf32>, vector<16x48xf32>, vector<2x48xf32> -> vector<2x48xf32>
    %244 = vector.broadcast %1 : vector<1x48xf32> to vector<2x48xf32>
    %245 = arith.addf %243, %244 : vector<2x48xf32>
    %cst_76 = arith.constant dense<0.000000e+00> : vector<2x48xf32>
    %246 = tpu.matmul %227, %2, %cst_76 {dimension_numbers = #tpu.dot_dimension_numbers<[1], [0], [0], [1], [0, 0, 1, 1], [], []>} : vector<2x16xf32>, vector<16x48xf32>, vector<2x48xf32> -> vector<2x48xf32>
    %247 = vector.broadcast %3 : vector<1x48xf32> to vector<2x48xf32>
    %248 = arith.addf %246, %247 : vector<2x48xf32>
    %249 = arith.addf %239, %245 : vector<2x48xf32>
    %250 = arith.negf %249 : vector<2x48xf32>
    %251 = math.exp %250 : vector<2x48xf32>
    %cst_77 = arith.constant 1.000000e+00 : f32
    %252 = vector.broadcast %cst_77 : f32 to vector<2x48xf32>
    %253 = arith.addf %252, %251 : vector<2x48xf32>
    %254 = arith.divf %252, %253 : vector<2x48xf32>
    %255 = vector.extract_strided_slice %254 {offsets = [0, 0], sizes = [2, 16], strides = [1, 1]} : vector<2x48xf32> to vector<2x16xf32>
    %256 = vector.extract_strided_slice %254 {offsets = [0, 16], sizes = [2, 16], strides = [1, 1]} : vector<2x48xf32> to vector<2x16xf32>
    %257 = vector.extract_strided_slice %239 {offsets = [0, 32], sizes = [2, 16], strides = [1, 1]} : vector<2x48xf32> to vector<2x16xf32>
    %258 = vector.extract_strided_slice %245 {offsets = [0, 32], sizes = [2, 16], strides = [1, 1]} : vector<2x48xf32> to vector<2x16xf32>
    %259 = arith.mulf %255, %258 : vector<2x16xf32>
    %260 = arith.addf %257, %259 : vector<2x16xf32>
    %261 = math.tanh %260 : vector<2x16xf32>
    %cst_78 = arith.constant 1.000000e+00 : f32
    %262 = vector.broadcast %cst_78 : f32 to vector<2x16xf32>
    %263 = arith.subf %262, %256 : vector<2x16xf32>
    %264 = arith.mulf %263, %261 : vector<2x16xf32>
    %265 = arith.mulf %256, %209 : vector<2x16xf32>
    %266 = arith.addf %264, %265 : vector<2x16xf32>
    %267 = arith.addf %242, %248 : vector<2x48xf32>
    %268 = arith.negf %267 : vector<2x48xf32>
    %269 = math.exp %268 : vector<2x48xf32>
    %cst_79 = arith.constant 1.000000e+00 : f32
    %270 = vector.broadcast %cst_79 : f32 to vector<2x48xf32>
    %271 = arith.addf %270, %269 : vector<2x48xf32>
    %272 = arith.divf %270, %271 : vector<2x48xf32>
    %273 = vector.extract_strided_slice %272 {offsets = [0, 0], sizes = [2, 16], strides = [1, 1]} : vector<2x48xf32> to vector<2x16xf32>
    %274 = vector.extract_strided_slice %272 {offsets = [0, 16], sizes = [2, 16], strides = [1, 1]} : vector<2x48xf32> to vector<2x16xf32>
    %275 = vector.extract_strided_slice %242 {offsets = [0, 32], sizes = [2, 16], strides = [1, 1]} : vector<2x48xf32> to vector<2x16xf32>
    %276 = vector.extract_strided_slice %248 {offsets = [0, 32], sizes = [2, 16], strides = [1, 1]} : vector<2x48xf32> to vector<2x16xf32>
    %277 = arith.mulf %273, %276 : vector<2x16xf32>
    %278 = arith.addf %275, %277 : vector<2x16xf32>
    %279 = math.tanh %278 : vector<2x16xf32>
    %cst_80 = arith.constant 1.000000e+00 : f32
    %280 = vector.broadcast %cst_80 : f32 to vector<2x16xf32>
    %281 = arith.subf %280, %274 : vector<2x16xf32>
    %282 = arith.mulf %281, %279 : vector<2x16xf32>
    %283 = arith.mulf %274, %227 : vector<2x16xf32>
    %284 = arith.addf %282, %283 : vector<2x16xf32>
    %285 = arith.index_cast %c4_i32 : i32 to index
    %c0_81 = arith.constant 0 : index
    %c0_82 = arith.constant 0 : index
    %286 = vector.load %arg10[%285, %c0_81, %c0_82] : memref<16x2x16xf32, #tpu.memory_space<vmem>>, vector<1x2x16xf32>
    %287 = vector.shape_cast %286 : vector<1x2x16xf32> to vector<2x16xf32>
    %288 = vector.shape_cast %266 : vector<2x16xf32> to vector<1x2x16xf32>
    tpu.vector_store %arg10[%285, %c0_81, %c0_82], %288 {strides = array<i32>} : memref<16x2x16xf32, #tpu.memory_space<vmem>>, vector<1x2x16xf32>,
    %289 = arith.index_cast %236 : i32 to index
    %c0_83 = arith.constant 0 : index
    %c0_84 = arith.constant 0 : index
    %290 = vector.load %arg11[%289, %c0_83, %c0_84] : memref<16x2x16xf32, #tpu.memory_space<vmem>>, vector<1x2x16xf32>
    %291 = vector.shape_cast %290 : vector<1x2x16xf32> to vector<2x16xf32>
    %292 = vector.shape_cast %284 : vector<2x16xf32> to vector<1x2x16xf32>
    tpu.vector_store %arg11[%289, %c0_83, %c0_84], %292 {strides = array<i32>} : memref<16x2x16xf32, #tpu.memory_space<vmem>>, vector<1x2x16xf32>,
    %c5_i32 = arith.constant 5 : i32
    %c15_i32_85 = arith.constant 15 : i32
    %293 = arith.subi %c15_i32_85, %c5_i32 : i32
    %294 = arith.index_cast %c5_i32 : i32 to index
    %c0_86 = arith.constant 0 : index
    %c0_87 = arith.constant 0 : index
    %295 = vector.load %arg0[%294, %c0_86, %c0_87] : memref<16x2x48xf32, #tpu.memory_space<vmem>>, vector<1x2x48xf32>
    %296 = vector.shape_cast %295 : vector<1x2x48xf32> to vector<2x48xf32>
    %297 = arith.index_cast %293 : i32 to index
    %c0_88 = arith.constant 0 : index
    %c0_89 = arith.constant 0 : index
    %298 = vector.load %arg1[%297, %c0_88, %c0_89] : memref<16x2x48xf32, #tpu.memory_space<vmem>>, vector<1x2x48xf32>
    %299 = vector.shape_cast %298 : vector<1x2x48xf32> to vector<2x48xf32>
    %cst_90 = arith.constant dense<0.000000e+00> : vector<2x48xf32>
    %300 = tpu.matmul %266, %0, %cst_90 {dimension_numbers = #tpu.dot_dimension_numbers<[1], [0], [0], [1], [0, 0, 1, 1], [], []>} : vector<2x16xf32>, vector<16x48xf32>, vector<2x48xf32> -> vector<2x48xf32>
    %301 = vector.broadcast %1 : vector<1x48xf32> to vector<2x48xf32>
    %302 = arith.addf %300, %301 : vector<2x48xf32>
    %cst_91 = arith.constant dense<0.000000e+00> : vector<2x48xf32>
    %303 = tpu.matmul %284, %2, %cst_91 {dimension_numbers = #tpu.dot_dimension_numbers<[1], [0], [0], [1], [0, 0, 1, 1], [], []>} : vector<2x16xf32>, vector<16x48xf32>, vector<2x48xf32> -> vector<2x48xf32>
    %304 = vector.broadcast %3 : vector<1x48xf32> to vector<2x48xf32>
    %305 = arith.addf %303, %304 : vector<2x48xf32>
    %306 = arith.addf %296, %302 : vector<2x48xf32>
    %307 = arith.negf %306 : vector<2x48xf32>
    %308 = math.exp %307 : vector<2x48xf32>
    %cst_92 = arith.constant 1.000000e+00 : f32
    %309 = vector.broadcast %cst_92 : f32 to vector<2x48xf32>
    %310 = arith.addf %309, %308 : vector<2x48xf32>
    %311 = arith.divf %309, %310 : vector<2x48xf32>
    %312 = vector.extract_strided_slice %311 {offsets = [0, 0], sizes = [2, 16], strides = [1, 1]} : vector<2x48xf32> to vector<2x16xf32>
    %313 = vector.extract_strided_slice %311 {offsets = [0, 16], sizes = [2, 16], strides = [1, 1]} : vector<2x48xf32> to vector<2x16xf32>
    %314 = vector.extract_strided_slice %296 {offsets = [0, 32], sizes = [2, 16], strides = [1, 1]} : vector<2x48xf32> to vector<2x16xf32>
    %315 = vector.extract_strided_slice %302 {offsets = [0, 32], sizes = [2, 16], strides = [1, 1]} : vector<2x48xf32> to vector<2x16xf32>
    %316 = arith.mulf %312, %315 : vector<2x16xf32>
    %317 = arith.addf %314, %316 : vector<2x16xf32>
    %318 = math.tanh %317 : vector<2x16xf32>
    %cst_93 = arith.constant 1.000000e+00 : f32
    %319 = vector.broadcast %cst_93 : f32 to vector<2x16xf32>
    %320 = arith.subf %319, %313 : vector<2x16xf32>
    %321 = arith.mulf %320, %318 : vector<2x16xf32>
    %322 = arith.mulf %313, %266 : vector<2x16xf32>
    %323 = arith.addf %321, %322 : vector<2x16xf32>
    %324 = arith.addf %299, %305 : vector<2x48xf32>
    %325 = arith.negf %324 : vector<2x48xf32>
    %326 = math.exp %325 : vector<2x48xf32>
    %cst_94 = arith.constant 1.000000e+00 : f32
    %327 = vector.broadcast %cst_94 : f32 to vector<2x48xf32>
    %328 = arith.addf %327, %326 : vector<2x48xf32>
    %329 = arith.divf %327, %328 : vector<2x48xf32>
    %330 = vector.extract_strided_slice %329 {offsets = [0, 0], sizes = [2, 16], strides = [1, 1]} : vector<2x48xf32> to vector<2x16xf32>
    %331 = vector.extract_strided_slice %329 {offsets = [0, 16], sizes = [2, 16], strides = [1, 1]} : vector<2x48xf32> to vector<2x16xf32>
    %332 = vector.extract_strided_slice %299 {offsets = [0, 32], sizes = [2, 16], strides = [1, 1]} : vector<2x48xf32> to vector<2x16xf32>
    %333 = vector.extract_strided_slice %305 {offsets = [0, 32], sizes = [2, 16], strides = [1, 1]} : vector<2x48xf32> to vector<2x16xf32>
    %334 = arith.mulf %330, %333 : vector<2x16xf32>
    %335 = arith.addf %332, %334 : vector<2x16xf32>
    %336 = math.tanh %335 : vector<2x16xf32>
    %cst_95 = arith.constant 1.000000e+00 : f32
    %337 = vector.broadcast %cst_95 : f32 to vector<2x16xf32>
    %338 = arith.subf %337, %331 : vector<2x16xf32>
    %339 = arith.mulf %338, %336 : vector<2x16xf32>
    %340 = arith.mulf %331, %284 : vector<2x16xf32>
    %341 = arith.addf %339, %340 : vector<2x16xf32>
    %342 = arith.index_cast %c5_i32 : i32 to index
    %c0_96 = arith.constant 0 : index
    %c0_97 = arith.constant 0 : index
    %343 = vector.load %arg10[%342, %c0_96, %c0_97] : memref<16x2x16xf32, #tpu.memory_space<vmem>>, vector<1x2x16xf32>
    %344 = vector.shape_cast %343 : vector<1x2x16xf32> to vector<2x16xf32>
    %345 = vector.shape_cast %323 : vector<2x16xf32> to vector<1x2x16xf32>
    tpu.vector_store %arg10[%342, %c0_96, %c0_97], %345 {strides = array<i32>} : memref<16x2x16xf32, #tpu.memory_space<vmem>>, vector<1x2x16xf32>,
    %346 = arith.index_cast %293 : i32 to index
    %c0_98 = arith.constant 0 : index
    %c0_99 = arith.constant 0 : index
    %347 = vector.load %arg11[%346, %c0_98, %c0_99] : memref<16x2x16xf32, #tpu.memory_space<vmem>>, vector<1x2x16xf32>
    %348 = vector.shape_cast %347 : vector<1x2x16xf32> to vector<2x16xf32>
    %349 = vector.shape_cast %341 : vector<2x16xf32> to vector<1x2x16xf32>
    tpu.vector_store %arg11[%346, %c0_98, %c0_99], %349 {strides = array<i32>} : memref<16x2x16xf32, #tpu.memory_space<vmem>>, vector<1x2x16xf32>,
    %c6_i32 = arith.constant 6 : i32
    %c15_i32_100 = arith.constant 15 : i32
    %350 = arith.subi %c15_i32_100, %c6_i32 : i32
    %351 = arith.index_cast %c6_i32 : i32 to index
    %c0_101 = arith.constant 0 : index
    %c0_102 = arith.constant 0 : index
    %352 = vector.load %arg0[%351, %c0_101, %c0_102] : memref<16x2x48xf32, #tpu.memory_space<vmem>>, vector<1x2x48xf32>
    %353 = vector.shape_cast %352 : vector<1x2x48xf32> to vector<2x48xf32>
    %354 = arith.index_cast %350 : i32 to index
    %c0_103 = arith.constant 0 : index
    %c0_104 = arith.constant 0 : index
    %355 = vector.load %arg1[%354, %c0_103, %c0_104] : memref<16x2x48xf32, #tpu.memory_space<vmem>>, vector<1x2x48xf32>
    %356 = vector.shape_cast %355 : vector<1x2x48xf32> to vector<2x48xf32>
    %cst_105 = arith.constant dense<0.000000e+00> : vector<2x48xf32>
    %357 = tpu.matmul %323, %0, %cst_105 {dimension_numbers = #tpu.dot_dimension_numbers<[1], [0], [0], [1], [0, 0, 1, 1], [], []>} : vector<2x16xf32>, vector<16x48xf32>, vector<2x48xf32> -> vector<2x48xf32>
    %358 = vector.broadcast %1 : vector<1x48xf32> to vector<2x48xf32>
    %359 = arith.addf %357, %358 : vector<2x48xf32>
    %cst_106 = arith.constant dense<0.000000e+00> : vector<2x48xf32>
    %360 = tpu.matmul %341, %2, %cst_106 {dimension_numbers = #tpu.dot_dimension_numbers<[1], [0], [0], [1], [0, 0, 1, 1], [], []>} : vector<2x16xf32>, vector<16x48xf32>, vector<2x48xf32> -> vector<2x48xf32>
    %361 = vector.broadcast %3 : vector<1x48xf32> to vector<2x48xf32>
    %362 = arith.addf %360, %361 : vector<2x48xf32>
    %363 = arith.addf %353, %359 : vector<2x48xf32>
    %364 = arith.negf %363 : vector<2x48xf32>
    %365 = math.exp %364 : vector<2x48xf32>
    %cst_107 = arith.constant 1.000000e+00 : f32
    %366 = vector.broadcast %cst_107 : f32 to vector<2x48xf32>
    %367 = arith.addf %366, %365 : vector<2x48xf32>
    %368 = arith.divf %366, %367 : vector<2x48xf32>
    %369 = vector.extract_strided_slice %368 {offsets = [0, 0], sizes = [2, 16], strides = [1, 1]} : vector<2x48xf32> to vector<2x16xf32>
    %370 = vector.extract_strided_slice %368 {offsets = [0, 16], sizes = [2, 16], strides = [1, 1]} : vector<2x48xf32> to vector<2x16xf32>
    %371 = vector.extract_strided_slice %353 {offsets = [0, 32], sizes = [2, 16], strides = [1, 1]} : vector<2x48xf32> to vector<2x16xf32>
    %372 = vector.extract_strided_slice %359 {offsets = [0, 32], sizes = [2, 16], strides = [1, 1]} : vector<2x48xf32> to vector<2x16xf32>
    %373 = arith.mulf %369, %372 : vector<2x16xf32>
    %374 = arith.addf %371, %373 : vector<2x16xf32>
    %375 = math.tanh %374 : vector<2x16xf32>
    %cst_108 = arith.constant 1.000000e+00 : f32
    %376 = vector.broadcast %cst_108 : f32 to vector<2x16xf32>
    %377 = arith.subf %376, %370 : vector<2x16xf32>
    %378 = arith.mulf %377, %375 : vector<2x16xf32>
    %379 = arith.mulf %370, %323 : vector<2x16xf32>
    %380 = arith.addf %378, %379 : vector<2x16xf32>
    %381 = arith.addf %356, %362 : vector<2x48xf32>
    %382 = arith.negf %381 : vector<2x48xf32>
    %383 = math.exp %382 : vector<2x48xf32>
    %cst_109 = arith.constant 1.000000e+00 : f32
    %384 = vector.broadcast %cst_109 : f32 to vector<2x48xf32>
    %385 = arith.addf %384, %383 : vector<2x48xf32>
    %386 = arith.divf %384, %385 : vector<2x48xf32>
    %387 = vector.extract_strided_slice %386 {offsets = [0, 0], sizes = [2, 16], strides = [1, 1]} : vector<2x48xf32> to vector<2x16xf32>
    %388 = vector.extract_strided_slice %386 {offsets = [0, 16], sizes = [2, 16], strides = [1, 1]} : vector<2x48xf32> to vector<2x16xf32>
    %389 = vector.extract_strided_slice %356 {offsets = [0, 32], sizes = [2, 16], strides = [1, 1]} : vector<2x48xf32> to vector<2x16xf32>
    %390 = vector.extract_strided_slice %362 {offsets = [0, 32], sizes = [2, 16], strides = [1, 1]} : vector<2x48xf32> to vector<2x16xf32>
    %391 = arith.mulf %387, %390 : vector<2x16xf32>
    %392 = arith.addf %389, %391 : vector<2x16xf32>
    %393 = math.tanh %392 : vector<2x16xf32>
    %cst_110 = arith.constant 1.000000e+00 : f32
    %394 = vector.broadcast %cst_110 : f32 to vector<2x16xf32>
    %395 = arith.subf %394, %388 : vector<2x16xf32>
    %396 = arith.mulf %395, %393 : vector<2x16xf32>
    %397 = arith.mulf %388, %341 : vector<2x16xf32>
    %398 = arith.addf %396, %397 : vector<2x16xf32>
    %399 = arith.index_cast %c6_i32 : i32 to index
    %c0_111 = arith.constant 0 : index
    %c0_112 = arith.constant 0 : index
    %400 = vector.load %arg10[%399, %c0_111, %c0_112] : memref<16x2x16xf32, #tpu.memory_space<vmem>>, vector<1x2x16xf32>
    %401 = vector.shape_cast %400 : vector<1x2x16xf32> to vector<2x16xf32>
    %402 = vector.shape_cast %380 : vector<2x16xf32> to vector<1x2x16xf32>
    tpu.vector_store %arg10[%399, %c0_111, %c0_112], %402 {strides = array<i32>} : memref<16x2x16xf32, #tpu.memory_space<vmem>>, vector<1x2x16xf32>,
    %403 = arith.index_cast %350 : i32 to index
    %c0_113 = arith.constant 0 : index
    %c0_114 = arith.constant 0 : index
    %404 = vector.load %arg11[%403, %c0_113, %c0_114] : memref<16x2x16xf32, #tpu.memory_space<vmem>>, vector<1x2x16xf32>
    %405 = vector.shape_cast %404 : vector<1x2x16xf32> to vector<2x16xf32>
    %406 = vector.shape_cast %398 : vector<2x16xf32> to vector<1x2x16xf32>
    tpu.vector_store %arg11[%403, %c0_113, %c0_114], %406 {strides = array<i32>} : memref<16x2x16xf32, #tpu.memory_space<vmem>>, vector<1x2x16xf32>,
    %c7_i32 = arith.constant 7 : i32
    %c15_i32_115 = arith.constant 15 : i32
    %407 = arith.subi %c15_i32_115, %c7_i32 : i32
    %408 = arith.index_cast %c7_i32 : i32 to index
    %c0_116 = arith.constant 0 : index
    %c0_117 = arith.constant 0 : index
    %409 = vector.load %arg0[%408, %c0_116, %c0_117] : memref<16x2x48xf32, #tpu.memory_space<vmem>>, vector<1x2x48xf32>
    %410 = vector.shape_cast %409 : vector<1x2x48xf32> to vector<2x48xf32>
    %411 = arith.index_cast %407 : i32 to index
    %c0_118 = arith.constant 0 : index
    %c0_119 = arith.constant 0 : index
    %412 = vector.load %arg1[%411, %c0_118, %c0_119] : memref<16x2x48xf32, #tpu.memory_space<vmem>>, vector<1x2x48xf32>
    %413 = vector.shape_cast %412 : vector<1x2x48xf32> to vector<2x48xf32>
    %cst_120 = arith.constant dense<0.000000e+00> : vector<2x48xf32>
    %414 = tpu.matmul %380, %0, %cst_120 {dimension_numbers = #tpu.dot_dimension_numbers<[1], [0], [0], [1], [0, 0, 1, 1], [], []>} : vector<2x16xf32>, vector<16x48xf32>, vector<2x48xf32> -> vector<2x48xf32>
    %415 = vector.broadcast %1 : vector<1x48xf32> to vector<2x48xf32>
    %416 = arith.addf %414, %415 : vector<2x48xf32>
    %cst_121 = arith.constant dense<0.000000e+00> : vector<2x48xf32>
    %417 = tpu.matmul %398, %2, %cst_121 {dimension_numbers = #tpu.dot_dimension_numbers<[1], [0], [0], [1], [0, 0, 1, 1], [], []>} : vector<2x16xf32>, vector<16x48xf32>, vector<2x48xf32> -> vector<2x48xf32>
    %418 = vector.broadcast %3 : vector<1x48xf32> to vector<2x48xf32>
    %419 = arith.addf %417, %418 : vector<2x48xf32>
    %420 = arith.addf %410, %416 : vector<2x48xf32>
    %421 = arith.negf %420 : vector<2x48xf32>
    %422 = math.exp %421 : vector<2x48xf32>
    %cst_122 = arith.constant 1.000000e+00 : f32
    %423 = vector.broadcast %cst_122 : f32 to vector<2x48xf32>
    %424 = arith.addf %423, %422 : vector<2x48xf32>
    %425 = arith.divf %423, %424 : vector<2x48xf32>
    %426 = vector.extract_strided_slice %425 {offsets = [0, 0], sizes = [2, 16], strides = [1, 1]} : vector<2x48xf32> to vector<2x16xf32>
    %427 = vector.extract_strided_slice %425 {offsets = [0, 16], sizes = [2, 16], strides = [1, 1]} : vector<2x48xf32> to vector<2x16xf32>
    %428 = vector.extract_strided_slice %410 {offsets = [0, 32], sizes = [2, 16], strides = [1, 1]} : vector<2x48xf32> to vector<2x16xf32>
    %429 = vector.extract_strided_slice %416 {offsets = [0, 32], sizes = [2, 16], strides = [1, 1]} : vector<2x48xf32> to vector<2x16xf32>
    %430 = arith.mulf %426, %429 : vector<2x16xf32>
    %431 = arith.addf %428, %430 : vector<2x16xf32>
    %432 = math.tanh %431 : vector<2x16xf32>
    %cst_123 = arith.constant 1.000000e+00 : f32
    %433 = vector.broadcast %cst_123 : f32 to vector<2x16xf32>
    %434 = arith.subf %433, %427 : vector<2x16xf32>
    %435 = arith.mulf %434, %432 : vector<2x16xf32>
    %436 = arith.mulf %427, %380 : vector<2x16xf32>
    %437 = arith.addf %435, %436 : vector<2x16xf32>
    %438 = arith.addf %413, %419 : vector<2x48xf32>
    %439 = arith.negf %438 : vector<2x48xf32>
    %440 = math.exp %439 : vector<2x48xf32>
    %cst_124 = arith.constant 1.000000e+00 : f32
    %441 = vector.broadcast %cst_124 : f32 to vector<2x48xf32>
    %442 = arith.addf %441, %440 : vector<2x48xf32>
    %443 = arith.divf %441, %442 : vector<2x48xf32>
    %444 = vector.extract_strided_slice %443 {offsets = [0, 0], sizes = [2, 16], strides = [1, 1]} : vector<2x48xf32> to vector<2x16xf32>
    %445 = vector.extract_strided_slice %443 {offsets = [0, 16], sizes = [2, 16], strides = [1, 1]} : vector<2x48xf32> to vector<2x16xf32>
    %446 = vector.extract_strided_slice %413 {offsets = [0, 32], sizes = [2, 16], strides = [1, 1]} : vector<2x48xf32> to vector<2x16xf32>
    %447 = vector.extract_strided_slice %419 {offsets = [0, 32], sizes = [2, 16], strides = [1, 1]} : vector<2x48xf32> to vector<2x16xf32>
    %448 = arith.mulf %444, %447 : vector<2x16xf32>
    %449 = arith.addf %446, %448 : vector<2x16xf32>
    %450 = math.tanh %449 : vector<2x16xf32>
    %cst_125 = arith.constant 1.000000e+00 : f32
    %451 = vector.broadcast %cst_125 : f32 to vector<2x16xf32>
    %452 = arith.subf %451, %445 : vector<2x16xf32>
    %453 = arith.mulf %452, %450 : vector<2x16xf32>
    %454 = arith.mulf %445, %398 : vector<2x16xf32>
    %455 = arith.addf %453, %454 : vector<2x16xf32>
    %456 = arith.index_cast %c7_i32 : i32 to index
    %c0_126 = arith.constant 0 : index
    %c0_127 = arith.constant 0 : index
    %457 = vector.load %arg10[%456, %c0_126, %c0_127] : memref<16x2x16xf32, #tpu.memory_space<vmem>>, vector<1x2x16xf32>
    %458 = vector.shape_cast %457 : vector<1x2x16xf32> to vector<2x16xf32>
    %459 = vector.shape_cast %437 : vector<2x16xf32> to vector<1x2x16xf32>
    tpu.vector_store %arg10[%456, %c0_126, %c0_127], %459 {strides = array<i32>} : memref<16x2x16xf32, #tpu.memory_space<vmem>>, vector<1x2x16xf32>,
    %460 = arith.index_cast %407 : i32 to index
    %c0_128 = arith.constant 0 : index
    %c0_129 = arith.constant 0 : index
    %461 = vector.load %arg11[%460, %c0_128, %c0_129] : memref<16x2x16xf32, #tpu.memory_space<vmem>>, vector<1x2x16xf32>
    %462 = vector.shape_cast %461 : vector<1x2x16xf32> to vector<2x16xf32>
    %463 = vector.shape_cast %455 : vector<2x16xf32> to vector<1x2x16xf32>
    tpu.vector_store %arg11[%460, %c0_128, %c0_129], %463 {strides = array<i32>} : memref<16x2x16xf32, #tpu.memory_space<vmem>>, vector<1x2x16xf32>,
    %c8_i32 = arith.constant 8 : i32
    %c15_i32_130 = arith.constant 15 : i32
    %464 = arith.subi %c15_i32_130, %c8_i32 : i32
    %465 = arith.index_cast %c8_i32 : i32 to index
    %c0_131 = arith.constant 0 : index
    %c0_132 = arith.constant 0 : index
    %466 = vector.load %arg0[%465, %c0_131, %c0_132] : memref<16x2x48xf32, #tpu.memory_space<vmem>>, vector<1x2x48xf32>
    %467 = vector.shape_cast %466 : vector<1x2x48xf32> to vector<2x48xf32>
    %468 = arith.index_cast %464 : i32 to index
    %c0_133 = arith.constant 0 : index
    %c0_134 = arith.constant 0 : index
    %469 = vector.load %arg1[%468, %c0_133, %c0_134] : memref<16x2x48xf32, #tpu.memory_space<vmem>>, vector<1x2x48xf32>
    %470 = vector.shape_cast %469 : vector<1x2x48xf32> to vector<2x48xf32>
    %cst_135 = arith.constant dense<0.000000e+00> : vector<2x48xf32>
    %471 = tpu.matmul %437, %0, %cst_135 {dimension_numbers = #tpu.dot_dimension_numbers<[1], [0], [0], [1], [0, 0, 1, 1], [], []>} : vector<2x16xf32>, vector<16x48xf32>, vector<2x48xf32> -> vector<2x48xf32>
    %472 = vector.broadcast %1 : vector<1x48xf32> to vector<2x48xf32>
    %473 = arith.addf %471, %472 : vector<2x48xf32>
    %cst_136 = arith.constant dense<0.000000e+00> : vector<2x48xf32>
    %474 = tpu.matmul %455, %2, %cst_136 {dimension_numbers = #tpu.dot_dimension_numbers<[1], [0], [0], [1], [0, 0, 1, 1], [], []>} : vector<2x16xf32>, vector<16x48xf32>, vector<2x48xf32> -> vector<2x48xf32>
    %475 = vector.broadcast %3 : vector<1x48xf32> to vector<2x48xf32>
    %476 = arith.addf %474, %475 : vector<2x48xf32>
    %477 = arith.addf %467, %473 : vector<2x48xf32>
    %478 = arith.negf %477 : vector<2x48xf32>
    %479 = math.exp %478 : vector<2x48xf32>
    %cst_137 = arith.constant 1.000000e+00 : f32
    %480 = vector.broadcast %cst_137 : f32 to vector<2x48xf32>
    %481 = arith.addf %480, %479 : vector<2x48xf32>
    %482 = arith.divf %480, %481 : vector<2x48xf32>
    %483 = vector.extract_strided_slice %482 {offsets = [0, 0], sizes = [2, 16], strides = [1, 1]} : vector<2x48xf32> to vector<2x16xf32>
    %484 = vector.extract_strided_slice %482 {offsets = [0, 16], sizes = [2, 16], strides = [1, 1]} : vector<2x48xf32> to vector<2x16xf32>
    %485 = vector.extract_strided_slice %467 {offsets = [0, 32], sizes = [2, 16], strides = [1, 1]} : vector<2x48xf32> to vector<2x16xf32>
    %486 = vector.extract_strided_slice %473 {offsets = [0, 32], sizes = [2, 16], strides = [1, 1]} : vector<2x48xf32> to vector<2x16xf32>
    %487 = arith.mulf %483, %486 : vector<2x16xf32>
    %488 = arith.addf %485, %487 : vector<2x16xf32>
    %489 = math.tanh %488 : vector<2x16xf32>
    %cst_138 = arith.constant 1.000000e+00 : f32
    %490 = vector.broadcast %cst_138 : f32 to vector<2x16xf32>
    %491 = arith.subf %490, %484 : vector<2x16xf32>
    %492 = arith.mulf %491, %489 : vector<2x16xf32>
    %493 = arith.mulf %484, %437 : vector<2x16xf32>
    %494 = arith.addf %492, %493 : vector<2x16xf32>
    %495 = arith.addf %470, %476 : vector<2x48xf32>
    %496 = arith.negf %495 : vector<2x48xf32>
    %497 = math.exp %496 : vector<2x48xf32>
    %cst_139 = arith.constant 1.000000e+00 : f32
    %498 = vector.broadcast %cst_139 : f32 to vector<2x48xf32>
    %499 = arith.addf %498, %497 : vector<2x48xf32>
    %500 = arith.divf %498, %499 : vector<2x48xf32>
    %501 = vector.extract_strided_slice %500 {offsets = [0, 0], sizes = [2, 16], strides = [1, 1]} : vector<2x48xf32> to vector<2x16xf32>
    %502 = vector.extract_strided_slice %500 {offsets = [0, 16], sizes = [2, 16], strides = [1, 1]} : vector<2x48xf32> to vector<2x16xf32>
    %503 = vector.extract_strided_slice %470 {offsets = [0, 32], sizes = [2, 16], strides = [1, 1]} : vector<2x48xf32> to vector<2x16xf32>
    %504 = vector.extract_strided_slice %476 {offsets = [0, 32], sizes = [2, 16], strides = [1, 1]} : vector<2x48xf32> to vector<2x16xf32>
    %505 = arith.mulf %501, %504 : vector<2x16xf32>
    %506 = arith.addf %503, %505 : vector<2x16xf32>
    %507 = math.tanh %506 : vector<2x16xf32>
    %cst_140 = arith.constant 1.000000e+00 : f32
    %508 = vector.broadcast %cst_140 : f32 to vector<2x16xf32>
    %509 = arith.subf %508, %502 : vector<2x16xf32>
    %510 = arith.mulf %509, %507 : vector<2x16xf32>
    %511 = arith.mulf %502, %455 : vector<2x16xf32>
    %512 = arith.addf %510, %511 : vector<2x16xf32>
    %513 = arith.index_cast %c8_i32 : i32 to index
    %c0_141 = arith.constant 0 : index
    %c0_142 = arith.constant 0 : index
    %514 = vector.load %arg10[%513, %c0_141, %c0_142] : memref<16x2x16xf32, #tpu.memory_space<vmem>>, vector<1x2x16xf32>
    %515 = vector.shape_cast %514 : vector<1x2x16xf32> to vector<2x16xf32>
    %516 = vector.shape_cast %494 : vector<2x16xf32> to vector<1x2x16xf32>
    tpu.vector_store %arg10[%513, %c0_141, %c0_142], %516 {strides = array<i32>} : memref<16x2x16xf32, #tpu.memory_space<vmem>>, vector<1x2x16xf32>,
    %517 = arith.index_cast %464 : i32 to index
    %c0_143 = arith.constant 0 : index
    %c0_144 = arith.constant 0 : index
    %518 = vector.load %arg11[%517, %c0_143, %c0_144] : memref<16x2x16xf32, #tpu.memory_space<vmem>>, vector<1x2x16xf32>
    %519 = vector.shape_cast %518 : vector<1x2x16xf32> to vector<2x16xf32>
    %520 = vector.shape_cast %512 : vector<2x16xf32> to vector<1x2x16xf32>
    tpu.vector_store %arg11[%517, %c0_143, %c0_144], %520 {strides = array<i32>} : memref<16x2x16xf32, #tpu.memory_space<vmem>>, vector<1x2x16xf32>,
    %c9_i32 = arith.constant 9 : i32
    %c15_i32_145 = arith.constant 15 : i32
    %521 = arith.subi %c15_i32_145, %c9_i32 : i32
    %522 = arith.index_cast %c9_i32 : i32 to index
    %c0_146 = arith.constant 0 : index
    %c0_147 = arith.constant 0 : index
    %523 = vector.load %arg0[%522, %c0_146, %c0_147] : memref<16x2x48xf32, #tpu.memory_space<vmem>>, vector<1x2x48xf32>
    %524 = vector.shape_cast %523 : vector<1x2x48xf32> to vector<2x48xf32>
    %525 = arith.index_cast %521 : i32 to index
    %c0_148 = arith.constant 0 : index
    %c0_149 = arith.constant 0 : index
    %526 = vector.load %arg1[%525, %c0_148, %c0_149] : memref<16x2x48xf32, #tpu.memory_space<vmem>>, vector<1x2x48xf32>
    %527 = vector.shape_cast %526 : vector<1x2x48xf32> to vector<2x48xf32>
    %cst_150 = arith.constant dense<0.000000e+00> : vector<2x48xf32>
    %528 = tpu.matmul %494, %0, %cst_150 {dimension_numbers = #tpu.dot_dimension_numbers<[1], [0], [0], [1], [0, 0, 1, 1], [], []>} : vector<2x16xf32>, vector<16x48xf32>, vector<2x48xf32> -> vector<2x48xf32>
    %529 = vector.broadcast %1 : vector<1x48xf32> to vector<2x48xf32>
    %530 = arith.addf %528, %529 : vector<2x48xf32>
    %cst_151 = arith.constant dense<0.000000e+00> : vector<2x48xf32>
    %531 = tpu.matmul %512, %2, %cst_151 {dimension_numbers = #tpu.dot_dimension_numbers<[1], [0], [0], [1], [0, 0, 1, 1], [], []>} : vector<2x16xf32>, vector<16x48xf32>, vector<2x48xf32> -> vector<2x48xf32>
    %532 = vector.broadcast %3 : vector<1x48xf32> to vector<2x48xf32>
    %533 = arith.addf %531, %532 : vector<2x48xf32>
    %534 = arith.addf %524, %530 : vector<2x48xf32>
    %535 = arith.negf %534 : vector<2x48xf32>
    %536 = math.exp %535 : vector<2x48xf32>
    %cst_152 = arith.constant 1.000000e+00 : f32
    %537 = vector.broadcast %cst_152 : f32 to vector<2x48xf32>
    %538 = arith.addf %537, %536 : vector<2x48xf32>
    %539 = arith.divf %537, %538 : vector<2x48xf32>
    %540 = vector.extract_strided_slice %539 {offsets = [0, 0], sizes = [2, 16], strides = [1, 1]} : vector<2x48xf32> to vector<2x16xf32>
    %541 = vector.extract_strided_slice %539 {offsets = [0, 16], sizes = [2, 16], strides = [1, 1]} : vector<2x48xf32> to vector<2x16xf32>
    %542 = vector.extract_strided_slice %524 {offsets = [0, 32], sizes = [2, 16], strides = [1, 1]} : vector<2x48xf32> to vector<2x16xf32>
    %543 = vector.extract_strided_slice %530 {offsets = [0, 32], sizes = [2, 16], strides = [1, 1]} : vector<2x48xf32> to vector<2x16xf32>
    %544 = arith.mulf %540, %543 : vector<2x16xf32>
    %545 = arith.addf %542, %544 : vector<2x16xf32>
    %546 = math.tanh %545 : vector<2x16xf32>
    %cst_153 = arith.constant 1.000000e+00 : f32
    %547 = vector.broadcast %cst_153 : f32 to vector<2x16xf32>
    %548 = arith.subf %547, %541 : vector<2x16xf32>
    %549 = arith.mulf %548, %546 : vector<2x16xf32>
    %550 = arith.mulf %541, %494 : vector<2x16xf32>
    %551 = arith.addf %549, %550 : vector<2x16xf32>
    %552 = arith.addf %527, %533 : vector<2x48xf32>
    %553 = arith.negf %552 : vector<2x48xf32>
    %554 = math.exp %553 : vector<2x48xf32>
    %cst_154 = arith.constant 1.000000e+00 : f32
    %555 = vector.broadcast %cst_154 : f32 to vector<2x48xf32>
    %556 = arith.addf %555, %554 : vector<2x48xf32>
    %557 = arith.divf %555, %556 : vector<2x48xf32>
    %558 = vector.extract_strided_slice %557 {offsets = [0, 0], sizes = [2, 16], strides = [1, 1]} : vector<2x48xf32> to vector<2x16xf32>
    %559 = vector.extract_strided_slice %557 {offsets = [0, 16], sizes = [2, 16], strides = [1, 1]} : vector<2x48xf32> to vector<2x16xf32>
    %560 = vector.extract_strided_slice %527 {offsets = [0, 32], sizes = [2, 16], strides = [1, 1]} : vector<2x48xf32> to vector<2x16xf32>
    %561 = vector.extract_strided_slice %533 {offsets = [0, 32], sizes = [2, 16], strides = [1, 1]} : vector<2x48xf32> to vector<2x16xf32>
    %562 = arith.mulf %558, %561 : vector<2x16xf32>
    %563 = arith.addf %560, %562 : vector<2x16xf32>
    %564 = math.tanh %563 : vector<2x16xf32>
    %cst_155 = arith.constant 1.000000e+00 : f32
    %565 = vector.broadcast %cst_155 : f32 to vector<2x16xf32>
    %566 = arith.subf %565, %559 : vector<2x16xf32>
    %567 = arith.mulf %566, %564 : vector<2x16xf32>
    %568 = arith.mulf %559, %512 : vector<2x16xf32>
    %569 = arith.addf %567, %568 : vector<2x16xf32>
    %570 = arith.index_cast %c9_i32 : i32 to index
    %c0_156 = arith.constant 0 : index
    %c0_157 = arith.constant 0 : index
    %571 = vector.load %arg10[%570, %c0_156, %c0_157] : memref<16x2x16xf32, #tpu.memory_space<vmem>>, vector<1x2x16xf32>
    %572 = vector.shape_cast %571 : vector<1x2x16xf32> to vector<2x16xf32>
    %573 = vector.shape_cast %551 : vector<2x16xf32> to vector<1x2x16xf32>
    tpu.vector_store %arg10[%570, %c0_156, %c0_157], %573 {strides = array<i32>} : memref<16x2x16xf32, #tpu.memory_space<vmem>>, vector<1x2x16xf32>,
    %574 = arith.index_cast %521 : i32 to index
    %c0_158 = arith.constant 0 : index
    %c0_159 = arith.constant 0 : index
    %575 = vector.load %arg11[%574, %c0_158, %c0_159] : memref<16x2x16xf32, #tpu.memory_space<vmem>>, vector<1x2x16xf32>
    %576 = vector.shape_cast %575 : vector<1x2x16xf32> to vector<2x16xf32>
    %577 = vector.shape_cast %569 : vector<2x16xf32> to vector<1x2x16xf32>
    tpu.vector_store %arg11[%574, %c0_158, %c0_159], %577 {strides = array<i32>} : memref<16x2x16xf32, #tpu.memory_space<vmem>>, vector<1x2x16xf32>,
    %c10_i32 = arith.constant 10 : i32
    %c15_i32_160 = arith.constant 15 : i32
    %578 = arith.subi %c15_i32_160, %c10_i32 : i32
    %579 = arith.index_cast %c10_i32 : i32 to index
    %c0_161 = arith.constant 0 : index
    %c0_162 = arith.constant 0 : index
    %580 = vector.load %arg0[%579, %c0_161, %c0_162] : memref<16x2x48xf32, #tpu.memory_space<vmem>>, vector<1x2x48xf32>
    %581 = vector.shape_cast %580 : vector<1x2x48xf32> to vector<2x48xf32>
    %582 = arith.index_cast %578 : i32 to index
    %c0_163 = arith.constant 0 : index
    %c0_164 = arith.constant 0 : index
    %583 = vector.load %arg1[%582, %c0_163, %c0_164] : memref<16x2x48xf32, #tpu.memory_space<vmem>>, vector<1x2x48xf32>
    %584 = vector.shape_cast %583 : vector<1x2x48xf32> to vector<2x48xf32>
    %cst_165 = arith.constant dense<0.000000e+00> : vector<2x48xf32>
    %585 = tpu.matmul %551, %0, %cst_165 {dimension_numbers = #tpu.dot_dimension_numbers<[1], [0], [0], [1], [0, 0, 1, 1], [], []>} : vector<2x16xf32>, vector<16x48xf32>, vector<2x48xf32> -> vector<2x48xf32>
    %586 = vector.broadcast %1 : vector<1x48xf32> to vector<2x48xf32>
    %587 = arith.addf %585, %586 : vector<2x48xf32>
    %cst_166 = arith.constant dense<0.000000e+00> : vector<2x48xf32>
    %588 = tpu.matmul %569, %2, %cst_166 {dimension_numbers = #tpu.dot_dimension_numbers<[1], [0], [0], [1], [0, 0, 1, 1], [], []>} : vector<2x16xf32>, vector<16x48xf32>, vector<2x48xf32> -> vector<2x48xf32>
    %589 = vector.broadcast %3 : vector<1x48xf32> to vector<2x48xf32>
    %590 = arith.addf %588, %589 : vector<2x48xf32>
    %591 = arith.addf %581, %587 : vector<2x48xf32>
    %592 = arith.negf %591 : vector<2x48xf32>
    %593 = math.exp %592 : vector<2x48xf32>
    %cst_167 = arith.constant 1.000000e+00 : f32
    %594 = vector.broadcast %cst_167 : f32 to vector<2x48xf32>
    %595 = arith.addf %594, %593 : vector<2x48xf32>
    %596 = arith.divf %594, %595 : vector<2x48xf32>
    %597 = vector.extract_strided_slice %596 {offsets = [0, 0], sizes = [2, 16], strides = [1, 1]} : vector<2x48xf32> to vector<2x16xf32>
    %598 = vector.extract_strided_slice %596 {offsets = [0, 16], sizes = [2, 16], strides = [1, 1]} : vector<2x48xf32> to vector<2x16xf32>
    %599 = vector.extract_strided_slice %581 {offsets = [0, 32], sizes = [2, 16], strides = [1, 1]} : vector<2x48xf32> to vector<2x16xf32>
    %600 = vector.extract_strided_slice %587 {offsets = [0, 32], sizes = [2, 16], strides = [1, 1]} : vector<2x48xf32> to vector<2x16xf32>
    %601 = arith.mulf %597, %600 : vector<2x16xf32>
    %602 = arith.addf %599, %601 : vector<2x16xf32>
    %603 = math.tanh %602 : vector<2x16xf32>
    %cst_168 = arith.constant 1.000000e+00 : f32
    %604 = vector.broadcast %cst_168 : f32 to vector<2x16xf32>
    %605 = arith.subf %604, %598 : vector<2x16xf32>
    %606 = arith.mulf %605, %603 : vector<2x16xf32>
    %607 = arith.mulf %598, %551 : vector<2x16xf32>
    %608 = arith.addf %606, %607 : vector<2x16xf32>
    %609 = arith.addf %584, %590 : vector<2x48xf32>
    %610 = arith.negf %609 : vector<2x48xf32>
    %611 = math.exp %610 : vector<2x48xf32>
    %cst_169 = arith.constant 1.000000e+00 : f32
    %612 = vector.broadcast %cst_169 : f32 to vector<2x48xf32>
    %613 = arith.addf %612, %611 : vector<2x48xf32>
    %614 = arith.divf %612, %613 : vector<2x48xf32>
    %615 = vector.extract_strided_slice %614 {offsets = [0, 0], sizes = [2, 16], strides = [1, 1]} : vector<2x48xf32> to vector<2x16xf32>
    %616 = vector.extract_strided_slice %614 {offsets = [0, 16], sizes = [2, 16], strides = [1, 1]} : vector<2x48xf32> to vector<2x16xf32>
    %617 = vector.extract_strided_slice %584 {offsets = [0, 32], sizes = [2, 16], strides = [1, 1]} : vector<2x48xf32> to vector<2x16xf32>
    %618 = vector.extract_strided_slice %590 {offsets = [0, 32], sizes = [2, 16], strides = [1, 1]} : vector<2x48xf32> to vector<2x16xf32>
    %619 = arith.mulf %615, %618 : vector<2x16xf32>
    %620 = arith.addf %617, %619 : vector<2x16xf32>
    %621 = math.tanh %620 : vector<2x16xf32>
    %cst_170 = arith.constant 1.000000e+00 : f32
    %622 = vector.broadcast %cst_170 : f32 to vector<2x16xf32>
    %623 = arith.subf %622, %616 : vector<2x16xf32>
    %624 = arith.mulf %623, %621 : vector<2x16xf32>
    %625 = arith.mulf %616, %569 : vector<2x16xf32>
    %626 = arith.addf %624, %625 : vector<2x16xf32>
    %627 = arith.index_cast %c10_i32 : i32 to index
    %c0_171 = arith.constant 0 : index
    %c0_172 = arith.constant 0 : index
    %628 = vector.load %arg10[%627, %c0_171, %c0_172] : memref<16x2x16xf32, #tpu.memory_space<vmem>>, vector<1x2x16xf32>
    %629 = vector.shape_cast %628 : vector<1x2x16xf32> to vector<2x16xf32>
    %630 = vector.shape_cast %608 : vector<2x16xf32> to vector<1x2x16xf32>
    tpu.vector_store %arg10[%627, %c0_171, %c0_172], %630 {strides = array<i32>} : memref<16x2x16xf32, #tpu.memory_space<vmem>>, vector<1x2x16xf32>,
    %631 = arith.index_cast %578 : i32 to index
    %c0_173 = arith.constant 0 : index
    %c0_174 = arith.constant 0 : index
    %632 = vector.load %arg11[%631, %c0_173, %c0_174] : memref<16x2x16xf32, #tpu.memory_space<vmem>>, vector<1x2x16xf32>
    %633 = vector.shape_cast %632 : vector<1x2x16xf32> to vector<2x16xf32>
    %634 = vector.shape_cast %626 : vector<2x16xf32> to vector<1x2x16xf32>
    tpu.vector_store %arg11[%631, %c0_173, %c0_174], %634 {strides = array<i32>} : memref<16x2x16xf32, #tpu.memory_space<vmem>>, vector<1x2x16xf32>,
    %c11_i32 = arith.constant 11 : i32
    %c15_i32_175 = arith.constant 15 : i32
    %635 = arith.subi %c15_i32_175, %c11_i32 : i32
    %636 = arith.index_cast %c11_i32 : i32 to index
    %c0_176 = arith.constant 0 : index
    %c0_177 = arith.constant 0 : index
    %637 = vector.load %arg0[%636, %c0_176, %c0_177] : memref<16x2x48xf32, #tpu.memory_space<vmem>>, vector<1x2x48xf32>
    %638 = vector.shape_cast %637 : vector<1x2x48xf32> to vector<2x48xf32>
    %639 = arith.index_cast %635 : i32 to index
    %c0_178 = arith.constant 0 : index
    %c0_179 = arith.constant 0 : index
    %640 = vector.load %arg1[%639, %c0_178, %c0_179] : memref<16x2x48xf32, #tpu.memory_space<vmem>>, vector<1x2x48xf32>
    %641 = vector.shape_cast %640 : vector<1x2x48xf32> to vector<2x48xf32>
    %cst_180 = arith.constant dense<0.000000e+00> : vector<2x48xf32>
    %642 = tpu.matmul %608, %0, %cst_180 {dimension_numbers = #tpu.dot_dimension_numbers<[1], [0], [0], [1], [0, 0, 1, 1], [], []>} : vector<2x16xf32>, vector<16x48xf32>, vector<2x48xf32> -> vector<2x48xf32>
    %643 = vector.broadcast %1 : vector<1x48xf32> to vector<2x48xf32>
    %644 = arith.addf %642, %643 : vector<2x48xf32>
    %cst_181 = arith.constant dense<0.000000e+00> : vector<2x48xf32>
    %645 = tpu.matmul %626, %2, %cst_181 {dimension_numbers = #tpu.dot_dimension_numbers<[1], [0], [0], [1], [0, 0, 1, 1], [], []>} : vector<2x16xf32>, vector<16x48xf32>, vector<2x48xf32> -> vector<2x48xf32>
    %646 = vector.broadcast %3 : vector<1x48xf32> to vector<2x48xf32>
    %647 = arith.addf %645, %646 : vector<2x48xf32>
    %648 = arith.addf %638, %644 : vector<2x48xf32>
    %649 = arith.negf %648 : vector<2x48xf32>
    %650 = math.exp %649 : vector<2x48xf32>
    %cst_182 = arith.constant 1.000000e+00 : f32
    %651 = vector.broadcast %cst_182 : f32 to vector<2x48xf32>
    %652 = arith.addf %651, %650 : vector<2x48xf32>
    %653 = arith.divf %651, %652 : vector<2x48xf32>
    %654 = vector.extract_strided_slice %653 {offsets = [0, 0], sizes = [2, 16], strides = [1, 1]} : vector<2x48xf32> to vector<2x16xf32>
    %655 = vector.extract_strided_slice %653 {offsets = [0, 16], sizes = [2, 16], strides = [1, 1]} : vector<2x48xf32> to vector<2x16xf32>
    %656 = vector.extract_strided_slice %638 {offsets = [0, 32], sizes = [2, 16], strides = [1, 1]} : vector<2x48xf32> to vector<2x16xf32>
    %657 = vector.extract_strided_slice %644 {offsets = [0, 32], sizes = [2, 16], strides = [1, 1]} : vector<2x48xf32> to vector<2x16xf32>
    %658 = arith.mulf %654, %657 : vector<2x16xf32>
    %659 = arith.addf %656, %658 : vector<2x16xf32>
    %660 = math.tanh %659 : vector<2x16xf32>
    %cst_183 = arith.constant 1.000000e+00 : f32
    %661 = vector.broadcast %cst_183 : f32 to vector<2x16xf32>
    %662 = arith.subf %661, %655 : vector<2x16xf32>
    %663 = arith.mulf %662, %660 : vector<2x16xf32>
    %664 = arith.mulf %655, %608 : vector<2x16xf32>
    %665 = arith.addf %663, %664 : vector<2x16xf32>
    %666 = arith.addf %641, %647 : vector<2x48xf32>
    %667 = arith.negf %666 : vector<2x48xf32>
    %668 = math.exp %667 : vector<2x48xf32>
    %cst_184 = arith.constant 1.000000e+00 : f32
    %669 = vector.broadcast %cst_184 : f32 to vector<2x48xf32>
    %670 = arith.addf %669, %668 : vector<2x48xf32>
    %671 = arith.divf %669, %670 : vector<2x48xf32>
    %672 = vector.extract_strided_slice %671 {offsets = [0, 0], sizes = [2, 16], strides = [1, 1]} : vector<2x48xf32> to vector<2x16xf32>
    %673 = vector.extract_strided_slice %671 {offsets = [0, 16], sizes = [2, 16], strides = [1, 1]} : vector<2x48xf32> to vector<2x16xf32>
    %674 = vector.extract_strided_slice %641 {offsets = [0, 32], sizes = [2, 16], strides = [1, 1]} : vector<2x48xf32> to vector<2x16xf32>
    %675 = vector.extract_strided_slice %647 {offsets = [0, 32], sizes = [2, 16], strides = [1, 1]} : vector<2x48xf32> to vector<2x16xf32>
    %676 = arith.mulf %672, %675 : vector<2x16xf32>
    %677 = arith.addf %674, %676 : vector<2x16xf32>
    %678 = math.tanh %677 : vector<2x16xf32>
    %cst_185 = arith.constant 1.000000e+00 : f32
    %679 = vector.broadcast %cst_185 : f32 to vector<2x16xf32>
    %680 = arith.subf %679, %673 : vector<2x16xf32>
    %681 = arith.mulf %680, %678 : vector<2x16xf32>
    %682 = arith.mulf %673, %626 : vector<2x16xf32>
    %683 = arith.addf %681, %682 : vector<2x16xf32>
    %684 = arith.index_cast %c11_i32 : i32 to index
    %c0_186 = arith.constant 0 : index
    %c0_187 = arith.constant 0 : index
    %685 = vector.load %arg10[%684, %c0_186, %c0_187] : memref<16x2x16xf32, #tpu.memory_space<vmem>>, vector<1x2x16xf32>
    %686 = vector.shape_cast %685 : vector<1x2x16xf32> to vector<2x16xf32>
    %687 = vector.shape_cast %665 : vector<2x16xf32> to vector<1x2x16xf32>
    tpu.vector_store %arg10[%684, %c0_186, %c0_187], %687 {strides = array<i32>} : memref<16x2x16xf32, #tpu.memory_space<vmem>>, vector<1x2x16xf32>,
    %688 = arith.index_cast %635 : i32 to index
    %c0_188 = arith.constant 0 : index
    %c0_189 = arith.constant 0 : index
    %689 = vector.load %arg11[%688, %c0_188, %c0_189] : memref<16x2x16xf32, #tpu.memory_space<vmem>>, vector<1x2x16xf32>
    %690 = vector.shape_cast %689 : vector<1x2x16xf32> to vector<2x16xf32>
    %691 = vector.shape_cast %683 : vector<2x16xf32> to vector<1x2x16xf32>
    tpu.vector_store %arg11[%688, %c0_188, %c0_189], %691 {strides = array<i32>} : memref<16x2x16xf32, #tpu.memory_space<vmem>>, vector<1x2x16xf32>,
    %c12_i32 = arith.constant 12 : i32
    %c15_i32_190 = arith.constant 15 : i32
    %692 = arith.subi %c15_i32_190, %c12_i32 : i32
    %693 = arith.index_cast %c12_i32 : i32 to index
    %c0_191 = arith.constant 0 : index
    %c0_192 = arith.constant 0 : index
    %694 = vector.load %arg0[%693, %c0_191, %c0_192] : memref<16x2x48xf32, #tpu.memory_space<vmem>>, vector<1x2x48xf32>
    %695 = vector.shape_cast %694 : vector<1x2x48xf32> to vector<2x48xf32>
    %696 = arith.index_cast %692 : i32 to index
    %c0_193 = arith.constant 0 : index
    %c0_194 = arith.constant 0 : index
    %697 = vector.load %arg1[%696, %c0_193, %c0_194] : memref<16x2x48xf32, #tpu.memory_space<vmem>>, vector<1x2x48xf32>
    %698 = vector.shape_cast %697 : vector<1x2x48xf32> to vector<2x48xf32>
    %cst_195 = arith.constant dense<0.000000e+00> : vector<2x48xf32>
    %699 = tpu.matmul %665, %0, %cst_195 {dimension_numbers = #tpu.dot_dimension_numbers<[1], [0], [0], [1], [0, 0, 1, 1], [], []>} : vector<2x16xf32>, vector<16x48xf32>, vector<2x48xf32> -> vector<2x48xf32>
    %700 = vector.broadcast %1 : vector<1x48xf32> to vector<2x48xf32>
    %701 = arith.addf %699, %700 : vector<2x48xf32>
    %cst_196 = arith.constant dense<0.000000e+00> : vector<2x48xf32>
    %702 = tpu.matmul %683, %2, %cst_196 {dimension_numbers = #tpu.dot_dimension_numbers<[1], [0], [0], [1], [0, 0, 1, 1], [], []>} : vector<2x16xf32>, vector<16x48xf32>, vector<2x48xf32> -> vector<2x48xf32>
    %703 = vector.broadcast %3 : vector<1x48xf32> to vector<2x48xf32>
    %704 = arith.addf %702, %703 : vector<2x48xf32>
    %705 = arith.addf %695, %701 : vector<2x48xf32>
    %706 = arith.negf %705 : vector<2x48xf32>
    %707 = math.exp %706 : vector<2x48xf32>
    %cst_197 = arith.constant 1.000000e+00 : f32
    %708 = vector.broadcast %cst_197 : f32 to vector<2x48xf32>
    %709 = arith.addf %708, %707 : vector<2x48xf32>
    %710 = arith.divf %708, %709 : vector<2x48xf32>
    %711 = vector.extract_strided_slice %710 {offsets = [0, 0], sizes = [2, 16], strides = [1, 1]} : vector<2x48xf32> to vector<2x16xf32>
    %712 = vector.extract_strided_slice %710 {offsets = [0, 16], sizes = [2, 16], strides = [1, 1]} : vector<2x48xf32> to vector<2x16xf32>
    %713 = vector.extract_strided_slice %695 {offsets = [0, 32], sizes = [2, 16], strides = [1, 1]} : vector<2x48xf32> to vector<2x16xf32>
    %714 = vector.extract_strided_slice %701 {offsets = [0, 32], sizes = [2, 16], strides = [1, 1]} : vector<2x48xf32> to vector<2x16xf32>
    %715 = arith.mulf %711, %714 : vector<2x16xf32>
    %716 = arith.addf %713, %715 : vector<2x16xf32>
    %717 = math.tanh %716 : vector<2x16xf32>
    %cst_198 = arith.constant 1.000000e+00 : f32
    %718 = vector.broadcast %cst_198 : f32 to vector<2x16xf32>
    %719 = arith.subf %718, %712 : vector<2x16xf32>
    %720 = arith.mulf %719, %717 : vector<2x16xf32>
    %721 = arith.mulf %712, %665 : vector<2x16xf32>
    %722 = arith.addf %720, %721 : vector<2x16xf32>
    %723 = arith.addf %698, %704 : vector<2x48xf32>
    %724 = arith.negf %723 : vector<2x48xf32>
    %725 = math.exp %724 : vector<2x48xf32>
    %cst_199 = arith.constant 1.000000e+00 : f32
    %726 = vector.broadcast %cst_199 : f32 to vector<2x48xf32>
    %727 = arith.addf %726, %725 : vector<2x48xf32>
    %728 = arith.divf %726, %727 : vector<2x48xf32>
    %729 = vector.extract_strided_slice %728 {offsets = [0, 0], sizes = [2, 16], strides = [1, 1]} : vector<2x48xf32> to vector<2x16xf32>
    %730 = vector.extract_strided_slice %728 {offsets = [0, 16], sizes = [2, 16], strides = [1, 1]} : vector<2x48xf32> to vector<2x16xf32>
    %731 = vector.extract_strided_slice %698 {offsets = [0, 32], sizes = [2, 16], strides = [1, 1]} : vector<2x48xf32> to vector<2x16xf32>
    %732 = vector.extract_strided_slice %704 {offsets = [0, 32], sizes = [2, 16], strides = [1, 1]} : vector<2x48xf32> to vector<2x16xf32>
    %733 = arith.mulf %729, %732 : vector<2x16xf32>
    %734 = arith.addf %731, %733 : vector<2x16xf32>
    %735 = math.tanh %734 : vector<2x16xf32>
    %cst_200 = arith.constant 1.000000e+00 : f32
    %736 = vector.broadcast %cst_200 : f32 to vector<2x16xf32>
    %737 = arith.subf %736, %730 : vector<2x16xf32>
    %738 = arith.mulf %737, %735 : vector<2x16xf32>
    %739 = arith.mulf %730, %683 : vector<2x16xf32>
    %740 = arith.addf %738, %739 : vector<2x16xf32>
    %741 = arith.index_cast %c12_i32 : i32 to index
    %c0_201 = arith.constant 0 : index
    %c0_202 = arith.constant 0 : index
    %742 = vector.load %arg10[%741, %c0_201, %c0_202] : memref<16x2x16xf32, #tpu.memory_space<vmem>>, vector<1x2x16xf32>
    %743 = vector.shape_cast %742 : vector<1x2x16xf32> to vector<2x16xf32>
    %744 = vector.shape_cast %722 : vector<2x16xf32> to vector<1x2x16xf32>
    tpu.vector_store %arg10[%741, %c0_201, %c0_202], %744 {strides = array<i32>} : memref<16x2x16xf32, #tpu.memory_space<vmem>>, vector<1x2x16xf32>,
    %745 = arith.index_cast %692 : i32 to index
    %c0_203 = arith.constant 0 : index
    %c0_204 = arith.constant 0 : index
    %746 = vector.load %arg11[%745, %c0_203, %c0_204] : memref<16x2x16xf32, #tpu.memory_space<vmem>>, vector<1x2x16xf32>
    %747 = vector.shape_cast %746 : vector<1x2x16xf32> to vector<2x16xf32>
    %748 = vector.shape_cast %740 : vector<2x16xf32> to vector<1x2x16xf32>
    tpu.vector_store %arg11[%745, %c0_203, %c0_204], %748 {strides = array<i32>} : memref<16x2x16xf32, #tpu.memory_space<vmem>>, vector<1x2x16xf32>,
    %c13_i32 = arith.constant 13 : i32
    %c15_i32_205 = arith.constant 15 : i32
    %749 = arith.subi %c15_i32_205, %c13_i32 : i32
    %750 = arith.index_cast %c13_i32 : i32 to index
    %c0_206 = arith.constant 0 : index
    %c0_207 = arith.constant 0 : index
    %751 = vector.load %arg0[%750, %c0_206, %c0_207] : memref<16x2x48xf32, #tpu.memory_space<vmem>>, vector<1x2x48xf32>
    %752 = vector.shape_cast %751 : vector<1x2x48xf32> to vector<2x48xf32>
    %753 = arith.index_cast %749 : i32 to index
    %c0_208 = arith.constant 0 : index
    %c0_209 = arith.constant 0 : index
    %754 = vector.load %arg1[%753, %c0_208, %c0_209] : memref<16x2x48xf32, #tpu.memory_space<vmem>>, vector<1x2x48xf32>
    %755 = vector.shape_cast %754 : vector<1x2x48xf32> to vector<2x48xf32>
    %cst_210 = arith.constant dense<0.000000e+00> : vector<2x48xf32>
    %756 = tpu.matmul %722, %0, %cst_210 {dimension_numbers = #tpu.dot_dimension_numbers<[1], [0], [0], [1], [0, 0, 1, 1], [], []>} : vector<2x16xf32>, vector<16x48xf32>, vector<2x48xf32> -> vector<2x48xf32>
    %757 = vector.broadcast %1 : vector<1x48xf32> to vector<2x48xf32>
    %758 = arith.addf %756, %757 : vector<2x48xf32>
    %cst_211 = arith.constant dense<0.000000e+00> : vector<2x48xf32>
    %759 = tpu.matmul %740, %2, %cst_211 {dimension_numbers = #tpu.dot_dimension_numbers<[1], [0], [0], [1], [0, 0, 1, 1], [], []>} : vector<2x16xf32>, vector<16x48xf32>, vector<2x48xf32> -> vector<2x48xf32>
    %760 = vector.broadcast %3 : vector<1x48xf32> to vector<2x48xf32>
    %761 = arith.addf %759, %760 : vector<2x48xf32>
    %762 = arith.addf %752, %758 : vector<2x48xf32>
    %763 = arith.negf %762 : vector<2x48xf32>
    %764 = math.exp %763 : vector<2x48xf32>
    %cst_212 = arith.constant 1.000000e+00 : f32
    %765 = vector.broadcast %cst_212 : f32 to vector<2x48xf32>
    %766 = arith.addf %765, %764 : vector<2x48xf32>
    %767 = arith.divf %765, %766 : vector<2x48xf32>
    %768 = vector.extract_strided_slice %767 {offsets = [0, 0], sizes = [2, 16], strides = [1, 1]} : vector<2x48xf32> to vector<2x16xf32>
    %769 = vector.extract_strided_slice %767 {offsets = [0, 16], sizes = [2, 16], strides = [1, 1]} : vector<2x48xf32> to vector<2x16xf32>
    %770 = vector.extract_strided_slice %752 {offsets = [0, 32], sizes = [2, 16], strides = [1, 1]} : vector<2x48xf32> to vector<2x16xf32>
    %771 = vector.extract_strided_slice %758 {offsets = [0, 32], sizes = [2, 16], strides = [1, 1]} : vector<2x48xf32> to vector<2x16xf32>
    %772 = arith.mulf %768, %771 : vector<2x16xf32>
    %773 = arith.addf %770, %772 : vector<2x16xf32>
    %774 = math.tanh %773 : vector<2x16xf32>
    %cst_213 = arith.constant 1.000000e+00 : f32
    %775 = vector.broadcast %cst_213 : f32 to vector<2x16xf32>
    %776 = arith.subf %775, %769 : vector<2x16xf32>
    %777 = arith.mulf %776, %774 : vector<2x16xf32>
    %778 = arith.mulf %769, %722 : vector<2x16xf32>
    %779 = arith.addf %777, %778 : vector<2x16xf32>
    %780 = arith.addf %755, %761 : vector<2x48xf32>
    %781 = arith.negf %780 : vector<2x48xf32>
    %782 = math.exp %781 : vector<2x48xf32>
    %cst_214 = arith.constant 1.000000e+00 : f32
    %783 = vector.broadcast %cst_214 : f32 to vector<2x48xf32>
    %784 = arith.addf %783, %782 : vector<2x48xf32>
    %785 = arith.divf %783, %784 : vector<2x48xf32>
    %786 = vector.extract_strided_slice %785 {offsets = [0, 0], sizes = [2, 16], strides = [1, 1]} : vector<2x48xf32> to vector<2x16xf32>
    %787 = vector.extract_strided_slice %785 {offsets = [0, 16], sizes = [2, 16], strides = [1, 1]} : vector<2x48xf32> to vector<2x16xf32>
    %788 = vector.extract_strided_slice %755 {offsets = [0, 32], sizes = [2, 16], strides = [1, 1]} : vector<2x48xf32> to vector<2x16xf32>
    %789 = vector.extract_strided_slice %761 {offsets = [0, 32], sizes = [2, 16], strides = [1, 1]} : vector<2x48xf32> to vector<2x16xf32>
    %790 = arith.mulf %786, %789 : vector<2x16xf32>
    %791 = arith.addf %788, %790 : vector<2x16xf32>
    %792 = math.tanh %791 : vector<2x16xf32>
    %cst_215 = arith.constant 1.000000e+00 : f32
    %793 = vector.broadcast %cst_215 : f32 to vector<2x16xf32>
    %794 = arith.subf %793, %787 : vector<2x16xf32>
    %795 = arith.mulf %794, %792 : vector<2x16xf32>
    %796 = arith.mulf %787, %740 : vector<2x16xf32>
    %797 = arith.addf %795, %796 : vector<2x16xf32>
    %798 = arith.index_cast %c13_i32 : i32 to index
    %c0_216 = arith.constant 0 : index
    %c0_217 = arith.constant 0 : index
    %799 = vector.load %arg10[%798, %c0_216, %c0_217] : memref<16x2x16xf32, #tpu.memory_space<vmem>>, vector<1x2x16xf32>
    %800 = vector.shape_cast %799 : vector<1x2x16xf32> to vector<2x16xf32>
    %801 = vector.shape_cast %779 : vector<2x16xf32> to vector<1x2x16xf32>
    tpu.vector_store %arg10[%798, %c0_216, %c0_217], %801 {strides = array<i32>} : memref<16x2x16xf32, #tpu.memory_space<vmem>>, vector<1x2x16xf32>,
    %802 = arith.index_cast %749 : i32 to index
    %c0_218 = arith.constant 0 : index
    %c0_219 = arith.constant 0 : index
    %803 = vector.load %arg11[%802, %c0_218, %c0_219] : memref<16x2x16xf32, #tpu.memory_space<vmem>>, vector<1x2x16xf32>
    %804 = vector.shape_cast %803 : vector<1x2x16xf32> to vector<2x16xf32>
    %805 = vector.shape_cast %797 : vector<2x16xf32> to vector<1x2x16xf32>
    tpu.vector_store %arg11[%802, %c0_218, %c0_219], %805 {strides = array<i32>} : memref<16x2x16xf32, #tpu.memory_space<vmem>>, vector<1x2x16xf32>,
    %c14_i32 = arith.constant 14 : i32
    %c15_i32_220 = arith.constant 15 : i32
    %806 = arith.subi %c15_i32_220, %c14_i32 : i32
    %807 = arith.index_cast %c14_i32 : i32 to index
    %c0_221 = arith.constant 0 : index
    %c0_222 = arith.constant 0 : index
    %808 = vector.load %arg0[%807, %c0_221, %c0_222] : memref<16x2x48xf32, #tpu.memory_space<vmem>>, vector<1x2x48xf32>
    %809 = vector.shape_cast %808 : vector<1x2x48xf32> to vector<2x48xf32>
    %810 = arith.index_cast %806 : i32 to index
    %c0_223 = arith.constant 0 : index
    %c0_224 = arith.constant 0 : index
    %811 = vector.load %arg1[%810, %c0_223, %c0_224] : memref<16x2x48xf32, #tpu.memory_space<vmem>>, vector<1x2x48xf32>
    %812 = vector.shape_cast %811 : vector<1x2x48xf32> to vector<2x48xf32>
    %cst_225 = arith.constant dense<0.000000e+00> : vector<2x48xf32>
    %813 = tpu.matmul %779, %0, %cst_225 {dimension_numbers = #tpu.dot_dimension_numbers<[1], [0], [0], [1], [0, 0, 1, 1], [], []>} : vector<2x16xf32>, vector<16x48xf32>, vector<2x48xf32> -> vector<2x48xf32>
    %814 = vector.broadcast %1 : vector<1x48xf32> to vector<2x48xf32>
    %815 = arith.addf %813, %814 : vector<2x48xf32>
    %cst_226 = arith.constant dense<0.000000e+00> : vector<2x48xf32>
    %816 = tpu.matmul %797, %2, %cst_226 {dimension_numbers = #tpu.dot_dimension_numbers<[1], [0], [0], [1], [0, 0, 1, 1], [], []>} : vector<2x16xf32>, vector<16x48xf32>, vector<2x48xf32> -> vector<2x48xf32>
    %817 = vector.broadcast %3 : vector<1x48xf32> to vector<2x48xf32>
    %818 = arith.addf %816, %817 : vector<2x48xf32>
    %819 = arith.addf %809, %815 : vector<2x48xf32>
    %820 = arith.negf %819 : vector<2x48xf32>
    %821 = math.exp %820 : vector<2x48xf32>
    %cst_227 = arith.constant 1.000000e+00 : f32
    %822 = vector.broadcast %cst_227 : f32 to vector<2x48xf32>
    %823 = arith.addf %822, %821 : vector<2x48xf32>
    %824 = arith.divf %822, %823 : vector<2x48xf32>
    %825 = vector.extract_strided_slice %824 {offsets = [0, 0], sizes = [2, 16], strides = [1, 1]} : vector<2x48xf32> to vector<2x16xf32>
    %826 = vector.extract_strided_slice %824 {offsets = [0, 16], sizes = [2, 16], strides = [1, 1]} : vector<2x48xf32> to vector<2x16xf32>
    %827 = vector.extract_strided_slice %809 {offsets = [0, 32], sizes = [2, 16], strides = [1, 1]} : vector<2x48xf32> to vector<2x16xf32>
    %828 = vector.extract_strided_slice %815 {offsets = [0, 32], sizes = [2, 16], strides = [1, 1]} : vector<2x48xf32> to vector<2x16xf32>
    %829 = arith.mulf %825, %828 : vector<2x16xf32>
    %830 = arith.addf %827, %829 : vector<2x16xf32>
    %831 = math.tanh %830 : vector<2x16xf32>
    %cst_228 = arith.constant 1.000000e+00 : f32
    %832 = vector.broadcast %cst_228 : f32 to vector<2x16xf32>
    %833 = arith.subf %832, %826 : vector<2x16xf32>
    %834 = arith.mulf %833, %831 : vector<2x16xf32>
    %835 = arith.mulf %826, %779 : vector<2x16xf32>
    %836 = arith.addf %834, %835 : vector<2x16xf32>
    %837 = arith.addf %812, %818 : vector<2x48xf32>
    %838 = arith.negf %837 : vector<2x48xf32>
    %839 = math.exp %838 : vector<2x48xf32>
    %cst_229 = arith.constant 1.000000e+00 : f32
    %840 = vector.broadcast %cst_229 : f32 to vector<2x48xf32>
    %841 = arith.addf %840, %839 : vector<2x48xf32>
    %842 = arith.divf %840, %841 : vector<2x48xf32>
    %843 = vector.extract_strided_slice %842 {offsets = [0, 0], sizes = [2, 16], strides = [1, 1]} : vector<2x48xf32> to vector<2x16xf32>
    %844 = vector.extract_strided_slice %842 {offsets = [0, 16], sizes = [2, 16], strides = [1, 1]} : vector<2x48xf32> to vector<2x16xf32>
    %845 = vector.extract_strided_slice %812 {offsets = [0, 32], sizes = [2, 16], strides = [1, 1]} : vector<2x48xf32> to vector<2x16xf32>
    %846 = vector.extract_strided_slice %818 {offsets = [0, 32], sizes = [2, 16], strides = [1, 1]} : vector<2x48xf32> to vector<2x16xf32>
    %847 = arith.mulf %843, %846 : vector<2x16xf32>
    %848 = arith.addf %845, %847 : vector<2x16xf32>
    %849 = math.tanh %848 : vector<2x16xf32>
    %cst_230 = arith.constant 1.000000e+00 : f32
    %850 = vector.broadcast %cst_230 : f32 to vector<2x16xf32>
    %851 = arith.subf %850, %844 : vector<2x16xf32>
    %852 = arith.mulf %851, %849 : vector<2x16xf32>
    %853 = arith.mulf %844, %797 : vector<2x16xf32>
    %854 = arith.addf %852, %853 : vector<2x16xf32>
    %855 = arith.index_cast %c14_i32 : i32 to index
    %c0_231 = arith.constant 0 : index
    %c0_232 = arith.constant 0 : index
    %856 = vector.load %arg10[%855, %c0_231, %c0_232] : memref<16x2x16xf32, #tpu.memory_space<vmem>>, vector<1x2x16xf32>
    %857 = vector.shape_cast %856 : vector<1x2x16xf32> to vector<2x16xf32>
    %858 = vector.shape_cast %836 : vector<2x16xf32> to vector<1x2x16xf32>
    tpu.vector_store %arg10[%855, %c0_231, %c0_232], %858 {strides = array<i32>} : memref<16x2x16xf32, #tpu.memory_space<vmem>>, vector<1x2x16xf32>,
    %859 = arith.index_cast %806 : i32 to index
    %c0_233 = arith.constant 0 : index
    %c0_234 = arith.constant 0 : index
    %860 = vector.load %arg11[%859, %c0_233, %c0_234] : memref<16x2x16xf32, #tpu.memory_space<vmem>>, vector<1x2x16xf32>
    %861 = vector.shape_cast %860 : vector<1x2x16xf32> to vector<2x16xf32>
    %862 = vector.shape_cast %854 : vector<2x16xf32> to vector<1x2x16xf32>
    tpu.vector_store %arg11[%859, %c0_233, %c0_234], %862 {strides = array<i32>} : memref<16x2x16xf32, #tpu.memory_space<vmem>>, vector<1x2x16xf32>,
    %c15_i32_235 = arith.constant 15 : i32
    %c15_i32_236 = arith.constant 15 : i32
    %863 = arith.subi %c15_i32_236, %c15_i32_235 : i32
    %864 = arith.index_cast %c15_i32_235 : i32 to index
    %c0_237 = arith.constant 0 : index
    %c0_238 = arith.constant 0 : index
    %865 = vector.load %arg0[%864, %c0_237, %c0_238] : memref<16x2x48xf32, #tpu.memory_space<vmem>>, vector<1x2x48xf32>
    %866 = vector.shape_cast %865 : vector<1x2x48xf32> to vector<2x48xf32>
    %867 = arith.index_cast %863 : i32 to index
    %c0_239 = arith.constant 0 : index
    %c0_240 = arith.constant 0 : index
    %868 = vector.load %arg1[%867, %c0_239, %c0_240] : memref<16x2x48xf32, #tpu.memory_space<vmem>>, vector<1x2x48xf32>
    %869 = vector.shape_cast %868 : vector<1x2x48xf32> to vector<2x48xf32>
    %cst_241 = arith.constant dense<0.000000e+00> : vector<2x48xf32>
    %870 = tpu.matmul %836, %0, %cst_241 {dimension_numbers = #tpu.dot_dimension_numbers<[1], [0], [0], [1], [0, 0, 1, 1], [], []>} : vector<2x16xf32>, vector<16x48xf32>, vector<2x48xf32> -> vector<2x48xf32>
    %871 = vector.broadcast %1 : vector<1x48xf32> to vector<2x48xf32>
    %872 = arith.addf %870, %871 : vector<2x48xf32>
    %cst_242 = arith.constant dense<0.000000e+00> : vector<2x48xf32>
    %873 = tpu.matmul %854, %2, %cst_242 {dimension_numbers = #tpu.dot_dimension_numbers<[1], [0], [0], [1], [0, 0, 1, 1], [], []>} : vector<2x16xf32>, vector<16x48xf32>, vector<2x48xf32> -> vector<2x48xf32>
    %874 = vector.broadcast %3 : vector<1x48xf32> to vector<2x48xf32>
    %875 = arith.addf %873, %874 : vector<2x48xf32>
    %876 = arith.addf %866, %872 : vector<2x48xf32>
    %877 = arith.negf %876 : vector<2x48xf32>
    %878 = math.exp %877 : vector<2x48xf32>
    %cst_243 = arith.constant 1.000000e+00 : f32
    %879 = vector.broadcast %cst_243 : f32 to vector<2x48xf32>
    %880 = arith.addf %879, %878 : vector<2x48xf32>
    %881 = arith.divf %879, %880 : vector<2x48xf32>
    %882 = vector.extract_strided_slice %881 {offsets = [0, 0], sizes = [2, 16], strides = [1, 1]} : vector<2x48xf32> to vector<2x16xf32>
    %883 = vector.extract_strided_slice %881 {offsets = [0, 16], sizes = [2, 16], strides = [1, 1]} : vector<2x48xf32> to vector<2x16xf32>
    %884 = vector.extract_strided_slice %866 {offsets = [0, 32], sizes = [2, 16], strides = [1, 1]} : vector<2x48xf32> to vector<2x16xf32>
    %885 = vector.extract_strided_slice %872 {offsets = [0, 32], sizes = [2, 16], strides = [1, 1]} : vector<2x48xf32> to vector<2x16xf32>
    %886 = arith.mulf %882, %885 : vector<2x16xf32>
    %887 = arith.addf %884, %886 : vector<2x16xf32>
    %888 = math.tanh %887 : vector<2x16xf32>
    %cst_244 = arith.constant 1.000000e+00 : f32
    %889 = vector.broadcast %cst_244 : f32 to vector<2x16xf32>
    %890 = arith.subf %889, %883 : vector<2x16xf32>
    %891 = arith.mulf %890, %888 : vector<2x16xf32>
    %892 = arith.mulf %883, %836 : vector<2x16xf32>
    %893 = arith.addf %891, %892 : vector<2x16xf32>
    %894 = arith.addf %869, %875 : vector<2x48xf32>
    %895 = arith.negf %894 : vector<2x48xf32>
    %896 = math.exp %895 : vector<2x48xf32>
    %cst_245 = arith.constant 1.000000e+00 : f32
    %897 = vector.broadcast %cst_245 : f32 to vector<2x48xf32>
    %898 = arith.addf %897, %896 : vector<2x48xf32>
    %899 = arith.divf %897, %898 : vector<2x48xf32>
    %900 = vector.extract_strided_slice %899 {offsets = [0, 0], sizes = [2, 16], strides = [1, 1]} : vector<2x48xf32> to vector<2x16xf32>
    %901 = vector.extract_strided_slice %899 {offsets = [0, 16], sizes = [2, 16], strides = [1, 1]} : vector<2x48xf32> to vector<2x16xf32>
    %902 = vector.extract_strided_slice %869 {offsets = [0, 32], sizes = [2, 16], strides = [1, 1]} : vector<2x48xf32> to vector<2x16xf32>
    %903 = vector.extract_strided_slice %875 {offsets = [0, 32], sizes = [2, 16], strides = [1, 1]} : vector<2x48xf32> to vector<2x16xf32>
    %904 = arith.mulf %900, %903 : vector<2x16xf32>
    %905 = arith.addf %902, %904 : vector<2x16xf32>
    %906 = math.tanh %905 : vector<2x16xf32>
    %cst_246 = arith.constant 1.000000e+00 : f32
    %907 = vector.broadcast %cst_246 : f32 to vector<2x16xf32>
    %908 = arith.subf %907, %901 : vector<2x16xf32>
    %909 = arith.mulf %908, %906 : vector<2x16xf32>
    %910 = arith.mulf %901, %854 : vector<2x16xf32>
    %911 = arith.addf %909, %910 : vector<2x16xf32>
    %912 = arith.index_cast %c15_i32_235 : i32 to index
    %c0_247 = arith.constant 0 : index
    %c0_248 = arith.constant 0 : index
    %913 = vector.load %arg10[%912, %c0_247, %c0_248] : memref<16x2x16xf32, #tpu.memory_space<vmem>>, vector<1x2x16xf32>
    %914 = vector.shape_cast %913 : vector<1x2x16xf32> to vector<2x16xf32>
    %915 = vector.shape_cast %893 : vector<2x16xf32> to vector<1x2x16xf32>
    tpu.vector_store %arg10[%912, %c0_247, %c0_248], %915 {strides = array<i32>} : memref<16x2x16xf32, #tpu.memory_space<vmem>>, vector<1x2x16xf32>,
    %916 = arith.index_cast %863 : i32 to index
    %c0_249 = arith.constant 0 : index
    %c0_250 = arith.constant 0 : index
    %917 = vector.load %arg11[%916, %c0_249, %c0_250] : memref<16x2x16xf32, #tpu.memory_space<vmem>>, vector<1x2x16xf32>
    %918 = vector.shape_cast %917 : vector<1x2x16xf32> to vector<2x16xf32>
    %919 = vector.shape_cast %911 : vector<2x16xf32> to vector<1x2x16xf32>
    tpu.vector_store %arg11[%916, %c0_249, %c0_250], %919 {strides = array<i32>} : memref<16x2x16xf32, #tpu.memory_space<vmem>>, vector<1x2x16xf32>,
    %c16_i32 = arith.constant 16 : i32
    %c0_251 = arith.constant 0 : index
    %c0_252 = arith.constant 0 : index
    %c0_253 = arith.constant 0 : index
    %920 = vector.load %arg10[%c0_251, %c0_252, %c0_253] : memref<16x2x16xf32, #tpu.memory_space<vmem>>, vector<16x2x16xf32>
    %c0_254 = arith.constant 0 : index
    %c0_255 = arith.constant 0 : index
    %c0_256 = arith.constant 0 : index
    %921 = vector.load %arg11[%c0_254, %c0_255, %c0_256] : memref<16x2x16xf32, #tpu.memory_space<vmem>>, vector<16x2x16xf32>
    %922 = tpu.concatenate %920, %921 in 2 : vector<16x2x16xf32>, vector<16x2x16xf32> -> vector<16x2x32xf32>
    %cst_257 = arith.constant dense<0.000000e+00> : vector<32xf32>
    %923 = vector.multi_reduction <add>, %922, %cst_257 [0, 1] : vector<16x2x32xf32> to vector<32xf32>
    %924 = vector.shape_cast %923 : vector<32xf32> to vector<1x1x32xf32>
    %cst_258 = arith.constant 3.200000e+01 : f32
    %925 = vector.broadcast %cst_258 : f32 to vector<1x1x32xf32>
    %926 = arith.divf %924, %925 : vector<1x1x32xf32>
    %927 = arith.mulf %922, %922 : vector<16x2x32xf32>
    %cst_259 = arith.constant dense<0.000000e+00> : vector<32xf32>
    %928 = vector.multi_reduction <add>, %927, %cst_259 [0, 1] : vector<16x2x32xf32> to vector<32xf32>
    %929 = vector.shape_cast %928 : vector<32xf32> to vector<1x1x32xf32>
    %cst_260 = arith.constant 3.200000e+01 : f32
    %930 = vector.broadcast %cst_260 : f32 to vector<1x1x32xf32>
    %931 = arith.divf %929, %930 : vector<1x1x32xf32>
    %c0_261 = arith.constant 0 : index
    %c0_262 = arith.constant 0 : index
    %932 = vector.load %arg6[%c0_261, %c0_262] : memref<1x32xf32, #tpu.memory_space<vmem>>, vector<1x32xf32>
    %933 = arith.mulf %926, %926 : vector<1x1x32xf32>
    %934 = arith.subf %931, %933 : vector<1x1x32xf32>
    %cst_263 = arith.constant 9.99999974E-6 : f32
    %935 = vector.broadcast %cst_263 : f32 to vector<1x1x32xf32>
    %936 = arith.addf %934, %935 : vector<1x1x32xf32>
    %937 = math.rsqrt %936 : vector<1x1x32xf32>
    %938 = vector.shape_cast %932 : vector<1x32xf32> to vector<1x1x32xf32>
    %939 = arith.mulf %938, %937 : vector<1x1x32xf32>
    %c0_264 = arith.constant 0 : index
    %c0_265 = arith.constant 0 : index
    %940 = vector.load %arg7[%c0_264, %c0_265] : memref<1x32xf32, #tpu.memory_space<vmem>>, vector<1x32xf32>
    %941 = arith.mulf %926, %939 : vector<1x1x32xf32>
    %942 = vector.shape_cast %940 : vector<1x32xf32> to vector<1x1x32xf32>
    %943 = arith.subf %942, %941 : vector<1x1x32xf32>
    %944 = vector.broadcast %939 : vector<1x1x32xf32> to vector<16x2x32xf32>
    %945 = arith.mulf %922, %944 : vector<16x2x32xf32>
    %946 = vector.broadcast %943 : vector<1x1x32xf32> to vector<16x2x32xf32>
    %947 = arith.addf %945, %946 : vector<16x2x32xf32>
    %948 = math.tanh %947 : vector<16x2x32xf32>
    %c0_266 = arith.constant 0 : index
    %c0_267 = arith.constant 0 : index
    %c0_268 = arith.constant 0 : index
    %949 = vector.load %arg9[%c0_266, %c0_267, %c0_268] : memref<16x2x32xf32, #tpu.memory_space<vmem>>, vector<16x2x32xf32>
    tpu.vector_store %arg9[%c0_266, %c0_267, %c0_268], %948 {strides = array<i32>} : memref<16x2x32xf32, #tpu.memory_space<vmem>>, vector<16x2x32xf32>,
    return
  }
}

</mosaic_0001>

<bundles_post_ra>
// kernel: _basic_block_forward.2
= control target key start
LH: loop header
LB: loop body
LE: loop exit
PB: predicated region body
PF: predicated region fallthrough
CT: control target
= control target key end

     0   :  { %vm48_vm0 = vcmask 261120   ;;  %vm38_vm1 = vcmask 253952   ;;  %v841_v2 = vmov 0.0   ;;  %s842_s21 = smov 64   ;;  %s843_s22 = smov 32   ;;  %vm101_vm2 = vcmask 523264   ;;  %s1127_s0 = inlined_call_operand.vmem [shape: f32[2,16,32], index: 0, kind: input, shape index: {}]   ;;  %s1128_s1 = inlined_call_operand.vmem [shape: f32[96,32], index: 1, kind: input, shape index: {}]   ;;  %s1129_s5 = inlined_call_operand.vmem [shape: f32[96,32], index: 5, kind: input, shape index: {}]   ;;  %s1130_s2 = inlined_call_operand.vmem [shape: f32[1,32], index: 2, kind: input, shape index: {}]   ;;  %s1131_s3 = inlined_call_operand.vmem [shape: f32[1,32], index: 3, kind: input, shape index: {}]   ;;  %s1132_s4 = inlined_call_operand.vmem [shape: f32[1,32], index: 4, kind: input, shape index: {}]   ;;  %s1133_s9 = inlined_call_operand.vmem [shape: f32[32,96], index: 9, kind: input, shape index: {}]   ;;  %s1134_s6 = inlined_call_operand.vmem [shape: f32[1,32], index: 6, kind: input, shape index: {}]   ;;  %s1135_s7 = inlined_call_operand.vmem [shape: f32[1,32], index: 7, kind: input, shape index: {}]   ;;  %s1136_s8 = inlined_call_operand.vmem [shape: f32[1,32], index: 8, kind: input, shape index: {}]   ;;  %s1137_s10 = inlined_call_operand.vmem [shape: f32[1,96], index: 10, kind: input, shape index: {}]   ;;  %s1138_s11 = inlined_call_operand.vmem [shape: f32[2,16,96], index: 11, kind: output, shape index: {}]  }
   0x1   :  { %v907_v0 = vld [vmem:[%s1127_s0] sm:$0xff]  ;;  %v912_v1 = vld [vmem:[%s1127_s0 + $0x8] sm:$0xff]  ;;  %41 = vst.msk [vmem:[#allocation2 + $0x11] sm:$0x1] %vm38_vm1, %v841_v2  ;;  %39 = vst.msk [vmem:[#allocation2] sm:$0x1] %vm38_vm1, %v841_v2 }
   0x2   :  { %40 = vst.msk [vmem:[#allocation2 + $0x18] sm:$0x1] %vm38_vm1, %v841_v2  ;;  %42 = vst.msk [vmem:[#allocation2 + $0x29] sm:$0x1] %vm38_vm1, %v841_v2  ;;  %v917_v3 = vld [vmem:[%s1127_s0 + $0x18] sm:$0xff]  ;;  %v928_v4 = vld [vmem:[%s1127_s0 + $0x10] sm:$0xff] }
   0x3   :  { %49 = vst.msk [vmem:[#allocation2 + $0x1] sm:$0xff] %vm48_vm0, %v907_v0  ;;  %50 = vst.msk [vmem:[#allocation2 + $0x9] sm:$0xff] %vm48_vm0, %v912_v1  ;;  %v106_v5 = vld [vmem:[%s1128_s1] sm:$0xff]  ;;  %v107_v6 = vld [vmem:[%s1128_s1 + $0x8] sm:$0xff]  ;;  %vm124_vm3 = vcmask 785408  }
   0x4   :  { %52 = vst.msk [vmem:[#allocation2 + $0x21] sm:$0xff] %vm48_vm0, %v917_v3  ;;  %51 = vst.msk [vmem:[#allocation2 + $0x19] sm:$0xff] %vm48_vm0, %v928_v4  ;;  %v774_v7 = vpack.c.bf16 %v107_v6, %v106_v5  ;;  %v108_v8 = vld [vmem:[%s1128_s1 + $0x10] sm:$0xff]  ;;  %v109_v9 = vld [vmem:[%s1128_s1 + $0x18] sm:$0xff] }
   0x5   :  { %v778_v10 = vpack.c.bf16 %v109_v9, %v108_v8  ;;  %v110_v11 = vld [vmem:[%s1128_s1 + $0x20] sm:$0xff]  ;;  %v111_v12 = vld [vmem:[%s1128_s1 + $0x28] sm:$0xff]  ;;  %v112_v14 = vld [vmem:[%s1128_s1 + $0x30] sm:$0xff] }
   0x6   :  { %775 = vmatprep.subr.bf16.mxu0 %v774_v7  ;;  %v782_v13 = vpack.c.bf16 %v111_v12, %v110_v11  ;;  %v113_v17 = vld [vmem:[%s1128_s1 + $0x38] sm:$0xff]  ;;  %v114_v21 = vld [vmem:[%s1128_s1 + $0x40] sm:$0xff]  ;;  %v115_v22 = vld [vmem:[%s1128_s1 + $0x48] sm:$0xff] }
   0x7   :  { %777 = vmatpush3.bf16.msra.mxu0 %v774_v7  ;;  %v786_v20 = vpack.c.bf16 %v113_v17, %v112_v14  ;;  %v790_v25 = vpack.c.bf16 %v115_v22, %v114_v21  ;;  %v116_v26 = vld [vmem:[%s1128_s1 + $0x50] sm:$0xff]  ;;  %v117_v27 = vld [vmem:[%s1128_s1 + $0x58] sm:$0xff]  ;;  %v345_v51 = vld [vmem:[%s1129_s5] sm:$0xff] }
   0x8   :  { %779 = vmatprep.subr.bf16.mxu0 %v778_v10  ;;  %v794_v30 = vpack.c.bf16 %v117_v27, %v116_v26  ;;  %v346_v52 = vld [vmem:[%s1129_s5 + $0x8] sm:$0xff]  ;;  %v347_v53 = vld [vmem:[%s1129_s5 + $0x10] sm:$0xff]  ;;  %v348_v55 = vld [vmem:[%s1129_s5 + $0x18] sm:$0xff] }
   0x9   :  { %v798_v54 = vpack.c.bf16 %v346_v52, %v345_v51  ;;  %v802_v56 = vpack.c.bf16 %v348_v55, %v347_v53  ;;  %v349_v57 = vld [vmem:[%s1129_s5 + $0x20] sm:$0xff]  ;;  %v350_v58 = vld [vmem:[%s1129_s5 + $0x28] sm:$0xff]  ;;  %v351_v60 = vld [vmem:[%s1129_s5 + $0x30] sm:$0xff] }
   0xa   :  { %v61_v15 = vld [vmem:[#allocation2 + $0x2] sm:$0xff]  ;;  %v62_v18 = vld [vmem:[#allocation2 + $0xa] sm:$0xff]  ;;  %v806_v59 = vpack.c.bf16 %v350_v58, %v349_v57  ;;  %v352_v61 = vld [vmem:[%s1129_s5 + $0x38] sm:$0xff] }
   0xb   :  { %v57_v16 = vld [vmem:[#allocation2 + $0x1] sm:$0xff]  ;;  %85 = vrot.lane.b32.xlu1 %v61_v15, %s842_s21  ;;  %v58_v19 = vld [vmem:[#allocation2 + $0x9] sm:$0xff]  ;;  %781 = vmatpush3.bf16.msra.mxu0 %v778_v10  ;;  %v59_v24 = vld [vmem:[#allocation2 + $0x19] sm:$0xff]  ;;  %v810_v62 = vpack.c.bf16 %v352_v61, %v351_v60 }
   0xc   :  { %69 = vrot.lane.b32.xlu0 %v57_v16, %s843_s22  ;;  %783 = vmatprep.subr.bf16.mxu0 %v782_v13  ;;  %v60_v23 = vld [vmem:[#allocation2 + $0x21] sm:$0xff]  ;;  %v55_v44 = vld [vmem:[#allocation2 + $0x18] sm:$0xff]  ;;  %v645_v6 = vld [vmem:[%s1130_s2] ss:$0 sm:$0xff] }
   0xd   :  { %v64_v28 = vld [vmem:[#allocation2 + $0x22] sm:$0xff]  ;;  %v63_v29 = vld [vmem:[#allocation2 + $0x1a] sm:$0xff]  ;;  %799 = vmatprep.subr.bf16.mxu1 %v798_v54 }
   0xe   :  { %v53_v31 = vld [vmem:[#allocation2] sm:$0xff]  ;;  %v54_v36 = vld [vmem:[#allocation2 + $0x8] sm:$0xff]  ;;  %801 = vmatpush3.bf16.msra.mxu1 %v798_v54 }
   0xf   :  { %87 = vrot.lane.b32.xlu1 %v62_v18, %s842_s21  ;;  %785 = vmatpush3.bf16.msra.mxu0 %v782_v13  ;;  %v56_v43 = vld [vmem:[#allocation2 + $0x20] sm:$0xff]  ;;  %v354_v2 = vld [vmem:[%s1129_s5 + $0x48] sm:$0xff] }
  0x10   :  { %71 = vrot.lane.b32.xlu0 %v58_v19, %s843_s22  ;;  %787 = vmatprep.subr.bf16.mxu0 %v786_v20  ;;  %v353_v63 = vld [vmem:[%s1129_s5 + $0x40] sm:$0xff] }
  0x11   :  { %803 = vmatprep.subr.bf16.mxu1 %v802_v56  ;;  %v814_v5 = vpack.c.bf16 %v354_v2, %v353_v63  ;;  %v222_v52 = vld [vmem:[%s1131_s3] sm:$0x1] }
  0x12   :  { %805 = vmatpush3.bf16.msra.mxu1 %v802_v56  ;;  %v223_v56 = vld [vmem:[%s1132_s4] sm:$0x1] }
  0x13   :  { %75 = vrot.lane.b32.xlu1 %v60_v23, %s843_s22  ;;  %789 = vmatpush3.bf16.msra.mxu0 %v786_v20 }
  0x14   :  { %73 = vrot.lane.b32.xlu0 %v59_v24, %s843_s22  ;;  %791 = vmatprep.subr.bf16.mxu0 %v790_v25 }
  0x15   :  { %807 = vmatprep.subr.bf16.mxu1 %v806_v59 }
  0x16   :  { %809 = vmatpush3.bf16.msra.mxu1 %v806_v59 }
  0x17   :  { %91 = vrot.lane.b32.xlu1 %v64_v28, %s842_s21  ;;  %793 = vmatpush3.bf16.msra.mxu0 %v790_v25 }
  0x18   :  { %89 = vrot.lane.b32.xlu0 %v63_v29, %s842_s21  ;;  %795 = vmatprep.subr.bf16.mxu0 %v794_v30 }
  0x19   :  { %811 = vmatprep.subr.bf16.mxu1 %v810_v62 }
  0x1a   :  { %813 = vmatpush3.bf16.msra.mxu1 %v810_v62 }
  0x1b   :  { %797 = vmatpush3.bf16.msra.mxu0 %v794_v30  ;;  %815 = vmatprep.subr.bf16.mxu1 %v814_v5 }
  0x1e   :  { %817 = vmatpush3.bf16.msra.mxu1 %v814_v5  ;;  %v355_v5 = vld [vmem:[%s1129_s5 + $0x50] sm:$0xff] }
  0x7d   :  { %v86_v32 = vpop.permute.xlu1 %85 }
  0x7e   :  { %v70_v33 = vpop.permute.xlu0 %69 }
  0x7f   :  { %v97_v34 = vsel %vm48_vm0, %v53_v31, %v70_v33 }
  0x80   :  { %v102_v35 = vsel %vm101_vm2, %v97_v34, %v86_v32 }
  0x81   :  { %724 = vmatprep.mubr.msk.f32.mxu0 %vm124_vm3, %v102_v35  ;;  %v88_v37 = vpop.permute.xlu1 %87 }
  0x82   :  { %v72_v38 = vpop.permute.xlu0 %71 }
  0x83   :  { %v98_v39 = vsel %vm48_vm0, %v54_v36, %v72_v38 }
  0x84   :  { %v103_v40 = vsel %vm101_vm2, %v98_v39, %v88_v37 }
  0x85   :  { %725 = vmatmul.mubr.msk.f32.vlgmr.msra.gmra.mrb[0].mxu0 %vm124_vm3, %v103_v40  ;;  %v76_v41 = vpop.permute.xlu1 %75 }
  0x86   :  { %v74_v42 = vpop.permute.xlu0 %73  ;;  %v100_v45 = vsel %vm48_vm0, %v56_v43, %v76_v41 }
  0x87   :  { %v99_v46 = vsel %vm48_vm0, %v55_v44, %v74_v42 }
  0x89   :  { %v92_v47 = vpop.permute.xlu1 %91 }
  0x8a   :  { %v90_v48 = vpop.permute.xlu0 %89  ;;  %v105_v49 = vsel %vm101_vm2, %v100_v45, %v92_v47 }
  0x8b   :  { %v104_v50 = vsel %vm101_vm2, %v99_v46, %v90_v48 }
  0x8c   :  { %727 = vmatprep.mubr.msk.f32.mxu0 %vm124_vm3, %v104_v50  ;;  %v265_v50 = vlaneseq }
  0x8d   :  { %728 = vmatmul.mubr.msk.f32.gmra.mrb[2].mxu0 %vm124_vm3, %v105_v49 }
  0x8e   :  { %v266_v51 = vshrl.u32 %v265_v50, 7  ;;  %v650_v50 = vld [vmem:[%s1134_s6] ss:$0 sm:$0xff] }
  0x90   :  { %v1032_v53 = vsub.s32 0, %v266_v51 }
 0x158   :  { %v726_v7 = vpop.f32.mrb[0].mxu0 }
 0x159   :  { %v209_v8 = vadd.f32 %v726_v7, %v645_v6  ;;  %v203_v9 = vpop.f32.mrb[1].mxu0 }
 0x15a   :  { %v204_v10 = vadd.f32 %v645_v6, %v203_v9 }
 0x15b   :  { %v225_v11 = vsel %vm48_vm0, %v209_v8, 0.0  ;;  %v240_v12 = vmul.f32 %v209_v8, %v209_v8 }
 0x15c   :  { %v224_v13 = vsel %vm48_vm0, %v204_v10, 0.0  ;;  %v239_v14 = vmul.f32 %v204_v10, %v204_v10 }
 0x15d   :  { %v244_v15 = vsel %vm48_vm0, %v240_v12, 0.0  ;;  %v226_v16 = vadd.f32 %v225_v11, %v224_v13 }
 0x15e   :  { %v243_v17 = vsel %vm48_vm0, %v239_v14, 0.0 }
 0x15f   :  { %v245_v18 = vadd.f32 %v244_v15, %v243_v17 }
 0x160   :  { %v729_v19 = vpop.f32.mrb[2].mxu0 }
 0x161   :  { %v219_v20 = vadd.f32 %v729_v19, %v645_v6  ;;  %v213_v21 = vpop.f32.mrb[3].mxu0 }
 0x162   :  { %v214_v22 = vadd.f32 %v645_v6, %v213_v21  ;;  %v356_v6 = vld [vmem:[%s1129_s5 + $0x58] sm:$0xff] }
 0x163   :  { %v242_v23 = vmul.f32 %v219_v20, %v219_v20  ;;  %v229_v27 = vsel %vm48_vm0, %v219_v20, 0.0  ;;  %v818_v13 = vpack.c.bf16 %v356_v6, %v355_v5 }
 0x164   :  { %v227_v24 = vsel %vm48_vm0, %v214_v22, 0.0  ;;  %v241_v25 = vmul.f32 %v214_v22, %v214_v22 }
 0x165   :  { %v228_v26 = vadd.f32 %v227_v24, %v226_v16  ;;  %v248_v31 = vsel %vm48_vm0, %v242_v23, 0.0  ;;  %819 = vmatprep.subr.bf16.mxu1 %v818_v13 }
 0x166   :  { %v246_v28 = vsel %vm48_vm0, %v241_v25, 0.0  ;;  %821 = vmatpush3.bf16.msra.mxu1 %v818_v13 }
 0x167   :  { %v230_v29 = vadd.f32 %v229_v27, %v228_v26  ;;  %v247_v30 = vadd.f32 %v246_v28, %v245_v18 }
 0x169   :  { %v231_v32 = vrot.slane %v230_v29, 4  ;;  %v249_v33 = vadd.f32 %v248_v31, %v247_v30 }
 0x16b   :  { %v232_v34 = vadd.f32 %v231_v32, %v230_v29  ;;  %v250_v35 = vrot.slane %v249_v33, 4 }
 0x16d   :  { %v233_v36 = vrot.slane %v232_v34, 2  ;;  %v251_v37 = vadd.f32 %v250_v35, %v249_v33 }
 0x16f   :  { %v234_v38 = vadd.f32 %v233_v36, %v232_v34  ;;  %v252_v39 = vrot.slane %v251_v37, 2 }
 0x171   :  { %v235_v40 = vrot.slane %v234_v38, 1  ;;  %v253_v41 = vadd.f32 %v252_v39, %v251_v37 }
 0x173   :  { %v236_v42 = vadd.f32 %v235_v40, %v234_v38  ;;  %v254_v43 = vrot.slane %v253_v41, 1 }
 0x175   :  { %v238_v44 = vmul.f32 0.03125, %v236_v42  ;;  %v255_v45 = vadd.f32 %v254_v43, %v253_v41 }
 0x177   :  { %v256_v46 = vmul.f32 0.03125, %v255_v45  ;;  %v257_v47 = vmul.f32 %v238_v44, %v238_v44  ;;  %v530_v45 = vld [vmem:[%s1133_s9 + $0x8] sm:$0xff] }
 0x179   :  { %v258_v48 = vsub.f32 %v256_v46, %v257_v47  ;;  %v531_v47 = vld [vmem:[%s1133_s9 + $0x10] sm:$0xff] }
 0x17b   :  { %v259_v49 = vadd.f32 1e-05, %v258_v48  ;;  %v532_v48 = vld [vmem:[%s1133_s9 + $0x18] sm:$0xff] }
 0x17d   :  { %837 = vrsqrt.f32 %v259_v49  ;;  %v826_v49 = vpack.c.bf16 %v532_v48, %v531_v47 }
 0x187   :  { %v838_v54 = vpop.eup %837 }
 0x188   :  { %v261_v55 = vmul.f32 %v838_v54, %v222_v52 }
 0x18a   :  { %v262_v57 = vmul.f32 %v261_v55, %v238_v44  ;;  %v268_v58 = vrot.slane %v261_v55, %v1032_v53  ;;  %v529_v44 = vld [vmem:[%s1133_s9] sm:$0xff] }
 0x18b   :  { %v822_v46 = vpack.c.bf16 %v530_v45, %v529_v44 }
 0x18c   :  { %v263_v59 = vsub.f32 %v223_v56, %v262_v57  ;;  %v270_v60 = vmul.f32 %v268_v58, %v204_v10  ;;  %v271_v61 = vmul.f32 %v268_v58, %v209_v8  ;;  %v272_v62 = vmul.f32 %v268_v58, %v214_v22 }
 0x18d   :  { %v273_v63 = vmul.f32 %v268_v58, %v219_v20  ;;  %823 = vmatprep.subr.bf16.mxu0 %v822_v46  ;;  %830 = vmatprep.subr.bf16.mxu1 %v822_v46 }
 0x18e   :  { %v278_v2 = vrot.slane %v263_v59, %v1032_v53  ;;  %825 = vmatpush3.bf16.msra.mxu0 %v822_v46 }
 0x18f   :  { %827 = vmatprep.subr.bf16.mxu0 %v826_v49 }
 0x190   :  { %v280_v7 = vadd.f32 %v278_v2, %v270_v60  ;;  %v281_v9 = vadd.f32 %v278_v2, %v271_v61  ;;  %v282_v11 = vadd.f32 %v278_v2, %v272_v62  ;;  %v283_v12 = vadd.f32 %v278_v2, %v273_v63 }
 0x192   :  { %v284_v14 = vmax.f32 %v280_v7, 0.0  ;;  %v285_v10 = vmax.f32 %v281_v9, 0.0  ;;  %v286_v8 = vmax.f32 %v282_v11, 0.0  ;;  %v287_v15 = vmax.f32 %v283_v12, 0.0  ;;  %829 = vmatpush3.bf16.msra.mxu0 %v826_v49 }
 0x194   :  { %291 = vst.msk [vmem:[#allocation2 + $0x19] sm:$0xff] %vm48_vm0, %v286_v8  ;;  %289 = vst.msk [vmem:[#allocation2 + $0x1] sm:$0xff] %vm48_vm0, %v284_v14 }
 0x195   :  { %290 = vst.msk [vmem:[#allocation2 + $0x9] sm:$0xff] %vm48_vm0, %v285_v10  ;;  %292 = vst.msk [vmem:[#allocation2 + $0x21] sm:$0xff] %vm48_vm0, %v287_v15 }
 0x19b   :  { %v297_v17 = vld [vmem:[#allocation2 + $0x1] sm:$0xff]  ;;  %v299_v21 = vld [vmem:[#allocation2 + $0x19] sm:$0xff] }
 0x19c   :  { %v298_v16 = vld [vmem:[#allocation2 + $0x9] sm:$0xff]  ;;  %309 = vrot.lane.b32.xlu0 %v297_v17, %s843_s22  ;;  %v300_v20 = vld [vmem:[#allocation2 + $0x21] sm:$0xff]  ;;  %v295_v37 = vld [vmem:[#allocation2 + $0x18] sm:$0xff] }
 0x19d   :  { %311 = vrot.lane.b32.xlu1 %v298_v16, %s843_s22  ;;  %v302_v18 = vld [vmem:[#allocation2 + $0xa] sm:$0xff]  ;;  %v301_v19 = vld [vmem:[#allocation2 + $0x2] sm:$0xff]  ;;  %v303_v23 = vld [vmem:[#allocation2 + $0x1a] sm:$0xff] }
 0x19e   :  { %v304_v22 = vld [vmem:[#allocation2 + $0x22] sm:$0xff] }
 0x19f   :  { %v294_v26 = vld [vmem:[#allocation2 + $0x8] sm:$0xff]  ;;  %v293_v27 = vld [vmem:[#allocation2] sm:$0xff] }
 0x1a0   :  { %325 = vrot.lane.b32.xlu0 %v301_v19, %s842_s21  ;;  %v296_v36 = vld [vmem:[#allocation2 + $0x20] sm:$0xff] }
 0x1a1   :  { %327 = vrot.lane.b32.xlu1 %v302_v18, %s842_s21 }
 0x1a4   :  { %313 = vrot.lane.b32.xlu0 %v299_v21, %s843_s22 }
 0x1a5   :  { %315 = vrot.lane.b32.xlu1 %v300_v20, %s843_s22 }
 0x1a8   :  { %329 = vrot.lane.b32.xlu0 %v303_v23, %s842_s21 }
 0x1a9   :  { %331 = vrot.lane.b32.xlu1 %v304_v22, %s842_s21 }
 0x20e   :  { %v310_v25 = vpop.permute.xlu0 %309 }
 0x20f   :  { %v312_v24 = vpop.permute.xlu1 %311  ;;  %v337_v29 = vsel %vm48_vm0, %v293_v27, %v310_v25 }
 0x210   :  { %v338_v28 = vsel %vm48_vm0, %v294_v26, %v312_v24 }
 0x212   :  { %v326_v31 = vpop.permute.xlu0 %325 }
 0x213   :  { %v328_v30 = vpop.permute.xlu1 %327  ;;  %v341_v33 = vsel %vm101_vm2, %v337_v29, %v326_v31 }
 0x214   :  { %v342_v32 = vsel %vm101_vm2, %v338_v28, %v328_v30  ;;  %754 = vmatprep.mubr.msk.f32.mxu1 %vm124_vm3, %v341_v33 }
 0x215   :  { %755 = vmatmul.mubr.msk.f32.vlgmr.msra.gmra.mrb[0].mxu1 %vm124_vm3, %v342_v32 }
 0x216   :  { %v314_v35 = vpop.permute.xlu0 %313  ;;  %832 = vmatpush3.bf16.msra.mxu1 %v822_v46 }
 0x217   :  { %v316_v34 = vpop.permute.xlu1 %315  ;;  %v339_v39 = vsel %vm48_vm0, %v295_v37, %v314_v35  ;;  %831 = vmatprep.subr.bf16.mxu1 %v826_v49  ;;  %v460_v35 = vld [vmem:[%s1135_s7] sm:$0x1] }
 0x218   :  { %v340_v38 = vsel %vm48_vm0, %v296_v36, %v316_v34 }
 0x21a   :  { %v330_v41 = vpop.permute.xlu0 %329  ;;  %833 = vmatpush3.bf16.msra.mxu1 %v826_v49 }
 0x21b   :  { %v332_v40 = vpop.permute.xlu1 %331  ;;  %v343_v43 = vsel %vm101_vm2, %v339_v39, %v330_v41 }
 0x21c   :  { %v344_v42 = vsel %vm101_vm2, %v340_v38, %v332_v40  ;;  %757 = vmatprep.mubr.msk.f32.mxu1 %vm124_vm3, %v343_v43  ;;  %v461_v38 = vld [vmem:[%s1136_s8] sm:$0x1] }
 0x21d   :  { %758 = vmatmul.mubr.msk.f32.gmra.mrb[2].mxu1 %vm124_vm3, %v344_v42 }
 0x2e8   :  { %v756_v51 = vpop.f32.mrb[0].mxu1 }
 0x2e9   :  { %v447_v52 = vadd.f32 %v756_v51, %v650_v50  ;;  %v441_v54 = vpop.f32.mrb[1].mxu1 }
 0x2ea   :  { %v442_v55 = vadd.f32 %v650_v50, %v441_v54 }
 0x2eb   :  { %v463_v56 = vsel %vm48_vm0, %v447_v52, 0.0  ;;  %v477_v57 = vmul.f32 %v447_v52, %v447_v52 }
 0x2ec   :  { %v462_v58 = vsel %vm48_vm0, %v442_v55, 0.0  ;;  %v476_v59 = vmul.f32 %v442_v55, %v442_v55 }
 0x2ed   :  { %v481_v60 = vsel %vm48_vm0, %v477_v57, 0.0  ;;  %v464_v61 = vadd.f32 %v463_v56, %v462_v58 }
 0x2ee   :  { %v480_v62 = vsel %vm48_vm0, %v476_v59, 0.0 }
 0x2ef   :  { %v482_v63 = vadd.f32 %v481_v60, %v480_v62 }
 0x2f0   :  { %v759_v2 = vpop.f32.mrb[2].mxu1 }
 0x2f1   :  { %v457_v5 = vadd.f32 %v759_v2, %v650_v50  ;;  %v451_v6 = vpop.f32.mrb[3].mxu1 }
 0x2f2   :  { %v452_v7 = vadd.f32 %v650_v50, %v451_v6 }
 0x2f3   :  { %v479_v9 = vmul.f32 %v457_v5, %v457_v5  ;;  %v467_v14 = vsel %vm48_vm0, %v457_v5, 0.0 }
 0x2f4   :  { %v465_v11 = vsel %vm48_vm0, %v452_v7, 0.0  ;;  %v478_v12 = vmul.f32 %v452_v7, %v452_v7 }
 0x2f5   :  { %v466_v13 = vadd.f32 %v465_v11, %v464_v61  ;;  %v485_v16 = vsel %vm48_vm0, %v479_v9, 0.0 }
 0x2f6   :  { %v483_v10 = vsel %vm48_vm0, %v478_v12, 0.0 }
 0x2f7   :  { %v468_v8 = vadd.f32 %v467_v14, %v466_v13  ;;  %v484_v15 = vadd.f32 %v483_v10, %v482_v63 }
 0x2f9   :  { %v469_v17 = vrot.slane %v468_v8, 4  ;;  %v486_v18 = vadd.f32 %v485_v16, %v484_v15 }
 0x2fb   :  { %v470_v19 = vadd.f32 %v469_v17, %v468_v8  ;;  %v487_v20 = vrot.slane %v486_v18, 4 }
 0x2fd   :  { %v471_v21 = vrot.slane %v470_v19, 2  ;;  %v488_v22 = vadd.f32 %v487_v20, %v486_v18 }
 0x2ff   :  { %v472_v23 = vadd.f32 %v471_v21, %v470_v19  ;;  %v489_v24 = vrot.slane %v488_v22, 2 }
 0x301   :  { %v473_v25 = vrot.slane %v472_v23, 1  ;;  %v490_v26 = vadd.f32 %v489_v24, %v488_v22 }
 0x303   :  { %v474_v27 = vadd.f32 %v473_v25, %v472_v23  ;;  %v491_v28 = vrot.slane %v490_v26, 1 }
 0x305   :  { %v475_v29 = vmul.f32 0.03125, %v474_v27  ;;  %v492_v30 = vadd.f32 %v491_v28, %v490_v26 }
 0x307   :  { %v493_v31 = vmul.f32 0.03125, %v492_v30  ;;  %v494_v32 = vmul.f32 %v475_v29, %v475_v29 }
 0x309   :  { %v495_v33 = vsub.f32 %v493_v31, %v494_v32 }
 0x30b   :  { %v496_v34 = vadd.f32 1e-05, %v495_v33 }
 0x30d   :  { %839 = vrsqrt.f32 %v496_v34 }
 0x317   :  { %v840_v36 = vpop.eup %839 }
 0x318   :  { %v498_v37 = vmul.f32 %v840_v36, %v460_v35 }
 0x31a   :  { %v499_v39 = vmul.f32 %v498_v37, %v475_v29  ;;  %v505_v40 = vrot.slane %v498_v37, %v1032_v53 }
 0x31c   :  { %v500_v41 = vsub.f32 %v461_v38, %v499_v39  ;;  %v508_v42 = vmul.f32 %v505_v40, %v447_v52  ;;  %v509_v43 = vmul.f32 %v505_v40, %v452_v7  ;;  %v510_v44 = vmul.f32 %v505_v40, %v457_v5 }
 0x31d   :  { %v507_v45 = vmul.f32 %v505_v40, %v442_v55 }
 0x31e   :  { %v515_v46 = vrot.slane %v500_v41, %v1032_v53 }
 0x320   :  { %v519_v47 = vadd.f32 %v515_v46, %v509_v43  ;;  %v517_v48 = vadd.f32 %v515_v46, %v507_v45  ;;  %v518_v49 = vadd.f32 %v515_v46, %v508_v42  ;;  %v520_v50 = vadd.f32 %v515_v46, %v510_v44 }
 0x322   :  { %v521_v51 = vadd.f32 %v517_v48, %v907_v0  ;;  %v523_v54 = vadd.f32 %v519_v47, %v928_v4  ;;  %v522_v56 = vadd.f32 %v518_v49, %v912_v1  ;;  %v524_v57 = vadd.f32 %v520_v50, %v917_v3  ;;  %v655_v0 = vld [vmem:[%s1137_s10] ss:$0 sm:$0xff] }
 0x324   :  { %v525_v58 = vmax.f32 %v521_v51, 0.0  ;;  %v527_v59 = vmax.f32 %v523_v54, 0.0  ;;  %v526_v52 = vmax.f32 %v522_v56, 0.0  ;;  %v528_v60 = vmax.f32 %v524_v57, 0.0 }
 0x326   :  { %768 = vmatprep.mubr.msk.f32.mxu0 %vm48_vm0, %v525_v58  ;;  %771 = vmatprep.mubr.msk.f32.mxu1 %vm48_vm0, %v527_v59 }
 0x327   :  { %769 = vmatmul.mubr.msk.f32.vlgmr.msra.gmra.mrb[4].mxu0 %vm48_vm0, %v526_v52  ;;  %772 = vmatmul.mubr.msk.f32.vlgmr.msra.gmra.mrb[4].mxu1 %vm48_vm0, %v528_v60 }
 0x3fa   :  { %v770_v4 = vpop.f32.mrb[4].mxu0  ;;  %v773_v1 = vpop.f32.mrb[4].mxu1 }
 0x3fb   :  { %v624_v53 = vadd.f32 %v770_v4, %v655_v0  ;;  %v634_v3 = vadd.f32 %v773_v1, %v655_v0  ;;  %v618_v55 = vpop.f32.mrb[5].mxu0  ;;  %v628_v61 = vpop.f32.mrb[5].mxu1 }
 0x3fc   :  { %v619_v62 = vadd.f32 %v655_v0, %v618_v55  ;;  %v629_v63 = vadd.f32 %v655_v0, %v628_v61 }
 0x3fd   :  { %638 = vst.msk [vmem:[%s1138_s11 + $0x8] sm:$0xff] %vm124_vm3, %v624_v53  ;;  %640 = vst.msk [vmem:[%s1138_s11 + $0x18] sm:$0xff] %vm124_vm3, %v634_v3 }
 0x3fe   :  { %637 = vst.msk [vmem:[%s1138_s11] sm:$0xff] %vm124_vm3, %v619_v62  ;;  %639 = vst.msk [vmem:[%s1138_s11 + $0x10] sm:$0xff] %vm124_vm3, %v629_v63 }

// kernel: _basic_block_forward.3
= control target key start
LH: loop header
LB: loop body
LE: loop exit
PB: predicated region body
PF: predicated region fallthrough
CT: control target
= control target key end

     0   :  { %v4494_v0 = vmov 0.0|0.0   ;;  %vm4495_vm0 = vmmov 0   ;;  %v4496_v3 = vmov 0.0   ;;  %vm50_vm1 = vcmask 130048   ;;  %s4497_s22 = smov 96   ;;  %s4498_s25 = smov 32   ;;  %s5293_s4 = inlined_call_operand.vmem [shape: f32[16,48], index: 4, kind: input, shape index: {}]   ;;  %s5294_s2 = inlined_call_operand.vmem [shape: f32[16,48], index: 2, kind: input, shape index: {}]   ;;  %s5295_s8 = inlined_call_operand.vmem [shape: f32[2,2,16], index: 8, kind: input, shape index: {}]   ;;  %s5296_s5 = inlined_call_operand.vmem [shape: f32[1,48], index: 5, kind: input, shape index: {}]   ;;  %s5297_s3 = inlined_call_operand.vmem [shape: f32[1,48], index: 3, kind: input, shape index: {}]   ;;  %s5298_s1 = inlined_call_operand.vmem [shape: f32[16,2,48], index: 1, kind: input, shape index: {}]   ;;  %s5299_s0 = inlined_call_operand.vmem [shape: f32[16,2,48], index: 0, kind: input, shape index: {}]   ;;  %s5300_s6 = inlined_call_operand.vmem [shape: f32[1,32], index: 6, kind: input, shape index: {}]   ;;  %s5301_s7 = inlined_call_operand.vmem [shape: f32[1,32], index: 7, kind: input, shape index: {}]   ;;  %s5302_s9 = inlined_call_operand.vmem [shape: f32[16,2,32], index: 9, kind: output, shape index: {}]  }
   0x1   :  { %4166 = vmatprep.subr.bf16.mxu1 %v4494_v0  ;;  %v35_v1 = vld [vmem:[%s5293_s4] sm:$0xff]  ;;  %v36_v2 = vld [vmem:[%s5293_s4 + $0x8] sm:$0xff]  ;;  %3950 = vmatprep.mubr.msk.f32.mxu1 %vm4495_vm0, %v4496_v3  ;;  %v3747_v18 = vld [vmem:[%s5298_s1 + $0x1e] sm:$0x3]  ;;  %s4499_s26 = smov 16   ;;  %s4500_s29 = smov 112  }
   0x2   :  { %v4560_v4 = vpack.c.bf16 %v36_v2, %v35_v1  ;;  %4163 = vmatprep.subr.bf16.mxu0 %v4494_v0  ;;  %v32_v5 = vld [vmem:[%s5294_s2] sm:$0xff]  ;;  %v33_v6 = vld [vmem:[%s5294_s2 + $0x8] sm:$0xff]  ;;  %3943 = vmatprep.mubr.msk.f32.mxu0 %vm4495_vm0, %v4496_v3  ;;  %vm265_vm2 = vcmask 123904   ;;  %v3755_v57 = vld [vmem:[%s5298_s1 + $0x1c] sm:$0x3]  ;;  %vm3563_vm3 = vcmask 254976  }
   0x3   :  { %v4571_v7 = vpack.c.bf16 %v33_v6, %v32_v5  ;;  %v3746_v8 = vld [vmem:[%s5295_s8 + $0x2] sm:$0x3]  ;;  %v4581_v9 = vld [vmem:[%s5295_s8] sm:$0x3] }
   0x4   :  { %4168 = vmatpush3.bf16.msra.mxu1 %v4560_v4  ;;  %v4599_v10 = vld [vmem:[%s5296_s5] ss:$0 sm:$0xff] }
   0x5   :  { %4165 = vmatpush3.bf16.msra.mxu0 %v4571_v7  ;;  %4172 = vmatprep.subr.bf16.mxu1 %v4494_v0  ;;  %v4604_v11 = vld [vmem:[%s5297_s3] ss:$0 sm:$0xff] }
   0x6   :  { %4169 = vmatprep.subr.bf16.mxu0 %v4494_v0  ;;  %v41_v26 = vld [vmem:[%s5299_s0] sm:$0x3] }
   0x7   :  { %3951 = vmatmul.mubr.msk.f32.vlgmr.msra.gmra.mrb[0].mxu1 %vm50_vm1, %v3746_v8 }
   0x8   :  { %3944 = vmatmul.mubr.msk.f32.vlgmr.msra.gmra.mrb[0].mxu0 %vm50_vm1, %v4581_v9  ;;  %4174 = vmatpush3.bf16.msra.mxu1 %v4560_v4 }
   0x9   :  { %3964 = vmatprep.mubr.msk.f32.mxu1 %vm4495_vm0, %v4496_v3  ;;  %4171 = vmatpush3.bf16.msra.mxu0 %v4571_v7 }
   0xa   :  { %3957 = vmatprep.mubr.msk.f32.mxu0 %vm4495_vm0, %v4496_v3  ;;  %4178 = vmatprep.subr.bf16.mxu1 %v4494_v0 }
   0xb   :  { %4175 = vmatprep.subr.bf16.mxu0 %v4494_v0 }
  0xda   :  { %v199_v12 = vpop.f32.mrb[0].mxu1 }
  0xdb   :  { %v200_v13 = vadd.f32 %v4599_v10, %v199_v12  ;;  %v3952_v14 = vpop.f32.mrb[1].mxu1  ;;  %v120_v15 = vpop.f32.mrb[0].mxu0 }
  0xdc   :  { %v121_v16 = vadd.f32 %v4604_v11, %v120_v15  ;;  %v3945_v17 = vpop.f32.mrb[1].mxu0 }
  0xdd   :  { %240 = vrot.lane.b32.xlu0 %v200_v13, %s4497_s22  ;;  %v232_v19 = vadd.f32 %v3747_v18, %v200_v13 }
  0xde   :  { %211 = vrot.lane.b32.xlu1 %v121_v16, %s4497_s22  ;;  %v203_v27 = vadd.f32 %v121_v16, %v41_v26 }
  0xdf   :  { %v3753_v20 = vmul.f32 -1.442695, %v232_v19 }
  0xe0   :  { %v3752_v28 = vmul.f32 -1.442695, %v203_v27 }
  0xe1   :  { %4266 = vpow2.f32 %v3753_v20 }
  0xeb   :  { %v4267_v21 = vpop.eup %4266 }
  0xec   :  { %v236_v22 = vadd.f32 1.0, %v4267_v21 }
  0xee   :  { %4268 = vrcp.f32 %v236_v22 }
  0xef   :  { %4270 = vpow2.f32 %v3752_v28 }
  0xf8   :  { %v4269_v23 = vpop.eup %4268 }
  0xf9   :  { %v4271_v29 = vpop.eup %4270  ;;  %v250_v38 = vsub.f32 1.0, %v4269_v23 }
  0xfa   :  { %v207_v30 = vadd.f32 1.0, %v4271_v29 }
  0xfc   :  { %4272 = vrcp.f32 %v207_v30 }
 0x106   :  { %v4273_v33 = vpop.eup %4272 }
 0x107   :  { %v221_v48 = vsub.f32 1.0, %v4273_v33 }
 0x14f   :  { %v241_v24 = vpop.permute.xlu0 %240 }
 0x150   :  { %v243_v25 = vmul.f32 %v4269_v23, %v241_v24  ;;  %v212_v35 = vpop.permute.xlu1 %211 }
 0x151   :  { %v214_v36 = vmul.f32 %v4273_v33, %v212_v35 }
 0x152   :  { %245 = vrot.lane.b32.xlu0 %v243_v25, %s4498_s25 }
 0x156   :  { %256 = vrot.lane.b32.xlu0 %v3746_v8, %s4499_s26  ;;  %v3754_v8 = vld [vmem:[%s5299_s0 + $0x2] sm:$0x3] }
 0x1c4   :  { %v246_v31 = vpop.permute.xlu0 %245 }
 0x1c5   :  { %v248_v32 = vadd.f32 %v3747_v18, %v246_v31 }
 0x1c7   :  { %4274 = vtanh.f32 %v248_v32 }
 0x1c8   :  { %v257_v37 = vpop.permute.xlu0 %256 }
 0x1c9   :  { %v259_v40 = vmul.f32 %v4269_v23, %v257_v37 }
 0x1d1   :  { %v4275_v34 = vpop.eup %4274 }
 0x1d2   :  { %252 = vrot.lane.b32.xlu1 %v4275_v34, %s4500_s29 }
 0x1d6   :  { %216 = vrot.lane.b32.xlu1 %v214_v36, %s4498_s25 }
 0x244   :  { %v253_v39 = vpop.permute.xlu1 %252 }
 0x245   :  { %v255_v41 = vmul.f32 %v253_v39, %v250_v38  ;;  %v3761_v39 = vld [vmem:[%s5298_s1 + $0x1a] sm:$0x3] }
 0x247   :  { %v4620_v42 = vadd.f32 %v259_v40, %v255_v41 }
 0x248   :  { %v217_v43 = vpop.permute.xlu1 %216 }
 0x249   :  { %v219_v44 = vadd.f32 %v217_v43, %v41_v26  ;;  %268 = vrot.lane.b32.xlu0 %v4620_v42, %s4500_s29 }
 0x24b   :  { %4276 = vtanh.f32 %v219_v44 }
 0x24d   :  { %227 = vrot.lane.b32.xlu0 %v4581_v9, %s4499_s26 }
 0x255   :  { %v4277_v45 = vpop.eup %4276 }
 0x256   :  { %223 = vrot.lane.b32.xlu1 %v4277_v45, %s4500_s29 }
 0x2bb   :  { %v269_v46 = vpop.permute.xlu0 %268 }
 0x2bc   :  { %272 = vst.msk [vmem:[#allocation3 + $0x1e] sm:$0x3] %vm265_vm2, %v269_v46  ;;  %3965 = vmatmul.mubr.msk.f32.vlgmr.msra.gmra.mrb[2].mxu1 %vm50_vm1, %v269_v46 }
 0x2bd   :  { %4180 = vmatpush3.bf16.msra.mxu1 %v4560_v4  ;;  %3978 = vmatprep.mubr.msk.f32.mxu1 %vm4495_vm0, %v4496_v3 }
 0x2be   :  { %4184 = vmatprep.subr.bf16.mxu1 %v4494_v0 }
 0x2bf   :  { %v228_v47 = vpop.permute.xlu0 %227 }
 0x2c0   :  { %v230_v50 = vmul.f32 %v4273_v33, %v228_v47 }
 0x2c8   :  { %v224_v49 = vpop.permute.xlu1 %223 }
 0x2c9   :  { %v226_v51 = vmul.f32 %v224_v49, %v221_v48 }
 0x2cb   :  { %v231_v52 = vadd.f32 %v230_v50, %v226_v51  ;;  %v3760_v50 = vld [vmem:[%s5299_s0 + $0x4] sm:$0x3] }
 0x2cd   :  { %262 = vrot.lane.b32.xlu1 %v231_v52, %s4500_s29 }
 0x33f   :  { %v263_v53 = vpop.permute.xlu1 %262 }
 0x340   :  { %266 = vst.msk [vmem:[#allocation2] sm:$0x3] %vm265_vm2, %v263_v53  ;;  %3958 = vmatmul.mubr.msk.f32.vlgmr.msra.gmra.mrb[2].mxu0 %vm50_vm1, %v263_v53 }
 0x341   :  { %4177 = vmatpush3.bf16.msra.mxu0 %v4571_v7  ;;  %3971 = vmatprep.mubr.msk.f32.mxu0 %vm4495_vm0, %v4496_v3 }
 0x342   :  { %4181 = vmatprep.subr.bf16.mxu0 %v4494_v0 }
 0x38f   :  { %v417_v54 = vpop.f32.mrb[2].mxu1 }
 0x390   :  { %v418_v55 = vadd.f32 %v4599_v10, %v417_v54  ;;  %v3966_v56 = vpop.f32.mrb[3].mxu1 }
 0x392   :  { %455 = vrot.lane.b32.xlu0 %v418_v55, %s4497_s22  ;;  %v447_v58 = vadd.f32 %v3755_v57, %v418_v55 }
 0x394   :  { %v3759_v59 = vmul.f32 -1.442695, %v447_v58 }
 0x396   :  { %4278 = vpow2.f32 %v3759_v59 }
 0x3a0   :  { %v4279_v60 = vpop.eup %4278 }
 0x3a1   :  { %v451_v61 = vadd.f32 1.0, %v4279_v60 }
 0x3a3   :  { %4280 = vrcp.f32 %v451_v61 }
 0x3ad   :  { %v4281_v62 = vpop.eup %4280 }
 0x3ae   :  { %v465_v21 = vsub.f32 1.0, %v4281_v62  ;;  %v471_v23 = vmul.f32 %v4281_v62, %v4620_v42 }
 0x404   :  { %v456_v63 = vpop.permute.xlu0 %455 }
 0x405   :  { %v458_v1 = vmul.f32 %v4281_v62, %v456_v63 }
 0x407   :  { %460 = vrot.lane.b32.xlu1 %v458_v1, %s4498_s25 }
 0x413   :  { %v345_v2 = vpop.f32.mrb[2].mxu0 }
 0x414   :  { %v346_v5 = vadd.f32 %v4604_v11, %v345_v2  ;;  %v3959_v6 = vpop.f32.mrb[3].mxu0 }
 0x416   :  { %429 = vrot.lane.b32.xlu0 %v346_v5, %s4497_s22  ;;  %v421_v9 = vadd.f32 %v3754_v8, %v346_v5 }
 0x418   :  { %v3758_v12 = vmul.f32 -1.442695, %v421_v9 }
 0x41a   :  { %4282 = vpow2.f32 %v3758_v12 }
 0x424   :  { %v4283_v13 = vpop.eup %4282 }
 0x425   :  { %v425_v15 = vadd.f32 1.0, %v4283_v13 }
 0x479   :  { %v461_v14 = vpop.permute.xlu1 %460 }
 0x47a   :  { %v463_v16 = vadd.f32 %v3755_v57, %v461_v14 }
 0x47c   :  { %4284 = vtanh.f32 %v463_v16 }
 0x47d   :  { %4286 = vrcp.f32 %v425_v15 }
 0x486   :  { %v4285_v17 = vpop.eup %4284 }
 0x487   :  { %467 = vrot.lane.b32.xlu1 %v4285_v17, %s4500_s29  ;;  %v4287_v18 = vpop.eup %4286 }
 0x488   :  { %v430_v19 = vpop.permute.xlu0 %429  ;;  %v439_v30 = vsub.f32 1.0, %v4287_v18  ;;  %v445_v32 = vmul.f32 %v4287_v18, %v231_v52 }
 0x489   :  { %v432_v20 = vmul.f32 %v4287_v18, %v430_v19 }
 0x48b   :  { %434 = vrot.lane.b32.xlu0 %v432_v20, %s4498_s25 }
 0x4f9   :  { %v468_v22 = vpop.permute.xlu1 %467 }
 0x4fa   :  { %v470_v24 = vmul.f32 %v468_v22, %v465_v21  ;;  %v3767_v21 = vld [vmem:[%s5298_s1 + $0x18] sm:$0x3] }
 0x4fc   :  { %v472_v25 = vadd.f32 %v471_v23, %v470_v24 }
 0x4fd   :  { %v435_v26 = vpop.permute.xlu0 %434 }
 0x4fe   :  { %v437_v27 = vadd.f32 %v3754_v8, %v435_v26  ;;  %480 = vrot.lane.b32.xlu1 %v472_v25, %s4500_s29 }
 0x500   :  { %4288 = vtanh.f32 %v437_v27 }
 0x50a   :  { %v4289_v28 = vpop.eup %4288 }
 0x50b   :  { %441 = vrot.lane.b32.xlu0 %v4289_v28, %s4500_s29 }
 0x570   :  { %v481_v29 = vpop.permute.xlu1 %480 }
 0x571   :  { %484 = vst.msk [vmem:[#allocation3 + $0x1c] sm:$0x3] %vm265_vm2, %v481_v29  ;;  %3979 = vmatmul.mubr.msk.f32.vlgmr.msra.gmra.mrb[4].mxu1 %vm50_vm1, %v481_v29 }
 0x572   :  { %4186 = vmatpush3.bf16.msra.mxu1 %v4560_v4  ;;  %3992 = vmatprep.mubr.msk.f32.mxu1 %vm4495_vm0, %v4496_v3 }
 0x573   :  { %4190 = vmatprep.subr.bf16.mxu1 %v4494_v0 }
 0x57d   :  { %v442_v31 = vpop.permute.xlu0 %441 }
 0x57e   :  { %v444_v33 = vmul.f32 %v442_v31, %v439_v30 }
 0x580   :  { %v446_v34 = vadd.f32 %v445_v32, %v444_v33  ;;  %v3766_v32 = vld [vmem:[%s5299_s0 + $0x6] sm:$0x3] }
 0x582   :  { %474 = vrot.lane.b32.xlu1 %v446_v34, %s4500_s29 }
 0x5f4   :  { %v475_v35 = vpop.permute.xlu1 %474 }
 0x5f5   :  { %478 = vst.msk [vmem:[#allocation2 + $0x2] sm:$0x3] %vm265_vm2, %v475_v35  ;;  %3972 = vmatmul.mubr.msk.f32.vlgmr.msra.gmra.mrb[4].mxu0 %vm50_vm1, %v475_v35 }
 0x5f6   :  { %4183 = vmatpush3.bf16.msra.mxu0 %v4571_v7  ;;  %3985 = vmatprep.mubr.msk.f32.mxu0 %vm4495_vm0, %v4496_v3 }
 0x5f7   :  { %4187 = vmatprep.subr.bf16.mxu0 %v4494_v0 }
 0x644   :  { %v629_v36 = vpop.f32.mrb[4].mxu1 }
 0x645   :  { %v630_v37 = vadd.f32 %v4599_v10, %v629_v36  ;;  %v3980_v38 = vpop.f32.mrb[5].mxu1 }
 0x647   :  { %667 = vrot.lane.b32.xlu0 %v630_v37, %s4497_s22  ;;  %v659_v40 = vadd.f32 %v3761_v39, %v630_v37 }
 0x649   :  { %v3765_v41 = vmul.f32 -1.442695, %v659_v40 }
 0x64b   :  { %4290 = vpow2.f32 %v3765_v41 }
 0x655   :  { %v4291_v42 = vpop.eup %4290 }
 0x656   :  { %v663_v43 = vadd.f32 1.0, %v4291_v42 }
 0x658   :  { %4292 = vrcp.f32 %v663_v43 }
 0x662   :  { %v4293_v44 = vpop.eup %4292 }
 0x663   :  { %v677_v61 = vsub.f32 1.0, %v4293_v44  ;;  %v683_v63 = vmul.f32 %v4293_v44, %v472_v25 }
 0x6b9   :  { %v668_v45 = vpop.permute.xlu0 %667 }
 0x6ba   :  { %v670_v46 = vmul.f32 %v4293_v44, %v668_v45 }
 0x6bc   :  { %672 = vrot.lane.b32.xlu1 %v670_v46, %s4498_s25 }
 0x6c8   :  { %v557_v47 = vpop.f32.mrb[4].mxu0 }
 0x6c9   :  { %v558_v48 = vadd.f32 %v4604_v11, %v557_v47  ;;  %v3973_v49 = vpop.f32.mrb[5].mxu0 }
 0x6cb   :  { %641 = vrot.lane.b32.xlu0 %v558_v48, %s4497_s22  ;;  %v633_v51 = vadd.f32 %v3760_v50, %v558_v48 }
 0x6cd   :  { %v3764_v52 = vmul.f32 -1.442695, %v633_v51 }
 0x6cf   :  { %4294 = vpow2.f32 %v3764_v52 }
 0x6d9   :  { %v4295_v53 = vpop.eup %4294 }
 0x6da   :  { %v637_v55 = vadd.f32 1.0, %v4295_v53 }
 0x72e   :  { %v673_v54 = vpop.permute.xlu1 %672 }
 0x72f   :  { %v675_v56 = vadd.f32 %v3761_v39, %v673_v54 }
 0x731   :  { %4296 = vtanh.f32 %v675_v56 }
 0x732   :  { %4298 = vrcp.f32 %v637_v55 }
 0x73b   :  { %v4297_v57 = vpop.eup %4296 }
 0x73c   :  { %679 = vrot.lane.b32.xlu1 %v4297_v57, %s4500_s29  ;;  %v4299_v58 = vpop.eup %4298 }
 0x73d   :  { %v642_v59 = vpop.permute.xlu0 %641  ;;  %v651_v12 = vsub.f32 1.0, %v4299_v58  ;;  %v657_v14 = vmul.f32 %v4299_v58, %v446_v34 }
 0x73e   :  { %v644_v60 = vmul.f32 %v4299_v58, %v642_v59 }
 0x740   :  { %646 = vrot.lane.b32.xlu0 %v644_v60, %s4498_s25 }
 0x7ae   :  { %v680_v62 = vpop.permute.xlu1 %679 }
 0x7af   :  { %v682_v1 = vmul.f32 %v680_v62, %v677_v61  ;;  %v3773_v61 = vld [vmem:[%s5298_s1 + $0x16] sm:$0x3] }
 0x7b1   :  { %v684_v2 = vadd.f32 %v683_v63, %v682_v1 }
 0x7b2   :  { %v647_v5 = vpop.permute.xlu0 %646 }
 0x7b3   :  { %v649_v6 = vadd.f32 %v3760_v50, %v647_v5  ;;  %692 = vrot.lane.b32.xlu1 %v684_v2, %s4500_s29 }
 0x7b5   :  { %4300 = vtanh.f32 %v649_v6 }
 0x7bf   :  { %v4301_v8 = vpop.eup %4300 }
 0x7c0   :  { %653 = vrot.lane.b32.xlu0 %v4301_v8, %s4500_s29 }
 0x825   :  { %v693_v9 = vpop.permute.xlu1 %692 }
 0x826   :  { %696 = vst.msk [vmem:[#allocation3 + $0x1a] sm:$0x3] %vm265_vm2, %v693_v9  ;;  %3993 = vmatmul.mubr.msk.f32.vlgmr.msra.gmra.mrb[6].mxu1 %vm50_vm1, %v693_v9 }
 0x827   :  { %4192 = vmatpush3.bf16.msra.mxu1 %v4560_v4  ;;  %4006 = vmatprep.mubr.msk.f32.mxu1 %vm4495_vm0, %v4496_v3 }
 0x828   :  { %4196 = vmatprep.subr.bf16.mxu1 %v4494_v0 }
 0x832   :  { %v654_v13 = vpop.permute.xlu0 %653 }
 0x833   :  { %v656_v15 = vmul.f32 %v654_v13, %v651_v12 }
 0x835   :  { %v658_v16 = vadd.f32 %v657_v14, %v656_v15  ;;  %v3772_v14 = vld [vmem:[%s5299_s0 + $0x8] sm:$0x3] }
 0x837   :  { %686 = vrot.lane.b32.xlu1 %v658_v16, %s4500_s29 }
 0x8a9   :  { %v687_v17 = vpop.permute.xlu1 %686 }
 0x8aa   :  { %690 = vst.msk [vmem:[#allocation2 + $0x4] sm:$0x3] %vm265_vm2, %v687_v17  ;;  %3986 = vmatmul.mubr.msk.f32.vlgmr.msra.gmra.mrb[6].mxu0 %vm50_vm1, %v687_v17 }
 0x8ab   :  { %4189 = vmatpush3.bf16.msra.mxu0 %v4571_v7  ;;  %3999 = vmatprep.mubr.msk.f32.mxu0 %vm4495_vm0, %v4496_v3 }
 0x8ac   :  { %4193 = vmatprep.subr.bf16.mxu0 %v4494_v0 }
 0x8f9   :  { %v841_v18 = vpop.f32.mrb[6].mxu1 }
 0x8fa   :  { %v842_v19 = vadd.f32 %v4599_v10, %v841_v18  ;;  %v3994_v20 = vpop.f32.mrb[7].mxu1 }
 0x8fc   :  { %879 = vrot.lane.b32.xlu0 %v842_v19, %s4497_s22  ;;  %v871_v22 = vadd.f32 %v3767_v21, %v842_v19 }
 0x8fe   :  { %v3771_v23 = vmul.f32 -1.442695, %v871_v22 }
 0x900   :  { %4302 = vpow2.f32 %v3771_v23 }
 0x90a   :  { %v4303_v24 = vpop.eup %4302 }
 0x90b   :  { %v875_v25 = vadd.f32 1.0, %v4303_v24 }
 0x90d   :  { %4304 = vrcp.f32 %v875_v25 }
 0x917   :  { %v4305_v26 = vpop.eup %4304 }
 0x918   :  { %v889_v43 = vsub.f32 1.0, %v4305_v26  ;;  %v895_v45 = vmul.f32 %v4305_v26, %v684_v2 }
 0x96e   :  { %v880_v27 = vpop.permute.xlu0 %879 }
 0x96f   :  { %v882_v28 = vmul.f32 %v4305_v26, %v880_v27 }
 0x971   :  { %884 = vrot.lane.b32.xlu1 %v882_v28, %s4498_s25 }
 0x97d   :  { %v769_v29 = vpop.f32.mrb[6].mxu0 }
 0x97e   :  { %v770_v30 = vadd.f32 %v4604_v11, %v769_v29  ;;  %v3987_v31 = vpop.f32.mrb[7].mxu0 }
 0x980   :  { %853 = vrot.lane.b32.xlu0 %v770_v30, %s4497_s22  ;;  %v845_v33 = vadd.f32 %v3766_v32, %v770_v30 }
 0x982   :  { %v3770_v34 = vmul.f32 -1.442695, %v845_v33 }
 0x984   :  { %4306 = vpow2.f32 %v3770_v34 }
 0x98e   :  { %v4307_v35 = vpop.eup %4306 }
 0x98f   :  { %v849_v37 = vadd.f32 1.0, %v4307_v35 }
 0x9e3   :  { %v885_v36 = vpop.permute.xlu1 %884 }
 0x9e4   :  { %v887_v38 = vadd.f32 %v3767_v21, %v885_v36 }
 0x9e6   :  { %4308 = vtanh.f32 %v887_v38 }
 0x9e7   :  { %4310 = vrcp.f32 %v849_v37 }
 0x9f0   :  { %v4309_v39 = vpop.eup %4308 }
 0x9f1   :  { %891 = vrot.lane.b32.xlu1 %v4309_v39, %s4500_s29  ;;  %v4311_v40 = vpop.eup %4310 }
 0x9f2   :  { %v854_v41 = vpop.permute.xlu0 %853  ;;  %v863_v52 = vsub.f32 1.0, %v4311_v40  ;;  %v869_v54 = vmul.f32 %v4311_v40, %v658_v16 }
 0x9f3   :  { %v856_v42 = vmul.f32 %v4311_v40, %v854_v41 }
 0x9f5   :  { %858 = vrot.lane.b32.xlu0 %v856_v42, %s4498_s25 }
 0xa63   :  { %v892_v44 = vpop.permute.xlu1 %891 }
 0xa64   :  { %v894_v46 = vmul.f32 %v892_v44, %v889_v43  ;;  %v3779_v43 = vld [vmem:[%s5298_s1 + $0x14] sm:$0x3] }
 0xa66   :  { %v896_v47 = vadd.f32 %v895_v45, %v894_v46 }
 0xa67   :  { %v859_v48 = vpop.permute.xlu0 %858 }
 0xa68   :  { %v861_v49 = vadd.f32 %v3766_v32, %v859_v48  ;;  %904 = vrot.lane.b32.xlu1 %v896_v47, %s4500_s29 }
 0xa6a   :  { %4312 = vtanh.f32 %v861_v49 }
 0xa74   :  { %v4313_v50 = vpop.eup %4312 }
 0xa75   :  { %865 = vrot.lane.b32.xlu0 %v4313_v50, %s4500_s29 }
 0xada   :  { %v905_v51 = vpop.permute.xlu1 %904 }
 0xadb   :  { %908 = vst.msk [vmem:[#allocation3 + $0x18] sm:$0x3] %vm265_vm2, %v905_v51  ;;  %4007 = vmatmul.mubr.msk.f32.vlgmr.msra.gmra.mrb[8].mxu1 %vm50_vm1, %v905_v51 }
 0xadc   :  { %4198 = vmatpush3.bf16.msra.mxu1 %v4560_v4  ;;  %4020 = vmatprep.mubr.msk.f32.mxu1 %vm4495_vm0, %v4496_v3 }
 0xadd   :  { %4202 = vmatprep.subr.bf16.mxu1 %v4494_v0 }
 0xae7   :  { %v866_v53 = vpop.permute.xlu0 %865 }
 0xae8   :  { %v868_v55 = vmul.f32 %v866_v53, %v863_v52 }
 0xaea   :  { %v870_v56 = vadd.f32 %v869_v54, %v868_v55  ;;  %v3778_v54 = vld [vmem:[%s5299_s0 + $0xa] sm:$0x3] }
 0xaec   :  { %898 = vrot.lane.b32.xlu1 %v870_v56, %s4500_s29 }
 0xb5e   :  { %v899_v57 = vpop.permute.xlu1 %898 }
 0xb5f   :  { %902 = vst.msk [vmem:[#allocation2 + $0x6] sm:$0x3] %vm265_vm2, %v899_v57  ;;  %4000 = vmatmul.mubr.msk.f32.vlgmr.msra.gmra.mrb[8].mxu0 %vm50_vm1, %v899_v57 }
 0xb60   :  { %4195 = vmatpush3.bf16.msra.mxu0 %v4571_v7  ;;  %4013 = vmatprep.mubr.msk.f32.mxu0 %vm4495_vm0, %v4496_v3 }
 0xb61   :  { %4199 = vmatprep.subr.bf16.mxu0 %v4494_v0 }
 0xbae   :  { %v1053_v58 = vpop.f32.mrb[8].mxu1 }
 0xbaf   :  { %v1054_v59 = vadd.f32 %v4599_v10, %v1053_v58  ;;  %v4008_v60 = vpop.f32.mrb[9].mxu1 }
 0xbb1   :  { %1091 = vrot.lane.b32.xlu0 %v1054_v59, %s4497_s22  ;;  %v1083_v62 = vadd.f32 %v3773_v61, %v1054_v59 }
 0xbb3   :  { %v3777_v63 = vmul.f32 -1.442695, %v1083_v62 }
 0xbb5   :  { %4314 = vpow2.f32 %v3777_v63 }
 0xbbf   :  { %v4315_v1 = vpop.eup %4314 }
 0xbc0   :  { %v1087_v2 = vadd.f32 1.0, %v4315_v1 }
 0xbc2   :  { %4316 = vrcp.f32 %v1087_v2 }
 0xbcc   :  { %v4317_v5 = vpop.eup %4316 }
 0xbcd   :  { %v1101_v25 = vsub.f32 1.0, %v4317_v5  ;;  %v1107_v27 = vmul.f32 %v4317_v5, %v896_v47 }
 0xc23   :  { %v1092_v6 = vpop.permute.xlu0 %1091 }
 0xc24   :  { %v1094_v8 = vmul.f32 %v4317_v5, %v1092_v6 }
 0xc26   :  { %1096 = vrot.lane.b32.xlu1 %v1094_v8, %s4498_s25 }
 0xc32   :  { %v981_v9 = vpop.f32.mrb[8].mxu0 }
 0xc33   :  { %v982_v12 = vadd.f32 %v4604_v11, %v981_v9  ;;  %v4001_v13 = vpop.f32.mrb[9].mxu0 }
 0xc35   :  { %1065 = vrot.lane.b32.xlu0 %v982_v12, %s4497_s22  ;;  %v1057_v15 = vadd.f32 %v3772_v14, %v982_v12 }
 0xc37   :  { %v3776_v16 = vmul.f32 -1.442695, %v1057_v15 }
 0xc39   :  { %4318 = vpow2.f32 %v3776_v16 }
 0xc43   :  { %v4319_v17 = vpop.eup %4318 }
 0xc44   :  { %v1061_v19 = vadd.f32 1.0, %v4319_v17 }
 0xc98   :  { %v1097_v18 = vpop.permute.xlu1 %1096 }
 0xc99   :  { %v1099_v20 = vadd.f32 %v3773_v61, %v1097_v18 }
 0xc9b   :  { %4320 = vtanh.f32 %v1099_v20 }
 0xc9c   :  { %4322 = vrcp.f32 %v1061_v19 }
 0xca5   :  { %v4321_v21 = vpop.eup %4320 }
 0xca6   :  { %1103 = vrot.lane.b32.xlu1 %v4321_v21, %s4500_s29  ;;  %v4323_v22 = vpop.eup %4322 }
 0xca7   :  { %v1066_v23 = vpop.permute.xlu0 %1065  ;;  %v1075_v34 = vsub.f32 1.0, %v4323_v22  ;;  %v1081_v36 = vmul.f32 %v4323_v22, %v870_v56 }
 0xca8   :  { %v1068_v24 = vmul.f32 %v4323_v22, %v1066_v23 }
 0xcaa   :  { %1070 = vrot.lane.b32.xlu0 %v1068_v24, %s4498_s25 }
 0xd18   :  { %v1104_v26 = vpop.permute.xlu1 %1103 }
 0xd19   :  { %v1106_v28 = vmul.f32 %v1104_v26, %v1101_v25  ;;  %v3785_v25 = vld [vmem:[%s5298_s1 + $0x12] sm:$0x3] }
 0xd1b   :  { %v1108_v29 = vadd.f32 %v1107_v27, %v1106_v28 }
 0xd1c   :  { %v1071_v30 = vpop.permute.xlu0 %1070 }
 0xd1d   :  { %v1073_v31 = vadd.f32 %v3772_v14, %v1071_v30  ;;  %1116 = vrot.lane.b32.xlu1 %v1108_v29, %s4500_s29 }
 0xd1f   :  { %4324 = vtanh.f32 %v1073_v31 }
 0xd29   :  { %v4325_v32 = vpop.eup %4324 }
 0xd2a   :  { %1077 = vrot.lane.b32.xlu0 %v4325_v32, %s4500_s29 }
 0xd8f   :  { %v1117_v33 = vpop.permute.xlu1 %1116 }
 0xd90   :  { %1120 = vst.msk [vmem:[#allocation3 + $0x16] sm:$0x3] %vm265_vm2, %v1117_v33  ;;  %4021 = vmatmul.mubr.msk.f32.vlgmr.msra.gmra.mrb[10].mxu1 %vm50_vm1, %v1117_v33 }
 0xd91   :  { %4204 = vmatpush3.bf16.msra.mxu1 %v4560_v4  ;;  %4034 = vmatprep.mubr.msk.f32.mxu1 %vm4495_vm0, %v4496_v3 }
 0xd92   :  { %4208 = vmatprep.subr.bf16.mxu1 %v4494_v0 }
 0xd9c   :  { %v1078_v35 = vpop.permute.xlu0 %1077 }
 0xd9d   :  { %v1080_v37 = vmul.f32 %v1078_v35, %v1075_v34 }
 0xd9f   :  { %v1082_v38 = vadd.f32 %v1081_v36, %v1080_v37  ;;  %v3784_v36 = vld [vmem:[%s5299_s0 + $0xc] sm:$0x3] }
 0xda1   :  { %1110 = vrot.lane.b32.xlu1 %v1082_v38, %s4500_s29 }
 0xe13   :  { %v1111_v39 = vpop.permute.xlu1 %1110 }
 0xe14   :  { %1114 = vst.msk [vmem:[#allocation2 + $0x8] sm:$0x3] %vm265_vm2, %v1111_v39  ;;  %4014 = vmatmul.mubr.msk.f32.vlgmr.msra.gmra.mrb[10].mxu0 %vm50_vm1, %v1111_v39 }
 0xe15   :  { %4201 = vmatpush3.bf16.msra.mxu0 %v4571_v7  ;;  %4027 = vmatprep.mubr.msk.f32.mxu0 %vm4495_vm0, %v4496_v3 }
 0xe16   :  { %4205 = vmatprep.subr.bf16.mxu0 %v4494_v0 }
 0xe63   :  { %v1265_v40 = vpop.f32.mrb[10].mxu1 }
 0xe64   :  { %v1266_v41 = vadd.f32 %v4599_v10, %v1265_v40  ;;  %v4022_v42 = vpop.f32.mrb[11].mxu1 }
 0xe66   :  { %1303 = vrot.lane.b32.xlu0 %v1266_v41, %s4497_s22  ;;  %v1295_v44 = vadd.f32 %v3779_v43, %v1266_v41 }
 0xe68   :  { %v3783_v45 = vmul.f32 -1.442695, %v1295_v44 }
 0xe6a   :  { %4326 = vpow2.f32 %v3783_v45 }
 0xe74   :  { %v4327_v46 = vpop.eup %4326 }
 0xe75   :  { %v1299_v47 = vadd.f32 1.0, %v4327_v46 }
 0xe77   :  { %4328 = vrcp.f32 %v1299_v47 }
 0xe81   :  { %v4329_v48 = vpop.eup %4328 }
 0xe82   :  { %v1313_v2 = vsub.f32 1.0, %v4329_v48  ;;  %v1319_v6 = vmul.f32 %v4329_v48, %v1108_v29 }
 0xed8   :  { %v1304_v49 = vpop.permute.xlu0 %1303 }
 0xed9   :  { %v1306_v50 = vmul.f32 %v4329_v48, %v1304_v49 }
 0xedb   :  { %1308 = vrot.lane.b32.xlu1 %v1306_v50, %s4498_s25 }
 0xee7   :  { %v1193_v51 = vpop.f32.mrb[10].mxu0 }
 0xee8   :  { %v1194_v52 = vadd.f32 %v4604_v11, %v1193_v51  ;;  %v4015_v53 = vpop.f32.mrb[11].mxu0 }
 0xeea   :  { %1277 = vrot.lane.b32.xlu0 %v1194_v52, %s4497_s22  ;;  %v1269_v55 = vadd.f32 %v3778_v54, %v1194_v52 }
 0xeec   :  { %v3782_v56 = vmul.f32 -1.442695, %v1269_v55 }
 0xeee   :  { %4330 = vpow2.f32 %v3782_v56 }
 0xef8   :  { %v4331_v57 = vpop.eup %4330 }
 0xef9   :  { %v1273_v59 = vadd.f32 1.0, %v4331_v57 }
 0xf4d   :  { %v1309_v58 = vpop.permute.xlu1 %1308 }
 0xf4e   :  { %v1311_v60 = vadd.f32 %v3779_v43, %v1309_v58 }
 0xf50   :  { %4332 = vtanh.f32 %v1311_v60 }
 0xf51   :  { %4334 = vrcp.f32 %v1273_v59 }
 0xf5a   :  { %v4333_v61 = vpop.eup %4332 }
 0xf5b   :  { %1315 = vrot.lane.b32.xlu1 %v4333_v61, %s4500_s29  ;;  %v4335_v62 = vpop.eup %4334 }
 0xf5c   :  { %v1278_v63 = vpop.permute.xlu0 %1277  ;;  %v1287_v16 = vsub.f32 1.0, %v4335_v62  ;;  %v1293_v18 = vmul.f32 %v4335_v62, %v1082_v38 }
 0xf5d   :  { %v1280_v1 = vmul.f32 %v4335_v62, %v1278_v63 }
 0xf5f   :  { %1282 = vrot.lane.b32.xlu0 %v1280_v1, %s4498_s25 }
 0xfcd   :  { %v1316_v5 = vpop.permute.xlu1 %1315 }
 0xfce   :  { %v1318_v8 = vmul.f32 %v1316_v5, %v1313_v2  ;;  %v3791_v2 = vld [vmem:[%s5298_s1 + $0x10] sm:$0x3] }
 0xfd0   :  { %v1320_v9 = vadd.f32 %v1319_v6, %v1318_v8 }
 0xfd1   :  { %v1283_v12 = vpop.permute.xlu0 %1282 }
 0xfd2   :  { %v1285_v13 = vadd.f32 %v3778_v54, %v1283_v12  ;;  %1328 = vrot.lane.b32.xlu1 %v1320_v9, %s4500_s29 }
 0xfd4   :  { %4336 = vtanh.f32 %v1285_v13 }
 0xfde   :  { %v4337_v14 = vpop.eup %4336 }
 0xfdf   :  { %1289 = vrot.lane.b32.xlu0 %v4337_v14, %s4500_s29 }
0x1044   :  { %v1329_v15 = vpop.permute.xlu1 %1328 }
0x1045   :  { %1332 = vst.msk [vmem:[#allocation3 + $0x14] sm:$0x3] %vm265_vm2, %v1329_v15  ;;  %4035 = vmatmul.mubr.msk.f32.vlgmr.msra.gmra.mrb[12].mxu1 %vm50_vm1, %v1329_v15 }
0x1046   :  { %4210 = vmatpush3.bf16.msra.mxu1 %v4560_v4  ;;  %4048 = vmatprep.mubr.msk.f32.mxu1 %vm4495_vm0, %v4496_v3 }
0x1047   :  { %4214 = vmatprep.subr.bf16.mxu1 %v4494_v0 }
0x1051   :  { %v1290_v17 = vpop.permute.xlu0 %1289 }
0x1052   :  { %v1292_v19 = vmul.f32 %v1290_v17, %v1287_v16  ;;  %v3790_v17 = vld [vmem:[%s5299_s0 + $0xe] sm:$0x3] }
0x1054   :  { %v1294_v20 = vadd.f32 %v1293_v18, %v1292_v19 }
0x1056   :  { %1322 = vrot.lane.b32.xlu1 %v1294_v20, %s4500_s29 }
0x10c8   :  { %v1323_v21 = vpop.permute.xlu1 %1322 }
0x10c9   :  { %1326 = vst.msk [vmem:[#allocation2 + $0xa] sm:$0x3] %vm265_vm2, %v1323_v21  ;;  %4028 = vmatmul.mubr.msk.f32.vlgmr.msra.gmra.mrb[12].mxu0 %vm50_vm1, %v1323_v21 }
0x10ca   :  { %4207 = vmatpush3.bf16.msra.mxu0 %v4571_v7  ;;  %4041 = vmatprep.mubr.msk.f32.mxu0 %vm4495_vm0, %v4496_v3 }
0x10cb   :  { %4211 = vmatprep.subr.bf16.mxu0 %v4494_v0 }
0x1118   :  { %v1477_v22 = vpop.f32.mrb[12].mxu1 }
0x1119   :  { %v1478_v23 = vadd.f32 %v4599_v10, %v1477_v22  ;;  %v4036_v24 = vpop.f32.mrb[13].mxu1 }
0x111b   :  { %1515 = vrot.lane.b32.xlu0 %v1478_v23, %s4497_s22  ;;  %v1507_v26 = vadd.f32 %v3785_v25, %v1478_v23 }
0x111d   :  { %v3789_v27 = vmul.f32 -1.442695, %v1507_v26 }
0x111f   :  { %4338 = vpow2.f32 %v3789_v27 }
0x1129   :  { %v4339_v28 = vpop.eup %4338 }
0x112a   :  { %v1511_v29 = vadd.f32 1.0, %v4339_v28 }
0x112c   :  { %4340 = vrcp.f32 %v1511_v29 }
0x1136   :  { %v4341_v30 = vpop.eup %4340 }
0x1137   :  { %v1525_v47 = vsub.f32 1.0, %v4341_v30  ;;  %v1531_v49 = vmul.f32 %v4341_v30, %v1320_v9 }
0x118d   :  { %v1516_v31 = vpop.permute.xlu0 %1515 }
0x118e   :  { %v1518_v32 = vmul.f32 %v4341_v30, %v1516_v31 }
0x1190   :  { %1520 = vrot.lane.b32.xlu1 %v1518_v32, %s4498_s25 }
0x119c   :  { %v1405_v33 = vpop.f32.mrb[12].mxu0 }
0x119d   :  { %v1406_v34 = vadd.f32 %v4604_v11, %v1405_v33  ;;  %v4029_v35 = vpop.f32.mrb[13].mxu0 }
0x119f   :  { %1489 = vrot.lane.b32.xlu0 %v1406_v34, %s4497_s22  ;;  %v1481_v37 = vadd.f32 %v3784_v36, %v1406_v34 }
0x11a1   :  { %v3788_v38 = vmul.f32 -1.442695, %v1481_v37 }
0x11a3   :  { %4342 = vpow2.f32 %v3788_v38 }
0x11ad   :  { %v4343_v39 = vpop.eup %4342 }
0x11ae   :  { %v1485_v41 = vadd.f32 1.0, %v4343_v39 }
0x1202   :  { %v1521_v40 = vpop.permute.xlu1 %1520 }
0x1203   :  { %v1523_v42 = vadd.f32 %v3785_v25, %v1521_v40 }
0x1205   :  { %4344 = vtanh.f32 %v1523_v42 }
0x1206   :  { %4346 = vrcp.f32 %v1485_v41 }
0x120f   :  { %v4345_v43 = vpop.eup %4344 }
0x1210   :  { %1527 = vrot.lane.b32.xlu1 %v4345_v43, %s4500_s29  ;;  %v4347_v44 = vpop.eup %4346  ;;  %v4846_v43 = vld [vmem:[%s5296_s5] ss:$0 sm:$0xff] }
0x1211   :  { %v1490_v45 = vpop.permute.xlu0 %1489  ;;  %v1499_v56 = vsub.f32 1.0, %v4347_v44  ;;  %v1505_v58 = vmul.f32 %v4347_v44, %v1294_v20 }
0x1212   :  { %v1492_v46 = vmul.f32 %v4347_v44, %v1490_v45 }
0x1214   :  { %1494 = vrot.lane.b32.xlu0 %v1492_v46, %s4498_s25  ;;  %v3797_v46 = vld [vmem:[%s5298_s1 + $0xe] sm:$0x3] }
0x1282   :  { %v1528_v48 = vpop.permute.xlu1 %1527 }
0x1283   :  { %v1530_v50 = vmul.f32 %v1528_v48, %v1525_v47 }
0x1285   :  { %v1532_v51 = vadd.f32 %v1531_v49, %v1530_v50 }
0x1286   :  { %v1495_v52 = vpop.permute.xlu0 %1494 }
0x1287   :  { %v1497_v53 = vadd.f32 %v3784_v36, %v1495_v52  ;;  %1540 = vrot.lane.b32.xlu1 %v1532_v51, %s4500_s29 }
0x1289   :  { %4348 = vtanh.f32 %v1497_v53 }
0x1293   :  { %v4349_v54 = vpop.eup %4348 }
0x1294   :  { %1501 = vrot.lane.b32.xlu0 %v4349_v54, %s4500_s29 }
0x12f9   :  { %v1541_v55 = vpop.permute.xlu1 %1540 }
0x12fa   :  { %1544 = vst.msk [vmem:[#allocation3 + $0x12] sm:$0x3] %vm265_vm2, %v1541_v55  ;;  %4049 = vmatmul.mubr.msk.f32.vlgmr.msra.gmra.mrb[14].mxu1 %vm50_vm1, %v1541_v55  ;;  %v4857_v55 = vld [vmem:[%s5297_s3] ss:$0 sm:$0xff] }
0x12fb   :  { %4216 = vmatpush3.bf16.msra.mxu1 %v4560_v4  ;;  %4062 = vmatprep.mubr.msk.f32.mxu1 %vm4495_vm0, %v4496_v3 }
0x12fc   :  { %4220 = vmatprep.subr.bf16.mxu1 %v4494_v0 }
0x1306   :  { %v1502_v57 = vpop.permute.xlu0 %1501 }
0x1307   :  { %v1504_v59 = vmul.f32 %v1502_v57, %v1499_v56 }
0x1309   :  { %v1506_v60 = vadd.f32 %v1505_v58, %v1504_v59  ;;  %v3796_v58 = vld [vmem:[%s5299_s0 + $0x10] sm:$0x3] }
0x130b   :  { %1534 = vrot.lane.b32.xlu1 %v1506_v60, %s4500_s29 }
0x137d   :  { %v1535_v61 = vpop.permute.xlu1 %1534 }
0x137e   :  { %1538 = vst.msk [vmem:[#allocation2 + $0xc] sm:$0x3] %vm265_vm2, %v1535_v61  ;;  %4042 = vmatmul.mubr.msk.f32.vlgmr.msra.gmra.mrb[14].mxu0 %vm50_vm1, %v1535_v61 }
0x137f   :  { %4213 = vmatpush3.bf16.msra.mxu0 %v4571_v7  ;;  %4055 = vmatprep.mubr.msk.f32.mxu0 %vm4495_vm0, %v4496_v3 }
0x1380   :  { %4217 = vmatprep.subr.bf16.mxu0 %v4494_v0 }
0x13cd   :  { %v1689_v62 = vpop.f32.mrb[14].mxu1 }
0x13ce   :  { %v1690_v63 = vadd.f32 %v4599_v10, %v1689_v62  ;;  %v4050_v1 = vpop.f32.mrb[15].mxu1 }
0x13d0   :  { %1727 = vrot.lane.b32.xlu0 %v1690_v63, %s4497_s22  ;;  %v1719_v5 = vadd.f32 %v3791_v2, %v1690_v63 }
0x13d2   :  { %v3795_v6 = vmul.f32 -1.442695, %v1719_v5 }
0x13d4   :  { %4350 = vpow2.f32 %v3795_v6 }
0x13de   :  { %v4351_v8 = vpop.eup %4350 }
0x13df   :  { %v1723_v9 = vadd.f32 1.0, %v4351_v8 }
0x13e1   :  { %4352 = vrcp.f32 %v1723_v9 }
0x13eb   :  { %v4353_v12 = vpop.eup %4352 }
0x13ec   :  { %v1737_v27 = vsub.f32 1.0, %v4353_v12  ;;  %v1743_v29 = vmul.f32 %v4353_v12, %v1532_v51 }
0x1442   :  { %v1728_v13 = vpop.permute.xlu0 %1727 }
0x1443   :  { %v1730_v14 = vmul.f32 %v4353_v12, %v1728_v13 }
0x1445   :  { %1732 = vrot.lane.b32.xlu1 %v1730_v14, %s4498_s25 }
0x1451   :  { %v1617_v15 = vpop.f32.mrb[14].mxu0 }
0x1452   :  { %v1618_v10 = vadd.f32 %v4604_v11, %v1617_v15  ;;  %v4043_v16 = vpop.f32.mrb[15].mxu0 }
0x1454   :  { %1701 = vrot.lane.b32.xlu0 %v1618_v10, %s4497_s22  ;;  %v1693_v18 = vadd.f32 %v3790_v17, %v1618_v10 }
0x1456   :  { %v3794_v19 = vmul.f32 -1.442695, %v1693_v18 }
0x1458   :  { %4354 = vpow2.f32 %v3794_v19 }
0x1462   :  { %v4355_v20 = vpop.eup %4354 }
0x1463   :  { %v1697_v22 = vadd.f32 1.0, %v4355_v20 }
0x14b7   :  { %v1733_v21 = vpop.permute.xlu1 %1732 }
0x14b8   :  { %v1735_v23 = vadd.f32 %v3791_v2, %v1733_v21 }
0x14ba   :  { %4356 = vtanh.f32 %v1735_v23 }
0x14bb   :  { %4358 = vrcp.f32 %v1697_v22 }
0x14c4   :  { %v4357_v24 = vpop.eup %4356 }
0x14c5   :  { %1739 = vrot.lane.b32.xlu1 %v4357_v24, %s4500_s29  ;;  %v4359_v11 = vpop.eup %4358 }
0x14c6   :  { %v1702_v25 = vpop.permute.xlu0 %1701  ;;  %v1711_v36 = vsub.f32 1.0, %v4359_v11  ;;  %v1717_v38 = vmul.f32 %v4359_v11, %v1506_v60 }
0x14c7   :  { %v1704_v26 = vmul.f32 %v4359_v11, %v1702_v25 }
0x14c9   :  { %1706 = vrot.lane.b32.xlu0 %v1704_v26, %s4498_s25 }
0x1537   :  { %v1740_v28 = vpop.permute.xlu1 %1739 }
0x1538   :  { %v1742_v30 = vmul.f32 %v1740_v28, %v1737_v27  ;;  %v3803_v27 = vld [vmem:[%s5298_s1 + $0xc] sm:$0x3] }
0x153a   :  { %v4822_v31 = vadd.f32 %v1743_v29, %v1742_v30 }
0x153b   :  { %v1707_v32 = vpop.permute.xlu0 %1706 }
0x153c   :  { %v1709_v33 = vadd.f32 %v3790_v17, %v1707_v32  ;;  %1752 = vrot.lane.b32.xlu1 %v4822_v31, %s4500_s29 }
0x153e   :  { %4360 = vtanh.f32 %v1709_v33 }
0x1548   :  { %v4361_v34 = vpop.eup %4360 }
0x1549   :  { %1713 = vrot.lane.b32.xlu0 %v4361_v34, %s4500_s29 }
0x15ae   :  { %v1753_v35 = vpop.permute.xlu1 %1752 }
0x15af   :  { %1756 = vst.msk [vmem:[#allocation3 + $0x10] sm:$0x3] %vm265_vm2, %v1753_v35  ;;  %4063 = vmatmul.mubr.msk.f32.vlgmr.msra.gmra.mrb[16].mxu1 %vm50_vm1, %v1753_v35 }
0x15b0   :  { %4222 = vmatpush3.bf16.msra.mxu1 %v4560_v4  ;;  %4076 = vmatprep.mubr.msk.f32.mxu1 %vm4495_vm0, %v4496_v3 }
0x15b1   :  { %4226 = vmatprep.subr.bf16.mxu1 %v4494_v0 }
0x15bb   :  { %v1714_v37 = vpop.permute.xlu0 %1713 }
0x15bc   :  { %v1716_v39 = vmul.f32 %v1714_v37, %v1711_v36 }
0x15be   :  { %v4833_v40 = vadd.f32 %v1717_v38, %v1716_v39  ;;  %v3802_v38 = vld [vmem:[%s5299_s0 + $0x12] sm:$0x3] }
0x15c0   :  { %1746 = vrot.lane.b32.xlu1 %v4833_v40, %s4500_s29 }
0x1632   :  { %v1747_v41 = vpop.permute.xlu1 %1746 }
0x1633   :  { %1750 = vst.msk [vmem:[#allocation2 + $0xe] sm:$0x3] %vm265_vm2, %v1747_v41  ;;  %4056 = vmatmul.mubr.msk.f32.vlgmr.msra.gmra.mrb[16].mxu0 %vm50_vm1, %v1747_v41 }
0x1634   :  { %4219 = vmatpush3.bf16.msra.mxu0 %v4571_v7  ;;  %4069 = vmatprep.mubr.msk.f32.mxu0 %vm4495_vm0, %v4496_v3 }
0x1635   :  { %4223 = vmatprep.subr.bf16.mxu0 %v4494_v0 }
0x1682   :  { %v1901_v42 = vpop.f32.mrb[16].mxu1 }
0x1683   :  { %v1902_v44 = vadd.f32 %v4846_v43, %v1901_v42  ;;  %v4064_v45 = vpop.f32.mrb[17].mxu1 }
0x1685   :  { %1939 = vrot.lane.b32.xlu0 %v1902_v44, %s4497_s22  ;;  %v1931_v47 = vadd.f32 %v3797_v46, %v1902_v44 }
0x1687   :  { %v3801_v48 = vmul.f32 -1.442695, %v1931_v47 }
0x1689   :  { %4362 = vpow2.f32 %v3801_v48 }
0x1693   :  { %v4363_v49 = vpop.eup %4362 }
0x1694   :  { %v1935_v50 = vadd.f32 1.0, %v4363_v49 }
0x1696   :  { %4364 = vrcp.f32 %v1935_v50 }
0x16a0   :  { %v4365_v51 = vpop.eup %4364 }
0x16a1   :  { %v1949_v9 = vsub.f32 1.0, %v4365_v51  ;;  %v1955_v13 = vmul.f32 %v4365_v51, %v4822_v31 }
0x16f7   :  { %v1940_v52 = vpop.permute.xlu0 %1939 }
0x16f8   :  { %v1942_v53 = vmul.f32 %v4365_v51, %v1940_v52 }
0x16fa   :  { %1944 = vrot.lane.b32.xlu1 %v1942_v53, %s4498_s25 }
0x1706   :  { %v1829_v54 = vpop.f32.mrb[16].mxu0 }
0x1707   :  { %v1830_v56 = vadd.f32 %v4857_v55, %v1829_v54  ;;  %v4057_v57 = vpop.f32.mrb[17].mxu0 }
0x1709   :  { %1913 = vrot.lane.b32.xlu0 %v1830_v56, %s4497_s22  ;;  %v1905_v59 = vadd.f32 %v3796_v58, %v1830_v56 }
0x170b   :  { %v3800_v60 = vmul.f32 -1.442695, %v1905_v59 }
0x170d   :  { %4366 = vpow2.f32 %v3800_v60 }
0x1717   :  { %v4367_v61 = vpop.eup %4366 }
0x1718   :  { %v1909_v63 = vadd.f32 1.0, %v4367_v61 }
0x176c   :  { %v1945_v62 = vpop.permute.xlu1 %1944 }
0x176d   :  { %v1947_v1 = vadd.f32 %v3797_v46, %v1945_v62 }
0x176f   :  { %4368 = vtanh.f32 %v1947_v1 }
0x1770   :  { %4370 = vrcp.f32 %v1909_v63 }
0x1779   :  { %v4369_v2 = vpop.eup %4368 }
0x177a   :  { %1951 = vrot.lane.b32.xlu1 %v4369_v2, %s4500_s29  ;;  %v4371_v5 = vpop.eup %4370 }
0x177b   :  { %v1914_v6 = vpop.permute.xlu0 %1913  ;;  %v1923_v19 = vsub.f32 1.0, %v4371_v5  ;;  %v1929_v21 = vmul.f32 %v4371_v5, %v4833_v40 }
0x177c   :  { %v1916_v8 = vmul.f32 %v4371_v5, %v1914_v6 }
0x177e   :  { %1918 = vrot.lane.b32.xlu0 %v1916_v8, %s4498_s25 }
0x17ec   :  { %v1952_v12 = vpop.permute.xlu1 %1951 }
0x17ed   :  { %v1954_v14 = vmul.f32 %v1952_v12, %v1949_v9  ;;  %v3809_v9 = vld [vmem:[%s5298_s1 + $0xa] sm:$0x3] }
0x17ef   :  { %v1956_v15 = vadd.f32 %v1955_v13, %v1954_v14 }
0x17f0   :  { %v1919_v10 = vpop.permute.xlu0 %1918 }
0x17f1   :  { %v1921_v16 = vadd.f32 %v3796_v58, %v1919_v10  ;;  %1964 = vrot.lane.b32.xlu1 %v1956_v15, %s4500_s29 }
0x17f3   :  { %4372 = vtanh.f32 %v1921_v16 }
0x17fd   :  { %v4373_v17 = vpop.eup %4372 }
0x17fe   :  { %1925 = vrot.lane.b32.xlu0 %v4373_v17, %s4500_s29 }
0x1863   :  { %v1965_v18 = vpop.permute.xlu1 %1964 }
0x1864   :  { %1968 = vst.msk [vmem:[#allocation3 + $0xe] sm:$0x3] %vm265_vm2, %v1965_v18  ;;  %4077 = vmatmul.mubr.msk.f32.vlgmr.msra.gmra.mrb[18].mxu1 %vm50_vm1, %v1965_v18 }
0x1865   :  { %4228 = vmatpush3.bf16.msra.mxu1 %v4560_v4  ;;  %4090 = vmatprep.mubr.msk.f32.mxu1 %vm4495_vm0, %v4496_v3 }
0x1866   :  { %4232 = vmatprep.subr.bf16.mxu1 %v4494_v0 }
0x1870   :  { %v1926_v20 = vpop.permute.xlu0 %1925 }
0x1871   :  { %v1928_v22 = vmul.f32 %v1926_v20, %v1923_v19 }
0x1873   :  { %v1930_v23 = vadd.f32 %v1929_v21, %v1928_v22  ;;  %v3808_v21 = vld [vmem:[%s5299_s0 + $0x14] sm:$0x3] }
0x1875   :  { %1958 = vrot.lane.b32.xlu1 %v1930_v23, %s4500_s29 }
0x18e7   :  { %v1959_v24 = vpop.permute.xlu1 %1958 }
0x18e8   :  { %1962 = vst.msk [vmem:[#allocation2 + $0x10] sm:$0x3] %vm265_vm2, %v1959_v24  ;;  %4070 = vmatmul.mubr.msk.f32.vlgmr.msra.gmra.mrb[18].mxu0 %vm50_vm1, %v1959_v24 }
0x18e9   :  { %4225 = vmatpush3.bf16.msra.mxu0 %v4571_v7  ;;  %4083 = vmatprep.mubr.msk.f32.mxu0 %vm4495_vm0, %v4496_v3 }
0x18ea   :  { %4229 = vmatprep.subr.bf16.mxu0 %v4494_v0 }
0x1937   :  { %v2113_v11 = vpop.f32.mrb[18].mxu1 }
0x1938   :  { %v2114_v25 = vadd.f32 %v4846_v43, %v2113_v11  ;;  %v4078_v26 = vpop.f32.mrb[19].mxu1 }
0x193a   :  { %2151 = vrot.lane.b32.xlu0 %v2114_v25, %s4497_s22  ;;  %v2143_v28 = vadd.f32 %v3803_v27, %v2114_v25 }
0x193c   :  { %v3807_v29 = vmul.f32 -1.442695, %v2143_v28 }
0x193e   :  { %4374 = vpow2.f32 %v3807_v29 }
0x1948   :  { %v4375_v30 = vpop.eup %4374 }
0x1949   :  { %v2147_v31 = vadd.f32 1.0, %v4375_v30 }
0x194b   :  { %4376 = vrcp.f32 %v2147_v31 }
0x1955   :  { %v4377_v32 = vpop.eup %4376 }
0x1956   :  { %v2161_v50 = vsub.f32 1.0, %v4377_v32  ;;  %v2167_v52 = vmul.f32 %v4377_v32, %v1956_v15 }
0x19ac   :  { %v2152_v33 = vpop.permute.xlu0 %2151 }
0x19ad   :  { %v2154_v34 = vmul.f32 %v4377_v32, %v2152_v33 }
0x19af   :  { %2156 = vrot.lane.b32.xlu1 %v2154_v34, %s4498_s25 }
0x19bb   :  { %v2041_v35 = vpop.f32.mrb[18].mxu0 }
0x19bc   :  { %v2042_v36 = vadd.f32 %v4857_v55, %v2041_v35  ;;  %v4071_v37 = vpop.f32.mrb[19].mxu0 }
0x19be   :  { %2125 = vrot.lane.b32.xlu0 %v2042_v36, %s4497_s22  ;;  %v2117_v39 = vadd.f32 %v3802_v38, %v2042_v36 }
0x19c0   :  { %v3806_v40 = vmul.f32 -1.442695, %v2117_v39 }
0x19c2   :  { %4378 = vpow2.f32 %v3806_v40 }
0x19cc   :  { %v4379_v41 = vpop.eup %4378 }
0x19cd   :  { %v2121_v44 = vadd.f32 1.0, %v4379_v41 }
0x1a21   :  { %v2157_v42 = vpop.permute.xlu1 %2156 }
0x1a22   :  { %v2159_v45 = vadd.f32 %v3803_v27, %v2157_v42 }
0x1a24   :  { %4380 = vtanh.f32 %v2159_v45 }
0x1a25   :  { %4382 = vrcp.f32 %v2121_v44 }
0x1a2e   :  { %v4381_v46 = vpop.eup %4380 }
0x1a2f   :  { %2163 = vrot.lane.b32.xlu1 %v4381_v46, %s4500_s29  ;;  %v4383_v47 = vpop.eup %4382 }
0x1a30   :  { %v2126_v48 = vpop.permute.xlu0 %2125  ;;  %v2135_v60 = vsub.f32 1.0, %v4383_v47  ;;  %v2141_v62 = vmul.f32 %v4383_v47, %v1930_v23 }
0x1a31   :  { %v2128_v49 = vmul.f32 %v4383_v47, %v2126_v48 }
0x1a33   :  { %2130 = vrot.lane.b32.xlu0 %v2128_v49, %s4498_s25 }
0x1aa1   :  { %v2164_v51 = vpop.permute.xlu1 %2163 }
0x1aa2   :  { %v2166_v53 = vmul.f32 %v2164_v51, %v2161_v50  ;;  %v3815_v50 = vld [vmem:[%s5298_s1 + $0x8] sm:$0x3] }
0x1aa4   :  { %v2168_v54 = vadd.f32 %v2167_v52, %v2166_v53 }
0x1aa5   :  { %v2131_v56 = vpop.permute.xlu0 %2130 }
0x1aa6   :  { %v2133_v57 = vadd.f32 %v3802_v38, %v2131_v56  ;;  %2176 = vrot.lane.b32.xlu1 %v2168_v54, %s4500_s29 }
0x1aa8   :  { %4384 = vtanh.f32 %v2133_v57 }
0x1ab2   :  { %v4385_v58 = vpop.eup %4384 }
0x1ab3   :  { %2137 = vrot.lane.b32.xlu0 %v4385_v58, %s4500_s29 }
0x1b18   :  { %v2177_v59 = vpop.permute.xlu1 %2176 }
0x1b19   :  { %2180 = vst.msk [vmem:[#allocation3 + $0xc] sm:$0x3] %vm265_vm2, %v2177_v59  ;;  %4091 = vmatmul.mubr.msk.f32.vlgmr.msra.gmra.mrb[20].mxu1 %vm50_vm1, %v2177_v59 }
0x1b1a   :  { %4234 = vmatpush3.bf16.msra.mxu1 %v4560_v4  ;;  %4104 = vmatprep.mubr.msk.f32.mxu1 %vm4495_vm0, %v4496_v3 }
0x1b1b   :  { %4238 = vmatprep.subr.bf16.mxu1 %v4494_v0 }
0x1b25   :  { %v2138_v61 = vpop.permute.xlu0 %2137 }
0x1b26   :  { %v2140_v63 = vmul.f32 %v2138_v61, %v2135_v60 }
0x1b28   :  { %v2142_v1 = vadd.f32 %v2141_v62, %v2140_v63  ;;  %v3814_v62 = vld [vmem:[%s5299_s0 + $0x16] sm:$0x3] }
0x1b2a   :  { %2170 = vrot.lane.b32.xlu1 %v2142_v1, %s4500_s29 }
0x1b9c   :  { %v2171_v2 = vpop.permute.xlu1 %2170 }
0x1b9d   :  { %2174 = vst.msk [vmem:[#allocation2 + $0x12] sm:$0x3] %vm265_vm2, %v2171_v2  ;;  %4084 = vmatmul.mubr.msk.f32.vlgmr.msra.gmra.mrb[20].mxu0 %vm50_vm1, %v2171_v2 }
0x1b9e   :  { %4231 = vmatpush3.bf16.msra.mxu0 %v4571_v7  ;;  %4097 = vmatprep.mubr.msk.f32.mxu0 %vm4495_vm0, %v4496_v3 }
0x1b9f   :  { %4235 = vmatprep.subr.bf16.mxu0 %v4494_v0 }
0x1bec   :  { %v2325_v5 = vpop.f32.mrb[20].mxu1 }
0x1bed   :  { %v2326_v6 = vadd.f32 %v4846_v43, %v2325_v5  ;;  %v4092_v8 = vpop.f32.mrb[21].mxu1 }
0x1bef   :  { %2363 = vrot.lane.b32.xlu0 %v2326_v6, %s4497_s22  ;;  %v2355_v12 = vadd.f32 %v3809_v9, %v2326_v6 }
0x1bf1   :  { %v3813_v13 = vmul.f32 -1.442695, %v2355_v12 }
0x1bf3   :  { %4386 = vpow2.f32 %v3813_v13 }
0x1bfd   :  { %v4387_v14 = vpop.eup %4386 }
0x1bfe   :  { %v2359_v15 = vadd.f32 1.0, %v4387_v14 }
0x1c00   :  { %4388 = vrcp.f32 %v2359_v15 }
0x1c0a   :  { %v4389_v10 = vpop.eup %4388 }
0x1c0b   :  { %v2373_v31 = vsub.f32 1.0, %v4389_v10  ;;  %v2379_v33 = vmul.f32 %v4389_v10, %v2168_v54 }
0x1c61   :  { %v2364_v16 = vpop.permute.xlu0 %2363 }
0x1c62   :  { %v2366_v17 = vmul.f32 %v4389_v10, %v2364_v16 }
0x1c64   :  { %2368 = vrot.lane.b32.xlu1 %v2366_v17, %s4498_s25 }
0x1c70   :  { %v2253_v18 = vpop.f32.mrb[20].mxu0 }
0x1c71   :  { %v2254_v19 = vadd.f32 %v4857_v55, %v2253_v18  ;;  %v4085_v20 = vpop.f32.mrb[21].mxu0 }
0x1c73   :  { %2337 = vrot.lane.b32.xlu0 %v2254_v19, %s4497_s22  ;;  %v2329_v22 = vadd.f32 %v3808_v21, %v2254_v19 }
0x1c75   :  { %v3812_v23 = vmul.f32 -1.442695, %v2329_v22 }
0x1c77   :  { %4390 = vpow2.f32 %v3812_v23 }
0x1c81   :  { %v4391_v24 = vpop.eup %4390 }
0x1c82   :  { %v2333_v25 = vadd.f32 1.0, %v4391_v24 }
0x1cd6   :  { %v2369_v11 = vpop.permute.xlu1 %2368 }
0x1cd7   :  { %v2371_v26 = vadd.f32 %v3809_v9, %v2369_v11 }
0x1cd9   :  { %4392 = vtanh.f32 %v2371_v26 }
0x1cda   :  { %4394 = vrcp.f32 %v2333_v25 }
0x1ce3   :  { %v4393_v27 = vpop.eup %4392 }
0x1ce4   :  { %2375 = vrot.lane.b32.xlu1 %v4393_v27, %s4500_s29  ;;  %v4395_v28 = vpop.eup %4394 }
0x1ce5   :  { %v2338_v29 = vpop.permute.xlu0 %2337  ;;  %v2347_v40 = vsub.f32 1.0, %v4395_v28  ;;  %v2353_v42 = vmul.f32 %v4395_v28, %v2142_v1 }
0x1ce6   :  { %v2340_v30 = vmul.f32 %v4395_v28, %v2338_v29 }
0x1ce8   :  { %2342 = vrot.lane.b32.xlu0 %v2340_v30, %s4498_s25 }
0x1d56   :  { %v2376_v32 = vpop.permute.xlu1 %2375 }
0x1d57   :  { %v2378_v34 = vmul.f32 %v2376_v32, %v2373_v31  ;;  %v3821_v31 = vld [vmem:[%s5298_s1 + $0x6] sm:$0x3] }
0x1d59   :  { %v2380_v35 = vadd.f32 %v2379_v33, %v2378_v34 }
0x1d5a   :  { %v2343_v36 = vpop.permute.xlu0 %2342 }
0x1d5b   :  { %v2345_v37 = vadd.f32 %v3808_v21, %v2343_v36  ;;  %2388 = vrot.lane.b32.xlu1 %v2380_v35, %s4500_s29 }
0x1d5d   :  { %4396 = vtanh.f32 %v2345_v37 }
0x1d67   :  { %v4397_v38 = vpop.eup %4396 }
0x1d68   :  { %2349 = vrot.lane.b32.xlu0 %v4397_v38, %s4500_s29 }
0x1dcd   :  { %v2389_v39 = vpop.permute.xlu1 %2388 }
0x1dce   :  { %2392 = vst.msk [vmem:[#allocation3 + $0xa] sm:$0x3] %vm265_vm2, %v2389_v39  ;;  %4105 = vmatmul.mubr.msk.f32.vlgmr.msra.gmra.mrb[22].mxu1 %vm50_vm1, %v2389_v39 }
0x1dcf   :  { %4240 = vmatpush3.bf16.msra.mxu1 %v4560_v4  ;;  %4118 = vmatprep.mubr.msk.f32.mxu1 %vm4495_vm0, %v4496_v3 }
0x1dd0   :  { %4244 = vmatprep.subr.bf16.mxu1 %v4494_v0 }
0x1dda   :  { %v2350_v41 = vpop.permute.xlu0 %2349 }
0x1ddb   :  { %v2352_v44 = vmul.f32 %v2350_v41, %v2347_v40 }
0x1ddd   :  { %v2354_v45 = vadd.f32 %v2353_v42, %v2352_v44  ;;  %v3820_v42 = vld [vmem:[%s5299_s0 + $0x18] sm:$0x3] }
0x1ddf   :  { %2382 = vrot.lane.b32.xlu1 %v2354_v45, %s4500_s29 }
0x1e51   :  { %v2383_v46 = vpop.permute.xlu1 %2382 }
0x1e52   :  { %2386 = vst.msk [vmem:[#allocation2 + $0x14] sm:$0x3] %vm265_vm2, %v2383_v46  ;;  %4098 = vmatmul.mubr.msk.f32.vlgmr.msra.gmra.mrb[22].mxu0 %vm50_vm1, %v2383_v46 }
0x1e53   :  { %4237 = vmatpush3.bf16.msra.mxu0 %v4571_v7  ;;  %4111 = vmatprep.mubr.msk.f32.mxu0 %vm4495_vm0, %v4496_v3 }
0x1e54   :  { %4241 = vmatprep.subr.bf16.mxu0 %v4494_v0 }
0x1ea1   :  { %v2537_v47 = vpop.f32.mrb[22].mxu1 }
0x1ea2   :  { %v2538_v48 = vadd.f32 %v4846_v43, %v2537_v47  ;;  %v4106_v49 = vpop.f32.mrb[23].mxu1 }
0x1ea4   :  { %2575 = vrot.lane.b32.xlu0 %v2538_v48, %s4497_s22  ;;  %v2567_v51 = vadd.f32 %v3815_v50, %v2538_v48 }
0x1ea6   :  { %v3819_v52 = vmul.f32 -1.442695, %v2567_v51 }
0x1ea8   :  { %4398 = vpow2.f32 %v3819_v52 }
0x1eb2   :  { %v4399_v53 = vpop.eup %4398 }
0x1eb3   :  { %v2571_v54 = vadd.f32 1.0, %v4399_v53 }
0x1eb5   :  { %4400 = vrcp.f32 %v2571_v54 }
0x1ebf   :  { %v4401_v56 = vpop.eup %4400 }
0x1ec0   :  { %v2585_v15 = vsub.f32 1.0, %v4401_v56  ;;  %v2591_v16 = vmul.f32 %v4401_v56, %v2380_v35 }
0x1f16   :  { %v2576_v57 = vpop.permute.xlu0 %2575 }
0x1f17   :  { %v2578_v58 = vmul.f32 %v4401_v56, %v2576_v57 }
0x1f19   :  { %2580 = vrot.lane.b32.xlu1 %v2578_v58, %s4498_s25 }
0x1f25   :  { %v2465_v59 = vpop.f32.mrb[22].mxu0 }
0x1f26   :  { %v2466_v60 = vadd.f32 %v4857_v55, %v2465_v59  ;;  %v4099_v61 = vpop.f32.mrb[23].mxu0 }
0x1f28   :  { %2549 = vrot.lane.b32.xlu0 %v2466_v60, %s4497_s22  ;;  %v2541_v63 = vadd.f32 %v3814_v62, %v2466_v60 }
0x1f2a   :  { %v3818_v1 = vmul.f32 -1.442695, %v2541_v63 }
0x1f2c   :  { %4402 = vpow2.f32 %v3818_v1 }
0x1f36   :  { %v4403_v2 = vpop.eup %4402 }
0x1f37   :  { %v2545_v6 = vadd.f32 1.0, %v4403_v2 }
0x1f8b   :  { %v2581_v5 = vpop.permute.xlu1 %2580 }
0x1f8c   :  { %v2583_v8 = vadd.f32 %v3815_v50, %v2581_v5 }
0x1f8e   :  { %4404 = vtanh.f32 %v2583_v8 }
0x1f8f   :  { %4406 = vrcp.f32 %v2545_v6 }
0x1f98   :  { %v4405_v9 = vpop.eup %4404 }
0x1f99   :  { %2587 = vrot.lane.b32.xlu1 %v4405_v9, %s4500_s29  ;;  %v4407_v12 = vpop.eup %4406 }
0x1f9a   :  { %v2550_v13 = vpop.permute.xlu0 %2549  ;;  %v2559_v23 = vsub.f32 1.0, %v4407_v12  ;;  %v2565_v11 = vmul.f32 %v4407_v12, %v2354_v45 }
0x1f9b   :  { %v2552_v14 = vmul.f32 %v4407_v12, %v2550_v13 }
0x1f9d   :  { %2554 = vrot.lane.b32.xlu0 %v2552_v14, %s4498_s25 }
0x200b   :  { %v2588_v10 = vpop.permute.xlu1 %2587 }
0x200c   :  { %v2590_v17 = vmul.f32 %v2588_v10, %v2585_v15  ;;  %v3827_v15 = vld [vmem:[%s5298_s1 + $0x4] sm:$0x3] }
0x200e   :  { %v2592_v18 = vadd.f32 %v2591_v16, %v2590_v17 }
0x200f   :  { %v2555_v19 = vpop.permute.xlu0 %2554 }
0x2010   :  { %v2557_v20 = vadd.f32 %v3814_v62, %v2555_v19  ;;  %2600 = vrot.lane.b32.xlu1 %v2592_v18, %s4500_s29 }
0x2012   :  { %4408 = vtanh.f32 %v2557_v20 }
0x201c   :  { %v4409_v21 = vpop.eup %4408 }
0x201d   :  { %2561 = vrot.lane.b32.xlu0 %v4409_v21, %s4500_s29 }
0x2082   :  { %v2601_v22 = vpop.permute.xlu1 %2600 }
0x2083   :  { %2604 = vst.msk [vmem:[#allocation3 + $0x8] sm:$0x3] %vm265_vm2, %v2601_v22  ;;  %4119 = vmatmul.mubr.msk.f32.vlgmr.msra.gmra.mrb[24].mxu1 %vm50_vm1, %v2601_v22 }
0x2084   :  { %4246 = vmatpush3.bf16.msra.mxu1 %v4560_v4  ;;  %4132 = vmatprep.mubr.msk.f32.mxu1 %vm4495_vm0, %v4496_v3 }
0x2085   :  { %4250 = vmatprep.subr.bf16.mxu1 %v4494_v0 }
0x208f   :  { %v2562_v24 = vpop.permute.xlu0 %2561 }
0x2090   :  { %v2564_v25 = vmul.f32 %v2562_v24, %v2559_v23  ;;  %v3826_v24 = vld [vmem:[%s5299_s0 + $0x1a] sm:$0x3] }
0x2092   :  { %v2566_v26 = vadd.f32 %v2565_v11, %v2564_v25 }
0x2094   :  { %2594 = vrot.lane.b32.xlu1 %v2566_v26, %s4500_s29 }
0x2106   :  { %v2595_v27 = vpop.permute.xlu1 %2594 }
0x2107   :  { %2598 = vst.msk [vmem:[#allocation2 + $0x16] sm:$0x3] %vm265_vm2, %v2595_v27  ;;  %4112 = vmatmul.mubr.msk.f32.vlgmr.msra.gmra.mrb[24].mxu0 %vm50_vm1, %v2595_v27 }
0x2108   :  { %4243 = vmatpush3.bf16.msra.mxu0 %v4571_v7  ;;  %4125 = vmatprep.mubr.msk.f32.mxu0 %vm4495_vm0, %v4496_v3 }
0x2109   :  { %4247 = vmatprep.subr.bf16.mxu0 %v4494_v0 }
0x2156   :  { %v2749_v28 = vpop.f32.mrb[24].mxu1 }
0x2157   :  { %v2750_v29 = vadd.f32 %v4846_v43, %v2749_v28  ;;  %v4120_v30 = vpop.f32.mrb[25].mxu1 }
0x2159   :  { %2787 = vrot.lane.b32.xlu0 %v2750_v29, %s4497_s22  ;;  %v2779_v32 = vadd.f32 %v3821_v31, %v2750_v29 }
0x215b   :  { %v3825_v33 = vmul.f32 -1.442695, %v2779_v32 }
0x215d   :  { %4410 = vpow2.f32 %v3825_v33 }
0x2167   :  { %v4411_v34 = vpop.eup %4410 }
0x2168   :  { %v2783_v35 = vadd.f32 1.0, %v4411_v34 }
0x216a   :  { %4412 = vrcp.f32 %v2783_v35 }
0x2174   :  { %v4413_v36 = vpop.eup %4412 }
0x2175   :  { %v2797_v54 = vsub.f32 1.0, %v4413_v36  ;;  %v2803_v57 = vmul.f32 %v4413_v36, %v2592_v18 }
0x21cb   :  { %v2788_v37 = vpop.permute.xlu0 %2787 }
0x21cc   :  { %v2790_v38 = vmul.f32 %v4413_v36, %v2788_v37 }
0x21ce   :  { %2792 = vrot.lane.b32.xlu1 %v2790_v38, %s4498_s25 }
0x21da   :  { %v2677_v39 = vpop.f32.mrb[24].mxu0 }
0x21db   :  { %v2678_v40 = vadd.f32 %v4857_v55, %v2677_v39  ;;  %v4113_v41 = vpop.f32.mrb[25].mxu0 }
0x21dd   :  { %2761 = vrot.lane.b32.xlu0 %v2678_v40, %s4497_s22  ;;  %v2753_v44 = vadd.f32 %v3820_v42, %v2678_v40 }
0x21df   :  { %v3824_v45 = vmul.f32 -1.442695, %v2753_v44 }
0x21e1   :  { %4414 = vpow2.f32 %v3824_v45 }
0x21eb   :  { %v4415_v46 = vpop.eup %4414 }
0x21ec   :  { %v2757_v48 = vadd.f32 1.0, %v4415_v46 }
0x2240   :  { %v2793_v47 = vpop.permute.xlu1 %2792 }
0x2241   :  { %v2795_v49 = vadd.f32 %v3821_v31, %v2793_v47 }
0x2243   :  { %4416 = vtanh.f32 %v2795_v49 }
0x2244   :  { %4418 = vrcp.f32 %v2757_v48 }
0x224d   :  { %v4417_v50 = vpop.eup %4416 }
0x224e   :  { %2799 = vrot.lane.b32.xlu1 %v4417_v50, %s4500_s29  ;;  %v4419_v51 = vpop.eup %4418 }
0x224f   :  { %v2762_v52 = vpop.permute.xlu0 %2761  ;;  %v2771_v1 = vsub.f32 1.0, %v4419_v51  ;;  %v2777_v5 = vmul.f32 %v4419_v51, %v2566_v26 }
0x2250   :  { %v2764_v53 = vmul.f32 %v4419_v51, %v2762_v52  ;;  %v3833_v52 = vld [vmem:[%s5298_s1 + $0x2] sm:$0x3] }
0x2252   :  { %2766 = vrot.lane.b32.xlu0 %v2764_v53, %s4498_s25 }
0x22c0   :  { %v2800_v56 = vpop.permute.xlu1 %2799 }
0x22c1   :  { %v2802_v58 = vmul.f32 %v2800_v56, %v2797_v54 }
0x22c3   :  { %v2804_v59 = vadd.f32 %v2803_v57, %v2802_v58 }
0x22c4   :  { %v2767_v60 = vpop.permute.xlu0 %2766 }
0x22c5   :  { %v2769_v61 = vadd.f32 %v3820_v42, %v2767_v60  ;;  %2812 = vrot.lane.b32.xlu1 %v2804_v59, %s4500_s29 }
0x22c7   :  { %4420 = vtanh.f32 %v2769_v61 }
0x22d1   :  { %v4421_v62 = vpop.eup %4420 }
0x22d2   :  { %2773 = vrot.lane.b32.xlu0 %v4421_v62, %s4500_s29  ;;  %v3832_v62 = vld [vmem:[%s5299_s0 + $0x1c] sm:$0x3] }
0x2337   :  { %v2813_v63 = vpop.permute.xlu1 %2812 }
0x2338   :  { %2816 = vst.msk [vmem:[#allocation3 + $0x6] sm:$0x3] %vm265_vm2, %v2813_v63  ;;  %4133 = vmatmul.mubr.msk.f32.vlgmr.msra.gmra.mrb[26].mxu1 %vm50_vm1, %v2813_v63 }
0x2339   :  { %4252 = vmatpush3.bf16.msra.mxu1 %v4560_v4  ;;  %4146 = vmatprep.mubr.msk.f32.mxu1 %vm4495_vm0, %v4496_v3 }
0x233a   :  { %4256 = vmatprep.subr.bf16.mxu1 %v4494_v0 }
0x2344   :  { %v2774_v2 = vpop.permute.xlu0 %2773 }
0x2345   :  { %v2776_v6 = vmul.f32 %v2774_v2, %v2771_v1 }
0x2347   :  { %v2778_v8 = vadd.f32 %v2777_v5, %v2776_v6 }
0x2349   :  { %2806 = vrot.lane.b32.xlu1 %v2778_v8, %s4500_s29 }
0x23bb   :  { %v2807_v9 = vpop.permute.xlu1 %2806 }
0x23bc   :  { %2810 = vst.msk [vmem:[#allocation2 + $0x18] sm:$0x3] %vm265_vm2, %v2807_v9  ;;  %4126 = vmatmul.mubr.msk.f32.vlgmr.msra.gmra.mrb[26].mxu0 %vm50_vm1, %v2807_v9 }
0x23bd   :  { %4249 = vmatpush3.bf16.msra.mxu0 %v4571_v7  ;;  %4139 = vmatprep.mubr.msk.f32.mxu0 %vm4495_vm0, %v4496_v3 }
0x23be   :  { %4253 = vmatprep.subr.bf16.mxu0 %v4494_v0 }
0x240b   :  { %v2961_v12 = vpop.f32.mrb[26].mxu1 }
0x240c   :  { %v2962_v13 = vadd.f32 %v4846_v43, %v2961_v12  ;;  %v4134_v14 = vpop.f32.mrb[27].mxu1 }
0x240e   :  { %2999 = vrot.lane.b32.xlu0 %v2962_v13, %s4497_s22  ;;  %v2991_v10 = vadd.f32 %v3827_v15, %v2962_v13 }
0x2410   :  { %v3831_v16 = vmul.f32 -1.442695, %v2991_v10 }
0x2412   :  { %4422 = vpow2.f32 %v3831_v16 }
0x241c   :  { %v4423_v17 = vpop.eup %4422 }
0x241d   :  { %v2995_v18 = vadd.f32 1.0, %v4423_v17 }
0x241f   :  { %4424 = vrcp.f32 %v2995_v18 }
0x2429   :  { %v4425_v19 = vpop.eup %4424 }
0x242a   :  { %v3009_v34 = vsub.f32 1.0, %v4425_v19  ;;  %v3015_v36 = vmul.f32 %v4425_v19, %v2804_v59 }
0x2480   :  { %v3000_v20 = vpop.permute.xlu0 %2999 }
0x2481   :  { %v3002_v21 = vmul.f32 %v4425_v19, %v3000_v20 }
0x2483   :  { %3004 = vrot.lane.b32.xlu1 %v3002_v21, %s4498_s25 }
0x248f   :  { %v2889_v0 = vpop.f32.mrb[26].mxu0 }
0x2490   :  { %v2890_v22 = vadd.f32 %v4857_v55, %v2889_v0  ;;  %v4127_v23 = vpop.f32.mrb[27].mxu0 }
0x2492   :  { %2973 = vrot.lane.b32.xlu0 %v2890_v22, %s4497_s22  ;;  %v2965_v11 = vadd.f32 %v3826_v24, %v2890_v22 }
0x2494   :  { %v3830_v25 = vmul.f32 -1.442695, %v2965_v11 }
0x2496   :  { %4426 = vpow2.f32 %v3830_v25 }
0x24a0   :  { %v4427_v26 = vpop.eup %4426 }
0x24a1   :  { %v2969_v28 = vadd.f32 1.0, %v4427_v26 }
0x24f5   :  { %v3005_v27 = vpop.permute.xlu1 %3004 }
0x24f6   :  { %v3007_v29 = vadd.f32 %v3827_v15, %v3005_v27 }
0x24f8   :  { %4428 = vtanh.f32 %v3007_v29 }
0x24f9   :  { %4430 = vrcp.f32 %v2969_v28 }
0x2502   :  { %v4429_v30 = vpop.eup %4428 }
0x2503   :  { %3011 = vrot.lane.b32.xlu1 %v4429_v30, %s4500_s29  ;;  %v4431_v31 = vpop.eup %4430  ;;  %v3243_v30 = vld [vmem:[%s5298_s1] sm:$0x3] }
0x2504   :  { %v2974_v32 = vpop.permute.xlu0 %2973  ;;  %v2983_v44 = vsub.f32 1.0, %v4431_v31  ;;  %v2989_v46 = vmul.f32 %v4431_v31, %v2778_v8 }
0x2505   :  { %v2976_v33 = vmul.f32 %v4431_v31, %v2974_v32 }
0x2507   :  { %2978 = vrot.lane.b32.xlu0 %v2976_v33, %s4498_s25 }
0x2575   :  { %v3012_v35 = vpop.permute.xlu1 %3011 }
0x2576   :  { %v3014_v37 = vmul.f32 %v3012_v35, %v3009_v34 }
0x2578   :  { %v3016_v38 = vadd.f32 %v3015_v36, %v3014_v37 }
0x2579   :  { %v2979_v39 = vpop.permute.xlu0 %2978 }
0x257a   :  { %v2981_v40 = vadd.f32 %v3826_v24, %v2979_v39  ;;  %3024 = vrot.lane.b32.xlu1 %v3016_v38, %s4500_s29 }
0x257c   :  { %4432 = vtanh.f32 %v2981_v40  ;;  %v3838_v40 = vld [vmem:[%s5299_s0 + $0x1e] sm:$0x3] }
0x2586   :  { %v4433_v41 = vpop.eup %4432 }
0x2587   :  { %2985 = vrot.lane.b32.xlu0 %v4433_v41, %s4500_s29 }
0x25ec   :  { %v3025_v42 = vpop.permute.xlu1 %3024 }
0x25ed   :  { %3028 = vst.msk [vmem:[#allocation3 + $0x4] sm:$0x3] %vm265_vm2, %v3025_v42  ;;  %4147 = vmatmul.mubr.msk.f32.vlgmr.msra.gmra.mrb[28].mxu1 %vm50_vm1, %v3025_v42 }
0x25ee   :  { %4258 = vmatpush3.bf16.msra.mxu1 %v4560_v4  ;;  %4160 = vmatprep.mubr.msk.f32.mxu1 %vm4495_vm0, %v4496_v3 }
0x25f9   :  { %v2986_v45 = vpop.permute.xlu0 %2985 }
0x25fa   :  { %v2988_v47 = vmul.f32 %v2986_v45, %v2983_v44 }
0x25fc   :  { %v2990_v48 = vadd.f32 %v2989_v46, %v2988_v47 }
0x25fe   :  { %3018 = vrot.lane.b32.xlu1 %v2990_v48, %s4500_s29 }
0x2670   :  { %v3019_v49 = vpop.permute.xlu1 %3018 }
0x2671   :  { %3022 = vst.msk [vmem:[#allocation2 + $0x1a] sm:$0x3] %vm265_vm2, %v3019_v49  ;;  %4140 = vmatmul.mubr.msk.f32.vlgmr.msra.gmra.mrb[28].mxu0 %vm50_vm1, %v3019_v49 }
0x2672   :  { %4255 = vmatpush3.bf16.msra.mxu0 %v4571_v7  ;;  %4153 = vmatprep.mubr.msk.f32.mxu0 %vm4495_vm0, %v4496_v3 }
0x26c0   :  { %v3173_v4 = vpop.f32.mrb[28].mxu1 }
0x26c1   :  { %v3174_v50 = vadd.f32 %v4846_v43, %v3173_v4  ;;  %v4148_v51 = vpop.f32.mrb[29].mxu1 }
0x26c3   :  { %3211 = vrot.lane.b32.xlu0 %v3174_v50, %s4497_s22  ;;  %v3203_v53 = vadd.f32 %v3833_v52, %v3174_v50 }
0x26c5   :  { %v3837_v54 = vmul.f32 -1.442695, %v3203_v53 }
0x26c7   :  { %4434 = vpow2.f32 %v3837_v54 }
0x26d1   :  { %v4435_v56 = vpop.eup %4434 }
0x26d2   :  { %v3207_v57 = vadd.f32 1.0, %v4435_v56 }
0x26d4   :  { %4436 = vrcp.f32 %v3207_v57 }
0x26de   :  { %v4437_v7 = vpop.eup %4436 }
0x26df   :  { %v3221_v15 = vsub.f32 1.0, %v4437_v7  ;;  %v3227_v16 = vmul.f32 %v4437_v7, %v3016_v38 }
0x2735   :  { %v3212_v58 = vpop.permute.xlu0 %3211 }
0x2736   :  { %v3214_v59 = vmul.f32 %v4437_v7, %v3212_v58  ;;  %v3469_v7 = vld [vmem:[#allocation3 + $0x4] sm:$0x3] }
0x2738   :  { %3216 = vrot.lane.b32.xlu1 %v3214_v59, %s4498_s25 }
0x2744   :  { %v3101_v3 = vpop.f32.mrb[28].mxu0 }
0x2745   :  { %v3102_v60 = vadd.f32 %v4857_v55, %v3101_v3  ;;  %v4141_v61 = vpop.f32.mrb[29].mxu0  ;;  %v3470_v3 = vld [vmem:[#allocation3 + $0x6] sm:$0x3] }
0x2746   :  { %v3474_v61 = vld [vmem:[#allocation3 + $0xe] sm:$0x3] }
0x2747   :  { %3185 = vrot.lane.b32.xlu0 %v3102_v60, %s4497_s22  ;;  %v3177_v63 = vadd.f32 %v3832_v62, %v3102_v60  ;;  %v3472_v60 = vld [vmem:[#allocation3 + $0xa] sm:$0x3] }
0x2749   :  { %v3836_v1 = vmul.f32 -1.442695, %v3177_v63 }
0x274b   :  { %4438 = vpow2.f32 %v3836_v1 }
0x2755   :  { %v4439_v2 = vpop.eup %4438 }
0x2756   :  { %v3181_v6 = vadd.f32 1.0, %v4439_v2 }
0x27aa   :  { %v3217_v5 = vpop.permute.xlu1 %3216 }
0x27ab   :  { %v3219_v8 = vadd.f32 %v3833_v52, %v3217_v5  ;;  %v3471_v5 = vld [vmem:[#allocation3 + $0x8] sm:$0x3] }
0x27ad   :  { %4440 = vtanh.f32 %v3219_v8 }
0x27ae   :  { %4442 = vrcp.f32 %v3181_v6 }
0x27b7   :  { %v4441_v9 = vpop.eup %4440 }
0x27b8   :  { %3223 = vrot.lane.b32.xlu1 %v4441_v9, %s4500_s29  ;;  %v4443_v12 = vpop.eup %4442 }
0x27b9   :  { %v3186_v13 = vpop.permute.xlu0 %3185  ;;  %v3195_v22 = vsub.f32 1.0, %v4443_v12  ;;  %v3201_v24 = vmul.f32 %v4443_v12, %v2990_v48 }
0x27ba   :  { %v3188_v14 = vmul.f32 %v4443_v12, %v3186_v13  ;;  %v3473_v13 = vld [vmem:[#allocation3 + $0xc] sm:$0x3] }
0x27bc   :  { %3190 = vrot.lane.b32.xlu0 %v3188_v14, %s4498_s25  ;;  %v3475_v14 = vld [vmem:[#allocation3 + $0x10] sm:$0x3] }
0x282a   :  { %v3224_v10 = vpop.permute.xlu1 %3223 }
0x282b   :  { %v3226_v17 = vmul.f32 %v3224_v10, %v3221_v15  ;;  %v3479_v15 = vld [vmem:[#allocation3 + $0x18] sm:$0x3]  ;;  %v3477_v10 = vld [vmem:[#allocation3 + $0x14] sm:$0x3] }
0x282d   :  { %v3228_v18 = vadd.f32 %v3227_v16, %v3226_v17  ;;  %v3481_v16 = vld [vmem:[#allocation3 + $0x1c] sm:$0x3]  ;;  %v3478_v17 = vld [vmem:[#allocation3 + $0x16] sm:$0x3] }
0x282e   :  { %v3191_v19 = vpop.permute.xlu0 %3190 }
0x282f   :  { %v3193_v20 = vadd.f32 %v3832_v62, %v3191_v19  ;;  %3236 = vrot.lane.b32.xlu1 %v3228_v18, %s4500_s29  ;;  %v3476_v62 = vld [vmem:[#allocation3 + $0x12] sm:$0x3]  ;;  %v3482_v19 = vld [vmem:[#allocation3 + $0x1e] sm:$0x3] }
0x2831   :  { %4444 = vtanh.f32 %v3193_v20 }
0x283b   :  { %v4445_v21 = vpop.eup %4444 }
0x283c   :  { %3197 = vrot.lane.b32.xlu0 %v4445_v21, %s4500_s29 }
0x28a1   :  { %v3237_v0 = vpop.permute.xlu1 %3236 }
0x28a2   :  { %3240 = vst.msk [vmem:[#allocation3 + $0x2] sm:$0x3] %vm265_vm2, %v3237_v0  ;;  %4161 = vmatmul.mubr.msk.f32.vlgmr.msra.gmra.mrb[30].mxu1 %vm50_vm1, %v3237_v0 }
0x28a9   :  { %v3468_v59 = vld [vmem:[#allocation3 + $0x2] sm:$0x3] }
0x28ae   :  { %v3198_v23 = vpop.permute.xlu0 %3197 }
0x28af   :  { %v3200_v11 = vmul.f32 %v3198_v23, %v3195_v22  ;;  %v3452_v23 = vld [vmem:[#allocation2 + $0x2] sm:$0x3] }
0x28b1   :  { %v5038_v25 = vadd.f32 %v3201_v24, %v3200_v11  ;;  %v3453_v11 = vld [vmem:[#allocation2 + $0x4] sm:$0x3] }
0x28b3   :  { %3230 = vrot.lane.b32.xlu1 %v5038_v25, %s4500_s29 }
0x2925   :  { %v3231_v26 = vpop.permute.xlu1 %3230 }
0x2926   :  { %3234 = vst.msk [vmem:[#allocation2 + $0x1c] sm:$0x3] %vm265_vm2, %v3231_v26  ;;  %4154 = vmatmul.mubr.msk.f32.vlgmr.msra.gmra.mrb[30].mxu0 %vm50_vm1, %v3231_v26 }
0x2975   :  { %v3384_v27 = vpop.f32.mrb[30].mxu1 }
0x2976   :  { %v3385_v28 = vadd.f32 %v4846_v43, %v3384_v27  ;;  %v4162_v29 = vpop.f32.mrb[31].mxu1 }
0x2977   :  { %v3451_v29 = vld [vmem:[#allocation2] sm:$0x3] }
0x2978   :  { %3422 = vrot.lane.b32.xlu0 %v3385_v28, %s4497_s22  ;;  %v3414_v31 = vadd.f32 %v3385_v28, %v3243_v30  ;;  %v3454_v28 = vld [vmem:[#allocation2 + $0x6] sm:$0x3] }
0x297a   :  { %v3842_v32 = vmul.f32 -1.442695, %v3414_v31 }
0x297c   :  { %4446 = vpow2.f32 %v3842_v32 }
0x2986   :  { %v4447_v33 = vpop.eup %4446 }
0x2987   :  { %v3418_v34 = vadd.f32 1.0, %v4447_v33 }
0x2989   :  { %4448 = vrcp.f32 %v3418_v34 }
0x2993   :  { %v4449_v35 = vpop.eup %4448 }
0x2994   :  { %v3432_v50 = vsub.f32 1.0, %v4449_v35  ;;  %v3438_v52 = vmul.f32 %v4449_v35, %v3228_v18  ;;  %v3480_v18 = vld [vmem:[#allocation3 + $0x1a] sm:$0x3] }
0x29ea   :  { %v3423_v36 = vpop.permute.xlu0 %3422 }
0x29eb   :  { %v3425_v37 = vmul.f32 %v4449_v35, %v3423_v36 }
0x29ed   :  { %3427 = vrot.lane.b32.xlu1 %v3425_v37, %s4498_s25 }
0x29f9   :  { %v3312_v38 = vpop.f32.mrb[30].mxu0 }
0x29fa   :  { %v3313_v43 = vadd.f32 %v4857_v55, %v3312_v38  ;;  %v4155_v39 = vpop.f32.mrb[31].mxu0  ;;  %v3455_v38 = vld [vmem:[#allocation2 + $0x8] sm:$0x3] }
0x29fc   :  { %3396 = vrot.lane.b32.xlu0 %v3313_v43, %s4497_s22  ;;  %v3388_v41 = vadd.f32 %v3838_v40, %v3313_v43 }
0x29fe   :  { %v3841_v42 = vmul.f32 -1.442695, %v3388_v41  ;;  %v3456_v41 = vld [vmem:[#allocation2 + $0xa] sm:$0x3] }
0x2a00   :  { %4450 = vpow2.f32 %v3841_v42 }
0x2a0a   :  { %v4451_v44 = vpop.eup %4450 }
0x2a0b   :  { %v3392_v46 = vadd.f32 1.0, %v4451_v44 }
0x2a5f   :  { %v3428_v45 = vpop.permute.xlu1 %3427 }
0x2a60   :  { %v3430_v47 = vadd.f32 %v3428_v45, %v3243_v30 }
0x2a62   :  { %4452 = vtanh.f32 %v3430_v47 }
0x2a63   :  { %4454 = vrcp.f32 %v3392_v46 }
0x2a6c   :  { %v4453_v48 = vpop.eup %4452 }
0x2a6d   :  { %3434 = vrot.lane.b32.xlu1 %v4453_v48, %s4500_s29  ;;  %v4455_v55 = vpop.eup %4454 }
0x2a6e   :  { %v3397_v49 = vpop.permute.xlu0 %3396  ;;  %v3406_v2 = vsub.f32 1.0, %v4455_v55  ;;  %v3412_v8 = vmul.f32 %v4455_v55, %v5038_v25 }
0x2a6f   :  { %v3399_v4 = vmul.f32 %v4455_v55, %v3397_v49 }
0x2a71   :  { %3401 = vrot.lane.b32.xlu0 %v3399_v4, %s4498_s25 }
0x2adf   :  { %v3435_v51 = vpop.permute.xlu1 %3434 }
0x2ae0   :  { %v3437_v53 = vmul.f32 %v3435_v51, %v3432_v50 }
0x2ae2   :  { %v3439_v54 = vadd.f32 %v3438_v52, %v3437_v53 }
0x2ae3   :  { %v3402_v56 = vpop.permute.xlu0 %3401 }
0x2ae4   :  { %v3404_v57 = vadd.f32 %v3838_v40, %v3402_v56  ;;  %3447 = vrot.lane.b32.xlu1 %v3439_v54, %s4500_s29  ;;  %v3458_v56 = vld [vmem:[#allocation2 + $0xe] sm:$0x3] }
0x2ae6   :  { %4456 = vtanh.f32 %v3404_v57 }
0x2ae8   :  { %3503 = vrot.lane.b32.xlu1 %v3469_v7, %s4499_s26  ;;  %v3457_v7 = vld [vmem:[#allocation2 + $0xc] sm:$0x3] }
0x2af0   :  { %v4457_v58 = vpop.eup %4456 }
0x2af1   :  { %3408 = vrot.lane.b32.xlu0 %v4457_v58, %s4500_s29 }
0x2af5   :  { %3501 = vrot.lane.b32.xlu0 %v3468_v59, %s4499_s26 }
0x2af9   :  { %3505 = vrot.lane.b32.xlu0 %v3470_v3, %s4499_s26 }
0x2afd   :  { %3509 = vrot.lane.b32.xlu0 %v3472_v60, %s4499_s26 }
0x2b01   :  { %3513 = vrot.lane.b32.xlu0 %v3474_v61, %s4499_s26 }
0x2b05   :  { %3517 = vrot.lane.b32.xlu0 %v3476_v62, %s4499_s26 }
0x2b56   :  { %v3448_v63 = vpop.permute.xlu1 %3447 }
0x2b57   :  { %3450 = vst.msk [vmem:[#allocation3] sm:$0x3] %vm265_vm2, %v3448_v63 }
0x2b5a   :  { %v3504_v22 = vpop.permute.xlu1 %3503 }
0x2b5b   :  { %v5082_v25 = vsel %vm50_vm1, %v3453_v11, %v3504_v22 }
0x2b5c   :  { %v3605_v33 = vmul.f32 %v5082_v25, %v5082_v25  ;;  %v3567_v43 = vsel %vm3563_vm3, %v5082_v25, 0.0 }
0x2b5e   :  { %v3467_v1 = vld [vmem:[#allocation3] sm:$0x3]  ;;  %v3622_v49 = vsel %vm3563_vm3, %v3605_v33, 0.0 }
0x2b5f   :  { %3499 = vrot.lane.b32.xlu1 %v3467_v1, %s4499_s26 }
0x2b63   :  { %v3409_v6 = vpop.permute.xlu0 %3408  ;;  %3507 = vrot.lane.b32.xlu1 %v3471_v5, %s4499_s26 }
0x2b64   :  { %v3411_v9 = vmul.f32 %v3409_v6, %v3406_v2 }
0x2b66   :  { %v3413_v12 = vadd.f32 %v3412_v8, %v3411_v9 }
0x2b67   :  { %3511 = vrot.lane.b32.xlu1 %v3473_v13, %s4499_s26  ;;  %v3502_v20 = vpop.permute.xlu0 %3501 }
0x2b68   :  { %3441 = vrot.lane.b32.xlu0 %v3413_v12, %s4500_s29  ;;  %v5079_v24 = vsel %vm50_vm1, %v3452_v23, %v3502_v20  ;;  %v3460_v12 = vld [vmem:[#allocation2 + $0x12] sm:$0x3] }
0x2b69   :  { %v3604_v27 = vmul.f32 %v5079_v24, %v5079_v24  ;;  %v3565_v34 = vsel %vm3563_vm3, %v5079_v24, 0.0 }
0x2b6b   :  { %3515 = vrot.lane.b32.xlu1 %v3475_v14, %s4499_s26  ;;  %v3506_v21 = vpop.permute.xlu0 %3505  ;;  %v3620_v39 = vsel %vm3563_vm3, %v3604_v27, 0.0  ;;  %v3459_v14 = vld [vmem:[#allocation2 + $0x10] sm:$0x3] }
0x2b6c   :  { %3523 = vrot.lane.b32.xlu0 %v3479_v15, %s4499_s26  ;;  %v5087_v31 = vsel %vm50_vm1, %v3454_v28, %v3506_v21  ;;  %v3461_v28 = vld [vmem:[#allocation2 + $0x14] sm:$0x3] }
0x2b6d   :  { %v3606_v40 = vmul.f32 %v5087_v31, %v5087_v31  ;;  %v3569_v4 = vsel %vm3563_vm3, %v5087_v31, 0.0 }
0x2b6f   :  { %3519 = vrot.lane.b32.xlu1 %v3477_v10, %s4499_s26  ;;  %v3510_v0 = vpop.permute.xlu0 %3509  ;;  %v3624_v53 = vsel %vm3563_vm3, %v3606_v40, 0.0 }
0x2b70   :  { %3527 = vrot.lane.b32.xlu0 %v3481_v16, %s4499_s26  ;;  %v5107_v45 = vsel %vm50_vm1, %v3456_v41, %v3510_v0 }
0x2b71   :  { %v3608_v54 = vmul.f32 %v5107_v45, %v5107_v45  ;;  %v3573_v63 = vsel %vm3563_vm3, %v5107_v45, 0.0 }
0x2b73   :  { %3521 = vrot.lane.b32.xlu1 %v3478_v17, %s4499_s26  ;;  %v3514_v26 = vpop.permute.xlu0 %3513  ;;  %v3628_v8 = vsel %vm3563_vm3, %v3608_v54, 0.0 }
0x2b74   :  { %v5123_v59 = vsel %vm50_vm1, %v3458_v56, %v3514_v26 }
0x2b75   :  { %v3610_v9 = vmul.f32 %v5123_v59, %v5123_v59 }
0x2b77   :  { %3525 = vrot.lane.b32.xlu1 %v3480_v18, %s4499_s26  ;;  %v3518_v46 = vpop.permute.xlu0 %3517  ;;  %v3632_v11 = vsel %vm3563_vm3, %v3610_v9, 0.0 }
0x2b78   :  { %v5140_v10 = vsel %vm50_vm1, %v3460_v12, %v3518_v46  ;;  %v3462_v46 = vld [vmem:[#allocation2 + $0x16] sm:$0x3] }
0x2b79   :  { %v3612_v26 = vmul.f32 %v5140_v10, %v5140_v10 }
0x2b7b   :  { %3529 = vrot.lane.b32.xlu1 %v3482_v19, %s4499_s26  ;;  %v3577_v19 = vsel %vm3563_vm3, %v5123_v59, 0.0  ;;  %v3636_v41 = vsel %vm3563_vm3, %v3612_v26, 0.0 }
0x2bd1   :  { %v3500_v30 = vpop.permute.xlu1 %3499 }
0x2bd2   :  { %v5090_v32 = vsel %vm50_vm1, %v3451_v29, %v3500_v30 }
0x2bd3   :  { %v3564_v35 = vsel %vm3563_vm3, %v5090_v32, 0.0  ;;  %v3603_v36 = vmul.f32 %v5090_v32, %v5090_v32 }
0x2bd4   :  { %v3566_v37 = vadd.f32 %v3565_v34, %v3564_v35  ;;  %v3581_v35 = vsel %vm3563_vm3, %v5140_v10, 0.0 }
0x2bd5   :  { %v3619_v42 = vsel %vm3563_vm3, %v3603_v36, 0.0  ;;  %v3508_v44 = vpop.permute.xlu1 %3507 }
0x2bd6   :  { %v3568_v47 = vadd.f32 %v3567_v43, %v3566_v37  ;;  %v3621_v48 = vadd.f32 %v3620_v39, %v3619_v42  ;;  %v5110_v55 = vsel %vm50_vm1, %v3455_v38, %v3508_v44  ;;  %v3463_v37 = vld [vmem:[#allocation2 + $0x18] sm:$0x3] }
0x2bd7   :  { %v3607_v50 = vmul.f32 %v5110_v55, %v5110_v55  ;;  %v3571_v57 = vsel %vm3563_vm3, %v5110_v55, 0.0 }
0x2bd8   :  { %v3623_v51 = vadd.f32 %v3622_v49, %v3621_v48  ;;  %v3570_v52 = vadd.f32 %v3569_v4, %v3568_v47 }
0x2bd9   :  { %v3512_v58 = vpop.permute.xlu1 %3511  ;;  %v3626_v1 = vsel %vm3563_vm3, %v3607_v50, 0.0 }
0x2bda   :  { %v3625_v3 = vadd.f32 %v3624_v53, %v3623_v51  ;;  %v3572_v60 = vadd.f32 %v3571_v57, %v3570_v52  ;;  %v5126_v61 = vsel %vm50_vm1, %v3457_v7, %v3512_v58  ;;  %v3442_v62 = vpop.permute.xlu0 %3441  ;;  %v3465_v52 = vld [vmem:[#allocation2 + $0x1c] sm:$0x3] }
0x2bdb   :  { %v3609_v2 = vmul.f32 %v5126_v61, %v5126_v61  ;;  %3445 = vst.msk [vmem:[#allocation2 + $0x1e] sm:$0x3] %vm265_vm2, %v3442_v62  ;;  %v3575_v13 = vsel %vm3563_vm3, %v5126_v61, 0.0 }
0x2bdc   :  { %v3627_v5 = vadd.f32 %v3626_v1, %v3625_v3  ;;  %v3574_v6 = vadd.f32 %v3573_v63, %v3572_v60  ;;  %v3464_v60 = vld [vmem:[#allocation2 + $0x1a] sm:$0x3] }
0x2bdd   :  { %v3516_v15 = vpop.permute.xlu1 %3515  ;;  %v3630_v20 = vsel %vm3563_vm3, %v3609_v2, 0.0 }
0x2bde   :  { %v3629_v16 = vadd.f32 %v3628_v8, %v3627_v5  ;;  %v3576_v17 = vadd.f32 %v3575_v13, %v3574_v6  ;;  %v5143_v18 = vsel %vm50_vm1, %v3459_v14, %v3516_v15  ;;  %v3524_v0 = vpop.permute.xlu0 %3523 }
0x2bdf   :  { %v3611_v21 = vmul.f32 %v5143_v18, %v5143_v18  ;;  %v3579_v27 = vsel %vm3563_vm3, %v5143_v18, 0.0  ;;  %v5164_v39 = vsel %vm50_vm1, %v3463_v37, %v3524_v0 }
0x2be0   :  { %v3631_v22 = vadd.f32 %v3630_v20, %v3629_v16  ;;  %v3578_v23 = vadd.f32 %v3577_v19, %v3576_v17  ;;  %v3615_v50 = vmul.f32 %v5164_v39, %v5164_v39  ;;  %v3587_v58 = vsel %vm3563_vm3, %v5164_v39, 0.0 }
0x2be1   :  { %v3520_v29 = vpop.permute.xlu1 %3519  ;;  %v3634_v36 = vsel %vm3563_vm3, %v3611_v21, 0.0 }
0x2be2   :  { %v3633_v30 = vadd.f32 %v3632_v11, %v3631_v22  ;;  %v3580_v33 = vadd.f32 %v3579_v27, %v3578_v23  ;;  %v5156_v34 = vsel %vm50_vm1, %v3461_v28, %v3520_v29  ;;  %v3528_v44 = vpop.permute.xlu0 %3527  ;;  %v3642_v5 = vsel %vm3563_vm3, %v3615_v50, 0.0  ;;  %v3466_v16 = vld [vmem:[#allocation2 + $0x1e] sm:$0x3] }
0x2be3   :  { %v3613_v38 = vmul.f32 %v5156_v34, %v5156_v34  ;;  %v3583_v42 = vsel %vm3563_vm3, %v5156_v34, 0.0  ;;  %v5180_v57 = vsel %vm50_vm1, %v3465_v52, %v3528_v44 }
0x2be4   :  { %v3635_v43 = vadd.f32 %v3634_v36, %v3633_v30  ;;  %v3582_v40 = vadd.f32 %v3581_v35, %v3580_v33  ;;  %v3617_v6 = vmul.f32 %v5180_v57, %v5180_v57  ;;  %v3591_v14 = vsel %vm3563_vm3, %v5180_v57, 0.0 }
0x2be5   :  { %v3522_v47 = vpop.permute.xlu1 %3521  ;;  %v3638_v51 = vsel %vm3563_vm3, %v3613_v38, 0.0 }
0x2be6   :  { %v3637_v48 = vadd.f32 %v3636_v41, %v3635_v43  ;;  %v3584_v49 = vadd.f32 %v3583_v42, %v3582_v40  ;;  %v5170_v4 = vsel %vm50_vm1, %v3462_v46, %v3522_v47  ;;  %v3646_v0 = vsel %vm3563_vm3, %v3617_v6, 0.0 }
0x2be7   :  { %v3585_v53 = vsel %vm3563_vm3, %v5170_v4, 0.0  ;;  %v3614_v54 = vmul.f32 %v5170_v4, %v5170_v4 }
0x2be8   :  { %v3639_v56 = vadd.f32 %v3638_v51, %v3637_v48  ;;  %v3586_v7 = vadd.f32 %v3585_v53, %v3584_v49  ;;  %v3667_v51 = vlaneseq  ;;  %v3657_v53 = vld [vmem:[%s5300_s6] sm:$0x1] }
0x2be9   :  { %v3640_v3 = vsel %vm3563_vm3, %v3614_v54, 0.0  ;;  %v3526_v62 = vpop.permute.xlu1 %3525 }
0x2bea   :  { %v3641_v63 = vadd.f32 %v3640_v3, %v3639_v56  ;;  %v3588_v1 = vadd.f32 %v3587_v58, %v3586_v7  ;;  %v5186_v2 = vsel %vm50_vm1, %v3464_v60, %v3526_v62  ;;  %v3668_v52 = vshrl.u32 %v3667_v51, 7  ;;  %v3663_v58 = vld [vmem:[%s5301_s7] sm:$0x1] }
0x2beb   :  { %v3589_v8 = vsel %vm3563_vm3, %v5186_v2, 0.0  ;;  %v3616_v9 = vmul.f32 %v5186_v2, %v5186_v2 }
0x2bec   :  { %v3643_v12 = vadd.f32 %v3642_v5, %v3641_v63  ;;  %v3590_v13 = vadd.f32 %v3589_v8, %v3588_v1  ;;  %v3669_v56 = vsub.s32 0, %v3668_v52 }
0x2bed   :  { %v3644_v15 = vsel %vm3563_vm3, %v3616_v9, 0.0  ;;  %v3530_v17 = vpop.permute.xlu1 %3529 }
0x2bee   :  { %v3645_v19 = vadd.f32 %v3644_v15, %v3643_v12  ;;  %v3592_v20 = vadd.f32 %v3591_v14, %v3590_v13  ;;  %v5199_v21 = vsel %vm50_vm1, %v3466_v16, %v3530_v17 }
0x2bef   :  { %v3593_v22 = vsel %vm3563_vm3, %v5199_v21, 0.0  ;;  %v3618_v23 = vmul.f32 %v5199_v21, %v5199_v21 }
0x2bf0   :  { %v3647_v11 = vadd.f32 %v3646_v0, %v3645_v19  ;;  %v3594_v26 = vadd.f32 %v3593_v22, %v3592_v20 }
0x2bf1   :  { %v3648_v27 = vsel %vm3563_vm3, %v3618_v23, 0.0 }
0x2bf2   :  { %v3595_v28 = vrot.slane %v3594_v26, 4  ;;  %v3649_v29 = vadd.f32 %v3648_v27, %v3647_v11 }
0x2bf4   :  { %v3596_v30 = vadd.f32 %v3595_v28, %v3594_v26  ;;  %v3650_v33 = vrot.slane %v3649_v29, 4 }
0x2bf6   :  { %v3597_v35 = vrot.slane %v3596_v30, 2  ;;  %v3651_v36 = vadd.f32 %v3650_v33, %v3649_v29 }
0x2bf8   :  { %v3598_v37 = vadd.f32 %v3597_v35, %v3596_v30  ;;  %v3652_v38 = vrot.slane %v3651_v36, 2 }
0x2bfa   :  { %v3599_v43 = vrot.slane %v3598_v37, 1  ;;  %v3653_v40 = vadd.f32 %v3652_v38, %v3651_v36 }
0x2bfc   :  { %v3600_v41 = vadd.f32 %v3599_v43, %v3598_v37  ;;  %v3654_v42 = vrot.slane %v3653_v40, 1 }
0x2bfe   :  { %v3602_v44 = vmul.f32 0.03125, %v3600_v41  ;;  %v3655_v46 = vadd.f32 %v3654_v42, %v3653_v40 }
0x2c00   :  { %v3656_v47 = vmul.f32 0.03125, %v3655_v46  ;;  %v3658_v48 = vmul.f32 %v3602_v44, %v3602_v44 }
0x2c02   :  { %v3659_v49 = vsub.f32 %v3656_v47, %v3658_v48 }
0x2c04   :  { %v3660_v50 = vadd.f32 1e-05, %v3659_v49 }
0x2c06   :  { %4458 = vrsqrt.f32 %v3660_v50 }
0x2c10   :  { %v4459_v54 = vpop.eup %4458 }
0x2c11   :  { %v3662_v7 = vmul.f32 %v4459_v54, %v3657_v53 }
0x2c13   :  { %v3664_v3 = vmul.f32 %v3662_v7, %v3602_v44  ;;  %v3670_v62 = vrot.slane %v3662_v7, %v3669_v56 }
0x2c15   :  { %v3665_v60 = vsub.f32 %v3663_v58, %v3664_v3  ;;  %v3672_v63 = vmul.f32 %v3670_v62, %v5090_v32  ;;  %v3673_v5 = vmul.f32 %v3670_v62, %v5079_v24  ;;  %v3674_v6 = vmul.f32 %v3670_v62, %v5082_v25 }
0x2c16   :  { %v3675_v9 = vmul.f32 %v3670_v62, %v5087_v31  ;;  %v3676_v13 = vmul.f32 %v3670_v62, %v5110_v55  ;;  %v3677_v15 = vmul.f32 %v3670_v62, %v5107_v45  ;;  %v3678_v17 = vmul.f32 %v3670_v62, %v5126_v61 }
0x2c17   :  { %v3692_v1 = vrot.slane %v3665_v60, %v3669_v56  ;;  %v3679_v32 = vmul.f32 %v3670_v62, %v5123_v59  ;;  %v3680_v24 = vmul.f32 %v3670_v62, %v5143_v18  ;;  %v3681_v31 = vmul.f32 %v3670_v62, %v5140_v10 }
0x2c18   :  { %v3682_v55 = vmul.f32 %v3670_v62, %v5156_v34  ;;  %v3683_v61 = vmul.f32 %v3670_v62, %v5170_v4  ;;  %v3684_v59 = vmul.f32 %v3670_v62, %v5164_v39  ;;  %v3685_v18 = vmul.f32 %v3670_v62, %v5186_v2 }
0x2c19   :  { %v3694_v8 = vadd.f32 %v3692_v1, %v3672_v63  ;;  %v3695_v12 = vadd.f32 %v3692_v1, %v3673_v5  ;;  %v3696_v14 = vadd.f32 %v3692_v1, %v3674_v6  ;;  %v3697_v16 = vadd.f32 %v3692_v1, %v3675_v9 }
0x2c1a   :  { %v3698_v19 = vadd.f32 %v3692_v1, %v3676_v13  ;;  %v3699_v20 = vadd.f32 %v3692_v1, %v3677_v15  ;;  %v3700_v25 = vadd.f32 %v3692_v1, %v3678_v17  ;;  %v3701_v0 = vadd.f32 %v3692_v1, %v3679_v32 }
0x2c1b   :  { %4460 = vtanh.f32 %v3694_v8  ;;  %v3702_v45 = vadd.f32 %v3692_v1, %v3680_v24  ;;  %v3703_v22 = vadd.f32 %v3692_v1, %v3681_v31  ;;  %v3704_v23 = vadd.f32 %v3692_v1, %v3682_v55 }
0x2c1c   :  { %4462 = vtanh.f32 %v3695_v12  ;;  %v3705_v11 = vadd.f32 %v3692_v1, %v3683_v61  ;;  %v3686_v10 = vmul.f32 %v3670_v62, %v5180_v57  ;;  %v3706_v26 = vadd.f32 %v3692_v1, %v3684_v59 }
0x2c1d   :  { %4464 = vtanh.f32 %v3696_v14  ;;  %v3687_v34 = vmul.f32 %v3670_v62, %v5199_v21  ;;  %v3707_v27 = vadd.f32 %v3692_v1, %v3685_v18 }
0x2c1e   :  { %4466 = vtanh.f32 %v3697_v16  ;;  %v3708_v4 = vadd.f32 %v3692_v1, %v3686_v10 }
0x2c1f   :  { %4468 = vtanh.f32 %v3698_v19  ;;  %v3709_v30 = vadd.f32 %v3692_v1, %v3687_v34 }
0x2c20   :  { %4470 = vtanh.f32 %v3699_v20 }
0x2c21   :  { %4472 = vtanh.f32 %v3700_v25 }
0x2c22   :  { %4474 = vtanh.f32 %v3701_v0 }
0x2c23   :  { %4476 = vtanh.f32 %v3702_v45 }
0x2c24   :  { %4478 = vtanh.f32 %v3703_v22 }
0x2c25   :  { %v4461_v28 = vpop.eup %4460  ;;  %4480 = vtanh.f32 %v3704_v23 }
0x2c26   :  { %v4463_v29 = vpop.eup %4462  ;;  %4482 = vtanh.f32 %v3705_v11  ;;  %3726 = vst.msk [vmem:[%s5302_s9] sm:$0x3] %vm3563_vm3, %v4461_v28 }
0x2c27   :  { %v4465_v39 = vpop.eup %4464  ;;  %4484 = vtanh.f32 %v3706_v26  ;;  %3727 = vst.msk [vmem:[%s5302_s9 + $0x2] sm:$0x3] %vm3563_vm3, %v4463_v29 }
0x2c28   :  { %v4467_v57 = vpop.eup %4466  ;;  %4486 = vtanh.f32 %v3707_v27  ;;  %3728 = vst.msk [vmem:[%s5302_s9 + $0x4] sm:$0x3] %vm3563_vm3, %v4465_v39 }
0x2c29   :  { %v4469_v2 = vpop.eup %4468  ;;  %4488 = vtanh.f32 %v3708_v4  ;;  %3729 = vst.msk [vmem:[%s5302_s9 + $0x6] sm:$0x3] %vm3563_vm3, %v4467_v57 }
0x2c2a   :  { %v4471_v21 = vpop.eup %4470  ;;  %4490 = vtanh.f32 %v3709_v30  ;;  %3730 = vst.msk [vmem:[%s5302_s9 + $0x8] sm:$0x3] %vm3563_vm3, %v4469_v2 }
0x2c2b   :  { %v4473_v33 = vpop.eup %4472  ;;  %3731 = vst.msk [vmem:[%s5302_s9 + $0xa] sm:$0x3] %vm3563_vm3, %v4471_v21 }
0x2c2c   :  { %v4475_v35 = vpop.eup %4474  ;;  %3732 = vst.msk [vmem:[%s5302_s9 + $0xc] sm:$0x3] %vm3563_vm3, %v4473_v33 }
0x2c2d   :  { %v4477_v36 = vpop.eup %4476  ;;  %3733 = vst.msk [vmem:[%s5302_s9 + $0xe] sm:$0x3] %vm3563_vm3, %v4475_v35 }
0x2c2e   :  { %v4479_v37 = vpop.eup %4478  ;;  %3734 = vst.msk [vmem:[%s5302_s9 + $0x10] sm:$0x3] %vm3563_vm3, %v4477_v36 }
0x2c2f   :  { %v4481_v38 = vpop.eup %4480  ;;  %3735 = vst.msk [vmem:[%s5302_s9 + $0x12] sm:$0x3] %vm3563_vm3, %v4479_v37 }
0x2c30   :  { %v4483_v43 = vpop.eup %4482  ;;  %3736 = vst.msk [vmem:[%s5302_s9 + $0x14] sm:$0x3] %vm3563_vm3, %v4481_v38 }
0x2c31   :  { %v4485_v40 = vpop.eup %4484  ;;  %3737 = vst.msk [vmem:[%s5302_s9 + $0x16] sm:$0x3] %vm3563_vm3, %v4483_v43 }
0x2c32   :  { %v4487_v41 = vpop.eup %4486  ;;  %3738 = vst.msk [vmem:[%s5302_s9 + $0x18] sm:$0x3] %vm3563_vm3, %v4485_v40 }
0x2c33   :  { %v4489_v42 = vpop.eup %4488  ;;  %3739 = vst.msk [vmem:[%s5302_s9 + $0x1a] sm:$0x3] %vm3563_vm3, %v4487_v41 }
0x2c34   :  { %v4491_v44 = vpop.eup %4490  ;;  %3740 = vst.msk [vmem:[%s5302_s9 + $0x1c] sm:$0x3] %vm3563_vm3, %v4489_v42 }
0x2c35   :  { %3741 = vst.msk [vmem:[%s5302_s9 + $0x1e] sm:$0x3] %vm3563_vm3, %v4491_v44 }

</bundles_post_ra>
